<compile_context>
chip_gen: v5e
topology: v5e:2x2
jax: 0.10.0
libtpu: 0.0.40
codegen_flags: <defaults>
</compile_context>

<pallas_src>
import functools

import jax
import jax.numpy as jnp
from jax.experimental import pallas as pl
from jax.experimental.pallas import tpu as pltpu

EPS = 1e-5


def make_st_kernel(TB, V, C_in, dk, dv, Nh):
    dkh = dk // Nh
    dvh = dv // Nh
    nqkv = 2 * dk + dv

    def kernel(x_ref, dbn_s_ref, wqkv_ref, bqkv_ref, wo_ref, post_ref, o_ref):
        x = x_ref[...]                                   # (TB, V, C)
        # data_bn multiplicative part (the additive part is folded into bqkv)
        xn = x * dbn_s_ref[...]

        # Fused QKV projection: one (TB*V, C) @ (C, 2dk+dv) matmul.
        # (reshape only merges leading dims with V a multiple of 8 -> layout no-op)
        qkv = jnp.dot(xn.reshape(TB * V, C_in), wqkv_ref[...],
                      preferred_element_type=jnp.float32)            # (TB*V, nqkv)
        qkv = qkv.reshape(TB, V, nqkv) + bqkv_ref[...]                # + per-(v, out) bias

        # Multi-head attention over joints, batched over the TB frame axis.
        heads = []
        for h in range(Nh):
            qh = qkv[..., h * dkh:(h + 1) * dkh]                      # (TB, V, dkh), pre-scaled
            kh = qkv[..., dk + h * dkh:dk + (h + 1) * dkh]            # (TB, V, dkh)
            vh = qkv[..., 2 * dk + h * dvh:2 * dk + (h + 1) * dvh]    # (TB, V, dvh)
            logits = jnp.einsum('bvd,bwd->bvw', qh, kh,
                                preferred_element_type=jnp.float32)   # (TB, V, V)
            logits = logits - jnp.max(logits, axis=-1, keepdims=True)
            e = jnp.exp(logits)
            num = jnp.einsum('bvw,bwd->bvd', e, vh,
                             preferred_element_type=jnp.float32)      # (TB, V, dvh)
            heads.append(num / jnp.sum(e, axis=-1, keepdims=True))
        attn = jnp.concatenate(heads, axis=-1)                        # (TB, V, dv)

        # Single output projection against the full (dv, dv) Wo^T.
        out = jnp.dot(attn.reshape(TB * V, dv), wo_ref[...],
                      preferred_element_type=jnp.float32).reshape(TB, V, dv)
        post = post_ref[...]                                          # (3, dv)
        out = out + post[0:1, :]                                      # output-conv bias

        # Mish: x * tanh(softplus(x)); mimic PyTorch softplus threshold=20
        sp = jnp.where(out > 20.0,
                       out,
                       jnp.log(1.0 + jnp.exp(jnp.minimum(out, 20.0))))
        m = out * jnp.tanh(sp)

        # BatchNorm2d (eval) folded to a per-output-channel affine
        o_ref[...] = m * post[1:2, :] + post[2:3, :]

    return kernel


def st_module_forward(x, params, *, dk, dv, Nh, tb=None):
    """x: (N, C, T, V) float32  ->  (N, dv, T, V) float32."""
    N, C, T, V = x.shape
    B = N * T
    dkh = dk // Nh
    qscale = float(dkh) ** -0.5
    nqkv = 2 * dk + dv

    # --- host-side folding of constants ---
    # data_bn: per-(v, c) affine (BatchNorm1d channel index is c*V + v)
    dbn_s = params['dbn_gamma'] / jnp.sqrt(params['dbn_var'] + EPS)
    dbn_b = params['dbn_beta'] - params['dbn_mean'] * dbn_s
    dbn_s = dbn_s.reshape(C, V).T                                 # (V, C)
    dbn_b = dbn_b.reshape(C, V).T                                 # (V, C)

    # fused QKV weight, Wq columns pre-scaled by 1/sqrt(dkh); fold the data_bn
    # additive part + conv bias into a single per-(joint, out) bias.
    w_qkv = params['w_qkv']                                       # (nqkv, C)
    b_qkv = params['b_qkv']                                       # (nqkv,)
    col_scale = jnp.concatenate([jnp.full((dk,), qscale, jnp.float32),
                                 jnp.ones((dk + dv,), jnp.float32)])
    w_all = (w_qkv * col_scale[:, None]).T                        # (C, nqkv)
    b_all = b_qkv * col_scale                                     # (nqkv,)
    bias_vqkv = dbn_b @ w_all + b_all[None, :]                    # (V, nqkv)

    wo_t = params['w_out'].T                                      # (dv, dv)

    bn2_s = params['bn2_gamma'] / jnp.sqrt(params['bn2_var'] + EPS)
    bn2_b = params['bn2_beta'] - params['bn2_mean'] * bn2_s
    post = jnp.stack([params['b_out'], bn2_s, bn2_b], axis=0)     # (3, dv)

    # frame-major, channels-last layout
    x_frames = jnp.transpose(x, (0, 2, 3, 1)).reshape(B, V, C)    # (B, V, C)

    # frame-block size: amortize per-step overhead, keep >=2 grid steps when
    # possible so v7x's two TensorCores both get work, stay within default VMEM.
    if tb is None:
        tb = int(max(8, min(128, pl.cdiv(B, 2))))
    Bp = int(pl.cdiv(B, tb)) * tb
    if Bp != B:
        x_frames = jnp.pad(x_frames, ((0, Bp - B), (0, 0), (0, 0)))

    kernel = make_st_kernel(tb, V, C, dk, dv, Nh)
    const = lambda b: (0, 0)

    y_frames = pl.pallas_call(
        kernel,
        out_shape=jax.ShapeDtypeStruct((Bp, V, dv), jnp.float32),
        grid_spec=pltpu.PrefetchScalarGridSpec(
            num_scalar_prefetch=0,
            grid=(Bp // tb,),
            in_specs=[
                pl.BlockSpec((tb, V, C), lambda b: (b, 0, 0)),    # x frames
                pl.BlockSpec((V, C), const),                      # data_bn scale
                pl.BlockSpec((C, nqkv), const),                   # fused Wqkv (q pre-scaled)
                pl.BlockSpec((V, nqkv), const),                   # fused per-joint qkv bias
                pl.BlockSpec((dv, dv), const),                    # Wo^T
                pl.BlockSpec((3, dv), const),                     # [b_out; bn2_scale; bn2_shift]
            ],
            out_specs=pl.BlockSpec((tb, V, dv), lambda b: (b, 0, 0)),
        ),
        compiler_params=pltpu.CompilerParams(
            dimension_semantics=("parallel",)),
    )(x_frames, dbn_s, w_all, bias_vqkv, wo_t, post)

    y_frames = y_frames[:B]
    # (B, V, dv) -> (N, T, V, dv) -> (N, dv, T, V)
    return jnp.transpose(y_frames.reshape(N, T, V, dv), (0, 3, 1, 2))


def reference_forward(x, p, *, dk, dv, Nh):
    """Pure-JAX mirror of the PyTorch STModule forward (eval mode)."""
    N, C, T, V = x.shape
    B = N * T
    dkh, dvh = dk // Nh, dv // Nh

    xr = jnp.transpose(x, (0, 1, 3, 2)).reshape(N, C * V, T)
    s = p['dbn_gamma'] / jnp.sqrt(p['dbn_var'] + EPS)
    xr = (xr - p['dbn_mean'][None, :, None]) * s[None, :, None] + p['dbn_beta'][None, :, None]
    xb = jnp.transpose(xr.reshape(N, C, V, T), (0, 1, 3, 2))     # (N, C, T, V)

    xa = jnp.transpose(xb, (0, 2, 1, 3)).reshape(B, C, V)        # frames
    qkv = jnp.einsum('oc,bcv->bov', p['w_qkv'], xa) + p['b_qkv'][None, :, None]
    q = qkv[:, :dk].reshape(B, Nh, dkh, V) * (float(dkh) ** -0.5)
    k = qkv[:, dk:2 * dk].reshape(B, Nh, dkh, V)
    v = qkv[:, 2 * dk:].reshape(B, Nh, dvh, V)
    logits = jnp.einsum('bhdi,bhdj->bhij', q, k)
    w = jax.nn.softmax(logits, axis=-1)
    attn = jnp.einsum('bhij,bhdj->bhid', w, v)                   # (B, Nh, V, dvh)
    attn = jnp.transpose(attn, (0, 1, 3, 2)).reshape(B, Nh * dvh, V)
    out = jnp.einsum('oc,bcv->bov', p['w_out'], attn) + p['b_out'][None, :, None]

    y = jnp.transpose(out.reshape(N, T, dv, V), (0, 2, 1, 3))    # (N, dv, T, V)
    sp = jnp.where(y > 20.0, y, jnp.log1p(jnp.exp(jnp.minimum(y, 20.0))))
    y = y * jnp.tanh(sp)
    s2 = p['bn2_gamma'] / jnp.sqrt(p['bn2_var'] + EPS)
    y = (y - p['bn2_mean'][None, :, None, None]) * s2[None, :, None, None] \
        + p['bn2_beta'][None, :, None, None]
    return y


if __name__ == "__main__":
    # Small shapes consistent with the module: N batch, C_in channels, T frames, V joints.
    N, C_in, T, V = 2, 4, 8, 16
    C_out = 32
    Nh = 4
    dk = int(0.25 * C_out)          # 8  (dk_factor = 0.25, as in ST-TR / GaitTR)
    dv = C_out                      # 32 (only_attention: attention carries all out channels)

    key = jax.random.PRNGKey(0)
    ks = jax.random.split(key, 12)

    params = {
        # data_bn : BatchNorm1d(C_in * V)
        'dbn_gamma': jax.random.normal(ks[0], (C_in * V,)) * 0.1 + 1.0,
        'dbn_beta':  jax.random.normal(ks[1], (C_in * V,)) * 0.1,
        'dbn_mean':  jax.random.normal(ks[2], (C_in * V,)) * 0.1,
        'dbn_var':   jax.random.uniform(ks[3], (C_in * V,), minval=0.5, maxval=1.5),
        # qkv 1x1 conv : Conv2d(C_in, 2*dk + dv, 1)
        'w_qkv': jax.random.normal(ks[4], (2 * dk + dv, C_in)) * 0.2,
        'b_qkv': jax.random.normal(ks[5], (2 * dk + dv,)) * 0.05,
        # attention output 1x1 conv : Conv2d(dv, dv, 1)
        'w_out': jax.random.normal(ks[6], (dv, dv)) * 0.2,
        'b_out': jax.random.normal(ks[7], (dv,)) * 0.05,
        # bn : BatchNorm2d(C_out)
        'bn2_gamma': jax.random.normal(ks[8], (dv,)) * 0.1 + 1.0,
        'bn2_beta':  jax.random.normal(ks[9], (dv,)) * 0.1,
        'bn2_mean':  jax.random.normal(ks[10], (dv,)) * 0.1,
        'bn2_var':   jax.random.uniform(ks[11], (dv,), minval=0.5, maxval=1.5),
    }
    # incidence (graph adjacency, shape (3, V, V)) is only consumed when adjacency=True
    # in SpatialAttention; with the default adjacency=False it is unused in the forward.
    incidence = jnp.eye(V)[None].repeat(3, axis=0)  # noqa: F841 (kept for shape parity)

    x = jax.random.normal(jax.random.PRNGKey(42), (N, C_in, T, V), dtype=jnp.float32)

    fwd = jax.jit(functools.partial(st_module_forward, dk=dk, dv=dv, Nh=Nh))
    y = fwd(x, params)
    jax.block_until_ready(y)

    y_ref = reference_forward(x, params, dk=dk, dv=dv, Nh=Nh)
    assert y.shape == (N, C_out, T, V), y.shape
    assert jnp.allclose(y, y_ref, rtol=1e-4, atol=1e-4), \
        f"max abs err = {jnp.max(jnp.abs(y - y_ref))}"

    print("KERNEL_OK")
</pallas_src>

<mosaic_0001>
module attributes {stable_mosaic.version = 11 : i64} {
  func.func @kernel(%arg0: i32, %arg1: memref<8x16x4xf32, #tpu.memory_space<vmem>>, %arg2: memref<16x4xf32, #tpu.memory_space<vmem>>, %arg3: memref<4x48xf32, #tpu.memory_space<vmem>>, %arg4: memref<16x48xf32, #tpu.memory_space<vmem>>, %arg5: memref<32x32xf32, #tpu.memory_space<vmem>>, %arg6: memref<3x32xf32, #tpu.memory_space<vmem>>, %arg7: memref<8x16x32xf32, #tpu.memory_space<vmem>>) attributes {dimension_semantics = [#tpu.dimension_semantics<parallel>], iteration_bounds = array<i64: 2>, scalar_prefetch = 0 : i64, scratch_operands = 0 : i64, tpu.core_type = #tpu.core_type<tc>, window_params = [{transform_indices = @transform_0, window_bounds = array<i64: 8, 16, 4>}, {pipeline_mode = #tpu.pipeline_mode<synchronous>, transform_indices = @transform_1, window_bounds = array<i64: 16, 4>}, {pipeline_mode = #tpu.pipeline_mode<synchronous>, transform_indices = @transform_2, window_bounds = array<i64: 4, 48>}, {pipeline_mode = #tpu.pipeline_mode<synchronous>, transform_indices = @transform_3, window_bounds = array<i64: 16, 48>}, {pipeline_mode = #tpu.pipeline_mode<synchronous>, transform_indices = @transform_4, window_bounds = array<i64: 32, 32>}, {pipeline_mode = #tpu.pipeline_mode<synchronous>, transform_indices = @transform_5, window_bounds = array<i64: 3, 32>}, {transform_indices = @transform_6, window_bounds = array<i64: 8, 16, 32>}]} {
    %c0 = arith.constant 0 : index
    %c0_0 = arith.constant 0 : index
    %c0_1 = arith.constant 0 : index
    %0 = vector.load %arg1[%c0, %c0_0, %c0_1] : memref<8x16x4xf32, #tpu.memory_space<vmem>>, vector<8x16x4xf32>
    %c0_2 = arith.constant 0 : index
    %c0_3 = arith.constant 0 : index
    %1 = vector.load %arg2[%c0_2, %c0_3] : memref<16x4xf32, #tpu.memory_space<vmem>>, vector<16x4xf32>
    %2 = vector.shape_cast %1 : vector<16x4xf32> to vector<1x16x4xf32>
    %3 = vector.broadcast %2 : vector<1x16x4xf32> to vector<8x16x4xf32>
    %4 = arith.mulf %0, %3 : vector<8x16x4xf32>
    %5 = vector.shape_cast %4 : vector<8x16x4xf32> to vector<128x4xf32>
    %c0_4 = arith.constant 0 : index
    %c0_5 = arith.constant 0 : index
    %6 = vector.load %arg3[%c0_4, %c0_5] : memref<4x48xf32, #tpu.memory_space<vmem>>, vector<4x48xf32>
    %cst = arith.constant dense<0.000000e+00> : vector<128x48xf32>
    %7 = tpu.matmul %5, %6, %cst {dimension_numbers = #tpu.dot_dimension_numbers<[1], [0], [0], [1], [0, 0, 1, 1], [], []>} : vector<128x4xf32>, vector<4x48xf32>, vector<128x48xf32> -> vector<128x48xf32>
    %8 = vector.shape_cast %7 : vector<128x48xf32> to vector<8x16x48xf32>
    %c0_6 = arith.constant 0 : index
    %c0_7 = arith.constant 0 : index
    %9 = vector.load %arg4[%c0_6, %c0_7] : memref<16x48xf32, #tpu.memory_space<vmem>>, vector<16x48xf32>
    %10 = vector.shape_cast %9 : vector<16x48xf32> to vector<1x16x48xf32>
    %11 = vector.broadcast %10 : vector<1x16x48xf32> to vector<8x16x48xf32>
    %12 = arith.addf %8, %11 : vector<8x16x48xf32>
    %13 = vector.extract_strided_slice %12 {offsets = [0, 0, 0], sizes = [8, 16, 2], strides = [1, 1, 1]} : vector<8x16x48xf32> to vector<8x16x2xf32>
    %14 = vector.extract_strided_slice %12 {offsets = [0, 0, 8], sizes = [8, 16, 2], strides = [1, 1, 1]} : vector<8x16x48xf32> to vector<8x16x2xf32>
    %15 = vector.extract_strided_slice %12 {offsets = [0, 0, 16], sizes = [8, 16, 8], strides = [1, 1, 1]} : vector<8x16x48xf32> to vector<8x16x8xf32>
    "tpu.trace_start"() <{level = 10 : i32, message = "bvd,bwd->bvw"}> : () -> ()
    %cst_8 = arith.constant dense<0.000000e+00> : vector<8x16x16xf32>
    %16 = tpu.matmul %13, %14, %cst_8 {dimension_numbers = #tpu.dot_dimension_numbers<[2], [2], [1], [1], [0, 0, 0, 1, 1, 1], [0], [0]>} : vector<8x16x2xf32>, vector<8x16x2xf32>, vector<8x16x16xf32> -> vector<8x16x16xf32>
    "tpu.trace_stop"() : () -> ()
    %cst_9 = arith.constant dense<0xFF800000> : vector<8x16xf32>
    %17 = vector.multi_reduction <maximumf>, %16, %cst_9 [2] : vector<8x16x16xf32> to vector<8x16xf32>
    %18 = vector.shape_cast %17 : vector<8x16xf32> to vector<8x16x1xf32>
    %19 = vector.broadcast %18 : vector<8x16x1xf32> to vector<8x16x16xf32>
    %20 = arith.subf %16, %19 : vector<8x16x16xf32>
    %21 = math.exp %20 : vector<8x16x16xf32>
    "tpu.trace_start"() <{level = 10 : i32, message = "bvw,bwd->bvd"}> : () -> ()
    %cst_10 = arith.constant dense<0.000000e+00> : vector<8x16x8xf32>
    %22 = tpu.matmul %21, %15, %cst_10 {dimension_numbers = #tpu.dot_dimension_numbers<[2], [1], [1], [2], [0, 0, 0, 1, 1, 2], [0], [0]>} : vector<8x16x16xf32>, vector<8x16x8xf32>, vector<8x16x8xf32> -> vector<8x16x8xf32>
    "tpu.trace_stop"() : () -> ()
    %cst_11 = arith.constant dense<0.000000e+00> : vector<8x16xf32>
    %23 = vector.multi_reduction <add>, %21, %cst_11 [2] : vector<8x16x16xf32> to vector<8x16xf32>
    %24 = vector.shape_cast %23 : vector<8x16xf32> to vector<8x16x1xf32>
    %25 = vector.broadcast %24 : vector<8x16x1xf32> to vector<8x16x8xf32>
    %26 = arith.divf %22, %25 : vector<8x16x8xf32>
    %27 = vector.extract_strided_slice %12 {offsets = [0, 0, 2], sizes = [8, 16, 2], strides = [1, 1, 1]} : vector<8x16x48xf32> to vector<8x16x2xf32>
    %28 = vector.extract_strided_slice %12 {offsets = [0, 0, 10], sizes = [8, 16, 2], strides = [1, 1, 1]} : vector<8x16x48xf32> to vector<8x16x2xf32>
    %29 = vector.extract_strided_slice %12 {offsets = [0, 0, 24], sizes = [8, 16, 8], strides = [1, 1, 1]} : vector<8x16x48xf32> to vector<8x16x8xf32>
    "tpu.trace_start"() <{level = 10 : i32, message = "bvd,bwd->bvw"}> : () -> ()
    %cst_12 = arith.constant dense<0.000000e+00> : vector<8x16x16xf32>
    %30 = tpu.matmul %27, %28, %cst_12 {dimension_numbers = #tpu.dot_dimension_numbers<[2], [2], [1], [1], [0, 0, 0, 1, 1, 1], [0], [0]>} : vector<8x16x2xf32>, vector<8x16x2xf32>, vector<8x16x16xf32> -> vector<8x16x16xf32>
    "tpu.trace_stop"() : () -> ()
    %cst_13 = arith.constant dense<0xFF800000> : vector<8x16xf32>
    %31 = vector.multi_reduction <maximumf>, %30, %cst_13 [2] : vector<8x16x16xf32> to vector<8x16xf32>
    %32 = vector.shape_cast %31 : vector<8x16xf32> to vector<8x16x1xf32>
    %33 = vector.broadcast %32 : vector<8x16x1xf32> to vector<8x16x16xf32>
    %34 = arith.subf %30, %33 : vector<8x16x16xf32>
    %35 = math.exp %34 : vector<8x16x16xf32>
    "tpu.trace_start"() <{level = 10 : i32, message = "bvw,bwd->bvd"}> : () -> ()
    %cst_14 = arith.constant dense<0.000000e+00> : vector<8x16x8xf32>
    %36 = tpu.matmul %35, %29, %cst_14 {dimension_numbers = #tpu.dot_dimension_numbers<[2], [1], [1], [2], [0, 0, 0, 1, 1, 2], [0], [0]>} : vector<8x16x16xf32>, vector<8x16x8xf32>, vector<8x16x8xf32> -> vector<8x16x8xf32>
    "tpu.trace_stop"() : () -> ()
    %cst_15 = arith.constant dense<0.000000e+00> : vector<8x16xf32>
    %37 = vector.multi_reduction <add>, %35, %cst_15 [2] : vector<8x16x16xf32> to vector<8x16xf32>
    %38 = vector.shape_cast %37 : vector<8x16xf32> to vector<8x16x1xf32>
    %39 = vector.broadcast %38 : vector<8x16x1xf32> to vector<8x16x8xf32>
    %40 = arith.divf %36, %39 : vector<8x16x8xf32>
    %41 = vector.extract_strided_slice %12 {offsets = [0, 0, 4], sizes = [8, 16, 2], strides = [1, 1, 1]} : vector<8x16x48xf32> to vector<8x16x2xf32>
    %42 = vector.extract_strided_slice %12 {offsets = [0, 0, 12], sizes = [8, 16, 2], strides = [1, 1, 1]} : vector<8x16x48xf32> to vector<8x16x2xf32>
    %43 = vector.extract_strided_slice %12 {offsets = [0, 0, 32], sizes = [8, 16, 8], strides = [1, 1, 1]} : vector<8x16x48xf32> to vector<8x16x8xf32>
    "tpu.trace_start"() <{level = 10 : i32, message = "bvd,bwd->bvw"}> : () -> ()
    %cst_16 = arith.constant dense<0.000000e+00> : vector<8x16x16xf32>
    %44 = tpu.matmul %41, %42, %cst_16 {dimension_numbers = #tpu.dot_dimension_numbers<[2], [2], [1], [1], [0, 0, 0, 1, 1, 1], [0], [0]>} : vector<8x16x2xf32>, vector<8x16x2xf32>, vector<8x16x16xf32> -> vector<8x16x16xf32>
    "tpu.trace_stop"() : () -> ()
    %cst_17 = arith.constant dense<0xFF800000> : vector<8x16xf32>
    %45 = vector.multi_reduction <maximumf>, %44, %cst_17 [2] : vector<8x16x16xf32> to vector<8x16xf32>
    %46 = vector.shape_cast %45 : vector<8x16xf32> to vector<8x16x1xf32>
    %47 = vector.broadcast %46 : vector<8x16x1xf32> to vector<8x16x16xf32>
    %48 = arith.subf %44, %47 : vector<8x16x16xf32>
    %49 = math.exp %48 : vector<8x16x16xf32>
    "tpu.trace_start"() <{level = 10 : i32, message = "bvw,bwd->bvd"}> : () -> ()
    %cst_18 = arith.constant dense<0.000000e+00> : vector<8x16x8xf32>
    %50 = tpu.matmul %49, %43, %cst_18 {dimension_numbers = #tpu.dot_dimension_numbers<[2], [1], [1], [2], [0, 0, 0, 1, 1, 2], [0], [0]>} : vector<8x16x16xf32>, vector<8x16x8xf32>, vector<8x16x8xf32> -> vector<8x16x8xf32>
    "tpu.trace_stop"() : () -> ()
    %cst_19 = arith.constant dense<0.000000e+00> : vector<8x16xf32>
    %51 = vector.multi_reduction <add>, %49, %cst_19 [2] : vector<8x16x16xf32> to vector<8x16xf32>
    %52 = vector.shape_cast %51 : vector<8x16xf32> to vector<8x16x1xf32>
    %53 = vector.broadcast %52 : vector<8x16x1xf32> to vector<8x16x8xf32>
    %54 = arith.divf %50, %53 : vector<8x16x8xf32>
    %55 = vector.extract_strided_slice %12 {offsets = [0, 0, 6], sizes = [8, 16, 2], strides = [1, 1, 1]} : vector<8x16x48xf32> to vector<8x16x2xf32>
    %56 = vector.extract_strided_slice %12 {offsets = [0, 0, 14], sizes = [8, 16, 2], strides = [1, 1, 1]} : vector<8x16x48xf32> to vector<8x16x2xf32>
    %57 = vector.extract_strided_slice %12 {offsets = [0, 0, 40], sizes = [8, 16, 8], strides = [1, 1, 1]} : vector<8x16x48xf32> to vector<8x16x8xf32>
    "tpu.trace_start"() <{level = 10 : i32, message = "bvd,bwd->bvw"}> : () -> ()
    %cst_20 = arith.constant dense<0.000000e+00> : vector<8x16x16xf32>
    %58 = tpu.matmul %55, %56, %cst_20 {dimension_numbers = #tpu.dot_dimension_numbers<[2], [2], [1], [1], [0, 0, 0, 1, 1, 1], [0], [0]>} : vector<8x16x2xf32>, vector<8x16x2xf32>, vector<8x16x16xf32> -> vector<8x16x16xf32>
    "tpu.trace_stop"() : () -> ()
    %cst_21 = arith.constant dense<0xFF800000> : vector<8x16xf32>
    %59 = vector.multi_reduction <maximumf>, %58, %cst_21 [2] : vector<8x16x16xf32> to vector<8x16xf32>
    %60 = vector.shape_cast %59 : vector<8x16xf32> to vector<8x16x1xf32>
    %61 = vector.broadcast %60 : vector<8x16x1xf32> to vector<8x16x16xf32>
    %62 = arith.subf %58, %61 : vector<8x16x16xf32>
    %63 = math.exp %62 : vector<8x16x16xf32>
    "tpu.trace_start"() <{level = 10 : i32, message = "bvw,bwd->bvd"}> : () -> ()
    %cst_22 = arith.constant dense<0.000000e+00> : vector<8x16x8xf32>
    %64 = tpu.matmul %63, %57, %cst_22 {dimension_numbers = #tpu.dot_dimension_numbers<[2], [1], [1], [2], [0, 0, 0, 1, 1, 2], [0], [0]>} : vector<8x16x16xf32>, vector<8x16x8xf32>, vector<8x16x8xf32> -> vector<8x16x8xf32>
    "tpu.trace_stop"() : () -> ()
    %cst_23 = arith.constant dense<0.000000e+00> : vector<8x16xf32>
    %65 = vector.multi_reduction <add>, %63, %cst_23 [2] : vector<8x16x16xf32> to vector<8x16xf32>
    %66 = vector.shape_cast %65 : vector<8x16xf32> to vector<8x16x1xf32>
    %67 = vector.broadcast %66 : vector<8x16x1xf32> to vector<8x16x8xf32>
    %68 = arith.divf %64, %67 : vector<8x16x8xf32>
    %69 = tpu.concatenate %26, %40, %54, %68 in 2 : vector<8x16x8xf32>, vector<8x16x8xf32>, vector<8x16x8xf32>, vector<8x16x8xf32> -> vector<8x16x32xf32>
    %70 = vector.shape_cast %69 : vector<8x16x32xf32> to vector<128x32xf32>
    %c0_24 = arith.constant 0 : index
    %c0_25 = arith.constant 0 : index
    %71 = vector.load %arg5[%c0_24, %c0_25] : memref<32x32xf32, #tpu.memory_space<vmem>>, vector<32x32xf32>
    %cst_26 = arith.constant dense<0.000000e+00> : vector<128x32xf32>
    %72 = tpu.matmul %70, %71, %cst_26 {dimension_numbers = #tpu.dot_dimension_numbers<[1], [0], [0], [1], [0, 0, 1, 1], [], []>} : vector<128x32xf32>, vector<32x32xf32>, vector<128x32xf32> -> vector<128x32xf32>
    %73 = vector.shape_cast %72 : vector<128x32xf32> to vector<8x16x32xf32>
    %c0_27 = arith.constant 0 : index
    %c0_28 = arith.constant 0 : index
    %74 = vector.load %arg6[%c0_27, %c0_28] : memref<3x32xf32, #tpu.memory_space<vmem>>, vector<3x32xf32>
    %75 = vector.extract_strided_slice %74 {offsets = [0, 0], sizes = [1, 32], strides = [1, 1]} : vector<3x32xf32> to vector<1x32xf32>
    %76 = vector.shape_cast %75 : vector<1x32xf32> to vector<1x1x32xf32>
    %77 = vector.broadcast %76 : vector<1x1x32xf32> to vector<8x16x32xf32>
    %78 = arith.addf %73, %77 : vector<8x16x32xf32>
    %cst_29 = arith.constant 2.000000e+01 : f32
    %79 = vector.broadcast %cst_29 : f32 to vector<8x16x32xf32>
    %80 = arith.cmpf ogt, %78, %79 : vector<8x16x32xf32>
    %cst_30 = arith.constant 2.000000e+01 : f32
    %81 = vector.broadcast %cst_30 : f32 to vector<8x16x32xf32>
    %82 = arith.minimumf %78, %81 : vector<8x16x32xf32>
    %83 = math.exp %82 : vector<8x16x32xf32>
    %cst_31 = arith.constant 1.000000e+00 : f32
    %84 = vector.broadcast %cst_31 : f32 to vector<8x16x32xf32>
    %85 = arith.addf %84, %83 : vector<8x16x32xf32>
    %86 = math.log %85 : vector<8x16x32xf32>
    %87 = arith.select %80, %78, %86 : vector<8x16x32xi1>, vector<8x16x32xf32>
    %88 = math.tanh %87 : vector<8x16x32xf32>
    %89 = arith.mulf %78, %88 : vector<8x16x32xf32>
    %90 = vector.extract_strided_slice %74 {offsets = [1, 0], sizes = [1, 32], strides = [1, 1]} : vector<3x32xf32> to vector<1x32xf32>
    %91 = vector.shape_cast %90 : vector<1x32xf32> to vector<1x1x32xf32>
    %92 = vector.broadcast %91 : vector<1x1x32xf32> to vector<8x16x32xf32>
    %93 = arith.mulf %89, %92 : vector<8x16x32xf32>
    %94 = vector.extract_strided_slice %74 {offsets = [2, 0], sizes = [1, 32], strides = [1, 1]} : vector<3x32xf32> to vector<1x32xf32>
    %95 = vector.shape_cast %94 : vector<1x32xf32> to vector<1x1x32xf32>
    %96 = vector.broadcast %95 : vector<1x1x32xf32> to vector<8x16x32xf32>
    %97 = arith.addf %93, %96 : vector<8x16x32xf32>
    %c0_32 = arith.constant 0 : index
    %c0_33 = arith.constant 0 : index
    %c0_34 = arith.constant 0 : index
    %98 = vector.load %arg7[%c0_32, %c0_33, %c0_34] : memref<8x16x32xf32, #tpu.memory_space<vmem>>, vector<8x16x32xf32>
    tpu.vector_store %arg7[%c0_32, %c0_33, %c0_34], %97 {strides = array<i32>} : memref<8x16x32xf32, #tpu.memory_space<vmem>>, vector<8x16x32xf32>,
    return
  }
  func.func @transform_0(%arg0: i32) -> (i32, i32, i32) {
    %c0_i32 = arith.constant 0 : i32
    %c0_i32_0 = arith.constant 0 : i32
    %c0_i32_1 = arith.constant 0 : i32
    return %arg0, %c0_i32, %c0_i32_0 : i32, i32, i32
  }
  func.func @transform_1(%arg0: i32) -> (i32, i32) {
    %c0_i32 = arith.constant 0 : i32
    %c0_i32_0 = arith.constant 0 : i32
    %c0_i32_1 = arith.constant 0 : i32
    return %c0_i32, %c0_i32_0 : i32, i32
  }
  func.func @transform_2(%arg0: i32) -> (i32, i32) {
    %c0_i32 = arith.constant 0 : i32
    %c0_i32_0 = arith.constant 0 : i32
    %c0_i32_1 = arith.constant 0 : i32
    return %c0_i32, %c0_i32_0 : i32, i32
  }
  func.func @transform_3(%arg0: i32) -> (i32, i32) {
    %c0_i32 = arith.constant 0 : i32
    %c0_i32_0 = arith.constant 0 : i32
    %c0_i32_1 = arith.constant 0 : i32
    return %c0_i32, %c0_i32_0 : i32, i32
  }
  func.func @transform_4(%arg0: i32) -> (i32, i32) {
    %c0_i32 = arith.constant 0 : i32
    %c0_i32_0 = arith.constant 0 : i32
    %c0_i32_1 = arith.constant 0 : i32
    return %c0_i32, %c0_i32_0 : i32, i32
  }
  func.func @transform_5(%arg0: i32) -> (i32, i32) {
    %c0_i32 = arith.constant 0 : i32
    %c0_i32_0 = arith.constant 0 : i32
    %c0_i32_1 = arith.constant 0 : i32
    return %c0_i32, %c0_i32_0 : i32, i32
  }
  func.func @transform_6(%arg0: i32) -> (i32, i32, i32) {
    %c0_i32 = arith.constant 0 : i32
    %c0_i32_0 = arith.constant 0 : i32
    %c0_i32_1 = arith.constant 0 : i32
    return %arg0, %c0_i32, %c0_i32_0 : i32, i32, i32
  }
}

</mosaic_0001>

<bundles_post_ra>
// kernel: mul.12
= control target key start
LH: loop header
LB: loop body
LE: loop exit
PB: predicated region body
PF: predicated region fallthrough
CT: control target
= control target key end

     0   :  { %s34_s0 = inlined_call_operand.vmem [shape: f32[48], index: 0, kind: input, shape index: {}]   ;;  %s35_s1 = inlined_call_operand.vmem [shape: f32[48], index: 1, kind: input, shape index: {}]   ;;  %s36_s2 = inlined_call_operand.vmem [shape: f32[48], index: 2, kind: output, shape index: {}]  }
   0x1   :  { %v3_v0 = vld [vmem:[%s34_s0] sm:$0x1] }
   0x2   :  { %v4_v1 = vld [vmem:[%s35_s1] sm:$0x1] }
   0x3   :  { %v7_v2 = vmul.f32 %v4_v1, %v3_v0 }
   0x5   :  { %9 = vst [vmem:[%s36_s2] sm:$0x1] %v7_v2 }

// kernel: st_module_forward.1
= control target key start
LH: loop header
LB: loop body
LE: loop exit
PB: predicated region body
PF: predicated region fallthrough
CT: control target
= control target key end

     0   :  { %11 = vsyncpa [#allocation3], 0  ;;  %s8761_s0 = inlined_call_operand.vmem [shape: f32[16,16,4], index: 0, kind: input, shape index: {}]   ;;  %s8762_s1 = inlined_call_operand.vmem [shape: f32[16,4], index: 1, kind: input, shape index: {}]   ;;  %s8763_s2 = inlined_call_operand.vmem [shape: f32[4,48], index: 2, kind: input, shape index: {}]   ;;  %s8764_s3 = inlined_call_operand.vmem [shape: f32[16,48], index: 3, kind: input, shape index: {}]   ;;  %s8765_s4 = inlined_call_operand.vmem [shape: f32[32,32], index: 4, kind: input, shape index: {}]   ;;  %s8766_s5 = inlined_call_operand.vmem [shape: f32[3,32], index: 5, kind: input, shape index: {}]   ;;  %s8767_s6 = inlined_call_operand.hbm [shape: f32[16,16,32], index: 6, kind: output, shape index: {}]  }
   0x1   :  { %13 = vsyncpa [#allocation3 + $0x1], 0  ;;  %s5909_s21 = smov 0   ;;  %s5911_s22 = smov 0  }
   0x2   :  { %s5913_s23 = smov 0   ;;  %s5915_s24 = smov 0  }
   0x3 LB: > { %s5930_s25 = sadd.s32 4294967295, %s5857_s24   ;;  %s4984_s26 = sadd.s32 4294967294, %s5857_s24   ;;  %s5857_s24 = sphi %s5915_s24, %s9070_s24   ;;  %s5853_s23 = sphi %s5913_s23, %s9069_s23   ;;  %s5849_s22 = sphi %s5911_s22, %s9068_s22   ;;  %s5845_s21 = sphi %s5909_s21, %s9067_s21  }
   0x4   : > { %s5934_s27 = sadd.s32 1, %s5857_s24   ;;  %s157_s28 = sadd.s32 1, %s5853_s23 }
   0x5   : > { %s154_s29 = ssub.s32 %s5857_s24, %s5934_s27  ;;  %p167_p0 = scmp.ne.s32.totalorder %s5853_s23, %s5849_s22 }
   0x6   : > { %p155_p1 = scmp.eq.s32.totalorder %s154_s29, 0  ;;  %p168_p2 = scmp.eq.s32.totalorder %s5930_s25, 1 }
   0x7   : > { %p173_p3 = scmp.ne.s32.totalorder %s5849_s22, %s5845_s21  ;;  %p174_p4 = scmp.eq.s32.totalorder %s4984_s26, 1 }
   0x8   : > { %s5945_s30 = scalar_select %p155_p1, %s5853_s23, %s157_s28  }
   0x9   : > { %p5947_p5 = por %p168_p2, %p167_p0  ;;  %p5951_p6 = por %p174_p4, %p173_p3 }
   0xa   : > { %p4987_p7 = scmp.ge.s32.totalorder %s5857_s24, 1  ;;  %p217_p8 = scmp.lt.s32.totalorder %s5857_s24, 3 }
   0xc   : > { %p218_p9 = pnand %p4987_p7, %p217_p8 }
   0xe   : > { %221 = sbr.rel (%p218_p9) target bundleno = 2284 (0x8ec), region = 44 }
  0x13   : > { %v290_v0 = vld [vmem:[%s8763_s2] sm:$0xf]  ;;  %vm340_vm0 = vcmask 1043456   ;;  %s4989_s11 = sshll.u32 %s5930_s25, 3  ;;  %vm291_vm1 = vcmask 31744   ;;  %v273_v11 = vld [vmem:[%s8762_s1 + $0x8] sm:$0xff] }
  0x14   : > { %4992 = vmatpush.msk.msra.mxu0 %vm340_vm0, %v290_v0  ;;  %5226 = vmatpush.msk.msra.mxu1 %vm340_vm0, %v290_v0  ;;  %p249_p10 = scmp.lt.s32.totalorder %s4989_s11, 15  ;;  %v272_v1 = vld [vmem:[%s8762_s1] sm:$0xff]  ;;  %s5859_s28 = smov 120   ;;  %v410_v44 = vld [vmem:[%s8764_s3 + $0x8] sm:$0xff]  ;;  %vm433_vm2 = vcmask 15360   ;;  %vm724_vm3 = vcmask 130048  }
  0x15   : > { %5227 = vmatpush.msk.msra.mxu2 %vm340_vm0, %v290_v0  ;;  %5228 = vmatpush.msk.msra.mxu3 %vm340_vm0, %v290_v0  ;;  %v6007_v35 = vld [vmem:[%s8764_s3] sm:$0xff]  ;;  %s5860_s29 = smov 118   ;;  %s5861_s9 = smov 126  }
  0x16   : > { %s9072_s11 = smov (!%p249_p10, %s4989_s11), 15  ;;  %s5863_s13 = smov 104  }
  0x17   : > { %s5223_s12 = sshll.u32 %s9072_s11, 4  ;;  %s5864_s14 = smov 124  }
  0x18   : > { %s5967_s17 = scalar_lea.vmem %s8761_s0, %s5223_s12  ;;  %s5862_s12 = smov 112  }
  0x19   : > { %v256_v2 = vld [vmem:[%s5967_s17] sm:$0xff]  ;;  %v257_v10 = vld [vmem:[%s5967_s17 + $0x8] sm:$0xff]  ;;  %v258_v19 = vld [vmem:[%s5967_s17 + $0x10] sm:$0xff]  ;;  %s5865_s15 = smov 116   ;;  %s5866_s16 = smov 96  }
  0x1a   : > { %v260_v3 = vld [vmem:[%s5967_s17 + $0x20] sm:$0xff]  ;;  %v274_v5 = vmul.f32 %v272_v1, %v256_v2  ;;  %v261_v12 = vld [vmem:[%s5967_s17 + $0x28] sm:$0xff]  ;;  %v275_v15 = vmul.f32 %v273_v11, %v257_v10  ;;  %v262_v20 = vld [vmem:[%s5967_s17 + $0x30] sm:$0xff]  ;;  %v276_v23 = vmul.f32 %v272_v1, %v258_v19  ;;  %s5868_s18 = smov 122   ;;  %s5869_s19 = smov 88  }
  0x1b   : > { %v264_v4 = vld [vmem:[%s5967_s17 + $0x40] sm:$0xff]  ;;  %v278_v6 = vmul.f32 %v272_v1, %v260_v3  ;;  %v265_v13 = vld [vmem:[%s5967_s17 + $0x48] sm:$0xff]  ;;  %v279_v16 = vmul.f32 %v273_v11, %v261_v12  ;;  %v266_v21 = vld [vmem:[%s5967_s17 + $0x50] sm:$0xff]  ;;  %v280_v24 = vmul.f32 %v272_v1, %v262_v20  ;;  %s5870_s20 = smov 8   ;;  %s5871_s26 = smov 16  }
  0x1c   : > { %v282_v7 = vmul.f32 %v272_v1, %v264_v4  ;;  %v268_v8 = vld [vmem:[%s5967_s17 + $0x60] sm:$0xff]  ;;  %4993 = vmatmul.msk.f32.vlgmr.msra.gmra.mxu0 %vm291_vm1, %v274_v5  ;;  %v269_v14 = vld [vmem:[%s5967_s17 + $0x68] sm:$0xff]  ;;  %v283_v17 = vmul.f32 %v273_v11, %v265_v13  ;;  %v270_v22 = vld [vmem:[%s5967_s17 + $0x70] sm:$0xff]  ;;  %v284_v25 = vmul.f32 %v272_v1, %v266_v21 }
  0x1d   : > { %4997 = vmatmul.msk.f32.vlgmr.msra.gmra.mxu1 %vm291_vm1, %v278_v6  ;;  %v286_v9 = vmul.f32 %v272_v1, %v268_v8  ;;  %v287_v18 = vmul.f32 %v273_v11, %v269_v14  ;;  %v288_v26 = vmul.f32 %v272_v1, %v270_v22  ;;  %v259_v27 = vld [vmem:[%s5967_s17 + $0x18] sm:$0xff] }
  0x1e   : > { %5001 = vmatmul.msk.f32.vlgmr.msra.gmra.mxu2 %vm291_vm1, %v282_v7  ;;  %v263_v28 = vld [vmem:[%s5967_s17 + $0x38] sm:$0xff]  ;;  %v277_v31 = vmul.f32 %v273_v11, %v259_v27 }
  0x1f   : > { %5005 = vmatmul.msk.f32.vlgmr.msra.gmra.mxu3 %vm291_vm1, %v286_v9  ;;  %v267_v29 = vld [vmem:[%s5967_s17 + $0x58] sm:$0xff]  ;;  %v281_v32 = vmul.f32 %v273_v11, %v263_v28 }
  0x20   : > { %v271_v30 = vld [vmem:[%s5967_s17 + $0x78] sm:$0xff]  ;;  %v285_v33 = vmul.f32 %v273_v11, %v267_v29  ;;  %s5867_s17 = smov 114  }
  0x21   : > { %v289_v34 = vmul.f32 %v273_v11, %v271_v30 }
  0x24   : > { %4994 = vmatmul.msk.f32.gmra.mxu0 %vm291_vm1, %v275_v15 }
  0x25   : > { %4998 = vmatmul.msk.f32.gmra.mxu1 %vm291_vm1, %v279_v16 }
  0x26   : > { %5002 = vmatmul.msk.f32.gmra.mxu2 %vm291_vm1, %v283_v17 }
  0x27   : > { %5006 = vmatmul.msk.f32.gmra.mxu3 %vm291_vm1, %v287_v18 }
  0x2c   : > { %4995 = vmatmul.msk.f32.gmra.mxu0 %vm291_vm1, %v276_v23 }
  0x2d   : > { %4999 = vmatmul.msk.f32.gmra.mxu1 %vm291_vm1, %v280_v24 }
  0x2e   : > { %5003 = vmatmul.msk.f32.gmra.mxu2 %vm291_vm1, %v284_v25 }
  0x2f   : > { %5007 = vmatmul.msk.f32.gmra.mxu3 %vm291_vm1, %v288_v26 }
  0x34   : > { %4996 = vmatmul.msk.f32.gmra.mxu0 %vm291_vm1, %v277_v31 }
  0x35   : > { %5000 = vmatmul.msk.f32.gmra.mxu1 %vm291_vm1, %v281_v32 }
  0x36   : > { %5004 = vmatmul.msk.f32.gmra.mxu2 %vm291_vm1, %v285_v33 }
  0x37   : > { %5008 = vmatmul.msk.f32.gmra.mxu3 %vm291_vm1, %v289_v34 }
  0x99   : > { %v361_v36 = vpop.f32.mrf.mxu0 }
  0x9a   : > { %v373_v37 = vpop.f32.mrf.mxu1  ;;  %v6010_v38 = vadd.f32 %v6007_v35, %v361_v36 }
  0x9b   : > { %v6013_v39 = vadd.f32 %v6007_v35, %v373_v37 }
  0x9c   : > { %429 = vrot.lane.b32.xlu0 %v6010_v38, %s5859_s28 }
  0x9d   : > { %504 = vrot.lane.b32.xlu1 %v6013_v39, %s5859_s28 }
  0xa1   : > { %v385_v40 = vpop.f32.mrf.mxu2  ;;  %v364_v43 = vpop.f32.mrf.mxu0 }
  0xa2   : > { %v6020_v41 = vadd.f32 %v6007_v35, %v385_v40  ;;  %v397_v42 = vpop.f32.mrf.mxu3  ;;  %v6031_v45 = vadd.f32 %v410_v44, %v364_v43  ;;  %v376_v48 = vpop.f32.mrf.mxu1 }
  0xa3   : > { %v6048_v50 = vadd.f32 %v6007_v35, %v397_v42  ;;  %v6061_v55 = vadd.f32 %v410_v44, %v376_v48 }
  0xa4   : > { %8799 = vst [vmem:[#allocation5_spill] sm:$0xff] %v6020_v41  ;;  %1549 = vrot.lane.b32.xlu2 %v6020_v41, %s5860_s29  ;;  %1467 = vrot.lane.b32.xlu0 %v6013_v39, %s5861_s9  ;;  %v6065_v56 = vpack.i.bf16 %v6010_v38, %v6031_v45 }
  0xa5   : > { %1393 = vrot.lane.b32.xlu1 %v6010_v38, %s5860_s29  ;;  %v6077_v59 = vpack.i.bf16 %v6013_v39, %v6061_v55 }
  0xa9   : > { %v367_v49 = vpop.f32.mrf.mxu0  ;;  %v388_v60 = vpop.f32.mrf.mxu2 }
  0xaa   : > { %v400_v46 = vpop.f32.mrf.mxu3  ;;  %v6051_v51 = vadd.f32 %v6007_v35, %v367_v49  ;;  %v379_v52 = vpop.f32.mrf.mxu1  ;;  %v6089_v62 = vadd.f32 %v410_v44, %v388_v60 }
  0xab   : > { %v6039_v47 = vadd.f32 %v410_v44, %v400_v46  ;;  %v6120_v5 = vadd.f32 %v6007_v35, %v379_v52 }
  0xac   : > { %1395 = vrot.lane.b32.xlu2 %v6031_v45, %s5860_s29  ;;  %578 = vrot.lane.b32.xlu0 %v6020_v41, %s5859_s28  ;;  %v6093_v63 = vpack.i.bf16 %v6020_v41, %v6089_v62  ;;  %v5333_v20 = vpack.i.bf16 %v6089_v62, %v6013_v39  ;;  %v6274_v48 = vpack.i.bf16 %v6020_v41, %v6051_v51 }
  0xad   : > { %1389 = vrot.lane.b32.xlu1 %v6010_v38, %s5861_s9  ;;  %v6109_v1 = vpack.i.bf16 %v6048_v50, %v6039_v47 }
  0xae   : > { %8801 = vst [vmem:[#allocation7_spill] sm:$0xff] %v6093_v63 }
  0xaf   : > { %8802 = vst [vmem:[#allocation8_spill] sm:$0xff] %v6109_v1 }
  0xb1   : > { %v370_v53 = vpop.f32.mrf.mxu0  ;;  %v391_v0 = vpop.f32.mrf.mxu2 }
  0xb2   : > { %v6059_v54 = vadd.f32 %v410_v44, %v370_v53  ;;  %v382_v57 = vpop.f32.mrf.mxu1  ;;  %v403_v2 = vpop.f32.mrf.mxu3  ;;  %v6123_v6 = vadd.f32 %v6007_v35, %v391_v0 }
  0xb3   : > { %v6073_v58 = vadd.f32 %v410_v44, %v382_v57  ;;  %v6134_v9 = vadd.f32 %v6007_v35, %v403_v2 }
  0xb4   : > { %654 = vrot.lane.b32.xlu2 %v6039_v47, %s5859_s28  ;;  %1545 = vrot.lane.b32.xlu0 %v6020_v41, %s5861_s9  ;;  %v6087_v61 = vpack.i.bf16 %v6051_v51, %v6059_v54  ;;  %v5353_v29 = vpack.i.bf16 %v6123_v6, %v6048_v50  ;;  %v5328_v36 = vpack.i.bf16 %v6059_v54, %v6061_v55 }
  0xb5   : > { %1471 = vrot.lane.b32.xlu1 %v6013_v39, %s5860_s29  ;;  %v6144_v10 = vpack.i.bf16 %v6120_v5, %v6073_v58  ;;  %v6204_v25 = vpack.i.bf16 %v6039_v47, %v6073_v58 }
  0xb6   : > { %8800 = vst [vmem:[#allocation6_spill] sm:$0xff] %v6087_v61 }
  0xb7   : > { %8803 = vst [vmem:[#allocation9_spill] sm:$0xff] %v6144_v10 }
  0xb9   : > { %v394_v3 = vpop.f32.mrf.mxu2 }
  0xba   : > { %v6117_v4 = vadd.f32 %v410_v44, %v394_v3  ;;  %v406_v7 = vpop.f32.mrf.mxu3 }
  0xbb   : > { %v6131_v8 = vadd.f32 %v410_v44, %v406_v7 }
  0xbc   : > { %1432 = vrot.lane.b32.xlu2 %v6051_v51, %s5860_s29  ;;  %431 = vrot.lane.b32.xlu0 %v6031_v45, %s5859_s28  ;;  %v6172_v16 = vpack.i.bf16 %v6123_v6, %v6117_v4  ;;  %v5348_v57 = vpack.i.bf16 %v6117_v4, %v6120_v5 }
  0xbd   : > { %652 = vrot.lane.b32.xlu1 %v6048_v50, %s5859_s28  ;;  %v6190_v21 = vpack.i.bf16 %v6134_v9, %v6131_v8 }
  0xc4   : > { %469 = vrot.lane.b32.xlu2 %v6059_v54, %s5859_s28  ;;  %5284 = vrot.lane.b32.xlu0 %v6065_v56, %s5862_s12 }
  0xc5   : > { %506 = vrot.lane.b32.xlu1 %v6061_v55, %s5859_s28 }
  0xcc   : > { %543 = vrot.lane.b32.xlu2 %v6073_v58, %s5859_s28  ;;  %1473 = vrot.lane.b32.xlu0 %v6061_v55, %s5860_s29 }
  0xcd   : > { %5289 = vrot.lane.b32.xlu1 %v6077_v59, %s5862_s12 }
  0xd4   : > { %5309 = vrot.lane.b32.xlu2 %v6087_v61, %s5862_s12  ;;  %5299 = vrot.lane.b32.xlu0 %v6093_v63, %s5862_s12 }
  0xd5   : > { %1391 = vrot.lane.b32.xlu1 %v6031_v45, %s5861_s9 }
  0xdc   : > { %1547 = vrot.lane.b32.xlu2 %v6089_v62, %s5861_s9  ;;  %1551 = vrot.lane.b32.xlu0 %v6089_v62, %s5860_s29 }
  0xdd   : > { %580 = vrot.lane.b32.xlu1 %v6089_v62, %s5859_s28 }
  0xe4   : > { %1623 = vrot.lane.b32.xlu2 %v6048_v50, %s5861_s9  ;;  %467 = vrot.lane.b32.xlu0 %v6051_v51, %s5859_s28 }
  0xe5   : > { %5294 = vrot.lane.b32.xlu1 %v6109_v1, %s5862_s12 }
  0xec   : > { %617 = vrot.lane.b32.xlu2 %v6117_v4, %s5859_s28  ;;  %615 = vrot.lane.b32.xlu0 %v6123_v6, %s5859_s28 }
  0xed   : > { %541 = vrot.lane.b32.xlu1 %v6120_v5, %s5859_s28 }
  0xf4   : > { %691 = vrot.lane.b32.xlu2 %v6131_v8, %s5859_s28  ;;  %689 = vrot.lane.b32.xlu0 %v6134_v9, %s5859_s28  ;;  %s5872_s28 = smov 24  }
  0xf5   : > { %1428 = vrot.lane.b32.xlu1 %v6051_v51, %s5861_s9 }
  0xfc   : > { %1584 = vrot.lane.b32.xlu2 %v6123_v6, %s5861_s9  ;;  %5304 = vrot.lane.b32.xlu0 %v6144_v10, %s5862_s12 }
  0xfd   : > { %1510 = vrot.lane.b32.xlu1 %v6120_v5, %s5860_s29 }
  0xfe   : > { %v6152_v11 = vpop.permute.xlu2 %1549 }
 0x104   : > { %1666 = vrot.lane.b32.xlu2 %v6134_v9, %s5860_s29  ;;  %1629 = vrot.lane.b32.xlu0 %v6039_v47, %s5860_s29 }
 0x105   : > { %1506 = vrot.lane.b32.xlu1 %v6120_v5, %s5861_s9 }
 0x106   : > { %v6160_v12 = vpop.permute.xlu2 %1395 }
 0x10c   : > { %5324 = vrot.lane.b32.xlu2 %v6065_v56, %s5863_s13  ;;  %1469 = vrot.lane.b32.xlu0 %v6061_v55, %s5861_s9 }
 0x10d   : > { %1434 = vrot.lane.b32.xlu1 %v6059_v54, %s5860_s29 }
 0x10e   : > { %v6168_v13 = vpop.permute.xlu2 %654  ;;  %v430_v15 = vpop.permute.xlu0 %429 }
 0x10f   : > { %v505_v14 = vpop.permute.xlu1 %504 }
 0x114   : > { %1664 = vrot.lane.b32.xlu2 %v6131_v8, %s5861_s9  ;;  %5314 = vrot.lane.b32.xlu0 %v6172_v16, %s5862_s12 }
 0x115   : > { %1512 = vrot.lane.b32.xlu1 %v6073_v58, %s5860_s29 }
 0x116   : > { %v6180_v17 = vpop.permute.xlu2 %1432  ;;  %v6184_v19 = vpop.permute.xlu0 %1467 }
 0x117   : > { %v6182_v18 = vpop.permute.xlu1 %1393  ;;  %8804 = vst [vmem:[#allocation10_spill] sm:$0xff] %v6184_v19 }
 0x11c   : > { %5334 = vrot.lane.b32.xlu2 %v5333_v20, %s5863_s13  ;;  %5319 = vrot.lane.b32.xlu0 %v6190_v21, %s5862_s12 }
 0x11d   : > { %1430 = vrot.lane.b32.xlu1 %v6059_v54, %s5861_s9 }
 0x11e   : > { %v470_v22 = vpop.permute.xlu2 %469  ;;  %v6199_v24 = vpop.permute.xlu0 %578 }
 0x11f   : > { %v6197_v23 = vpop.permute.xlu1 %1389  ;;  %5013 = vmatpush.xpose.msk.msrb.mxu2 %vm433_vm2, %v470_v22 }
 0x124   : > { %5344 = vrot.lane.b32.xlu2 %v6204_v25, %s5863_s13  ;;  %1588 = vrot.lane.b32.xlu0 %v6123_v6, %s5860_s29 }
 0x125   : > { %1508 = vrot.lane.b32.xlu1 %v6073_v58, %s5861_s9 }
 0x126   : > { %v544_v26 = vpop.permute.xlu2 %543  ;;  %v6214_v28 = vpop.permute.xlu0 %1545 }
 0x127   : > { %v6212_v27 = vpop.permute.xlu1 %1471  ;;  %8805 = vst [vmem:[#allocation11_spill] sm:$0xff] %v6214_v28 }
 0x12c   : > { %5354 = vrot.lane.b32.xlu2 %v5353_v29, %s5863_s13  ;;  %1668 = vrot.lane.b32.xlu0 %v6131_v8, %s5860_s29 }
 0x12d   : > { %1627 = vrot.lane.b32.xlu1 %v6048_v50, %s5860_s29 }
 0x12e   : > { %v6223_v30 = vpop.permute.xlu2 %5309  ;;  %v432_v32 = vpop.permute.xlu0 %431 }
 0x12f   : > { %v6225_v31 = vpop.permute.xlu1 %652  ;;  %5009 = vmatpush.xpose.msk.msrb.mxu1 %vm433_vm2, %v432_v32  ;;  %v5311_v22 = vunpack.i.l.bf16 %v6223_v30 }
 0x133   : > { %5010 = vmatpush.xpose.msk.msrb.mxu1 %vm433_vm2, %v430_v15 }
 0x134   : > { %2365 = vrot.lane.b32.xlu2 %v6010_v38, %s5864_s14  ;;  %1662 = vrot.lane.b32.xlu0 %v6134_v9, %s5861_s9 }
 0x135   : > { %1590 = vrot.lane.b32.xlu1 %v6117_v4, %s5860_s29 }
 0x136   : > { %v6235_v33 = vpop.permute.xlu2 %1547  ;;  %5011 = vmatmul.msk.f32.vlgmr.msrb.gmra.mxu1 %vm433_vm2, %v6010_v38  ;;  %v5285_v35 = vpop.permute.xlu0 %5284 }
 0x137   : > { %8806 = vst [vmem:[#allocation12_spill] sm:$0xff] %v6235_v33  ;;  %5021 = vmatpush.xpose.msk.msra.mxu1 %vm433_vm2, %v544_v26  ;;  %v507_v34 = vpop.permute.xlu1 %506  ;;  %v5286_v7 = vunpack.i.l.bf16 %v5285_v35  ;;  %v5287_v20 = vunpack.i.h.bf16 %v5285_v35 }
 0x138   : > { %5017 = vmatpush.xpose.msk.msrb.mxu3 %vm433_vm2, %v507_v34 }
 0x13c   : > { %2449 = vrot.lane.b32.xlu2 %v6061_v55, %s5865_s15  ;;  %5018 = vmatpush.xpose.msk.msrb.mxu3 %vm433_vm2, %v505_v14 }
 0x13d   : > { %5329 = vrot.lane.b32.xlu0 %v5328_v36, %s5863_s13  ;;  %1625 = vrot.lane.b32.xlu1 %v6039_v47, %s5861_s9 }
 0x13e   : > { %v6249_v37 = vpop.permute.xlu2 %1623  ;;  %5012 = vmatmul.msk.f32.gmra.mxu1 %vm433_vm2, %v6031_v45  ;;  %v6257_v42 = vpop.permute.xlu0 %1473 }
 0x13f   : > { %8807 = vst [vmem:[#allocation13_spill] sm:$0xff] %v6249_v37  ;;  %5019 = vmatmul.msk.f32.vlgmr.msrb.gmra.mxu3 %vm433_vm2, %v6013_v39  ;;  %v6253_v40 = vpop.permute.xlu1 %5289 }
 0x140   : > { %v5291_v35 = vunpack.i.l.bf16 %v6253_v40 }
 0x144   : > { %2410 = vrot.lane.b32.xlu2 %v6059_v54, %s5865_s15 }
 0x145   : > { %2371 = vrot.lane.b32.xlu0 %v6031_v45, %s5865_s15  ;;  %1586 = vrot.lane.b32.xlu1 %v6117_v4, %s5861_s9 }
 0x146   : > { %v618_v43 = vpop.permute.xlu2 %617  ;;  %v6269_v46 = vpop.permute.xlu0 %5299 }
 0x147   : > { %5020 = vmatmul.msk.f32.gmra.mxu3 %vm433_vm2, %v6061_v55  ;;  %v6267_v44 = vpop.permute.xlu1 %1391 }
 0x148   : > { %5029 = vmatpush.xpose.msk.msra.mxu3 %vm433_vm2, %v618_v43 }
 0x14c   : > { %2527 = vrot.lane.b32.xlu2 %v6089_v62, %s5865_s15 }
 0x14d   : > { %2367 = vrot.lane.b32.xlu0 %v6031_v45, %s5864_s14  ;;  %5339 = vrot.lane.b32.xlu1 %v6274_v48, %s5863_s13 }
 0x14e   : > { %v692_v49 = vpop.permute.xlu2 %691  ;;  %v6282_v53 = vpop.permute.xlu0 %1551 }
 0x14f   : > { %v581_v52 = vpop.permute.xlu1 %580 }
 0x154   : > { %5359 = vrot.lane.b32.xlu2 %v6190_v21, %s5863_s13 }
 0x155   : > { %5349 = vrot.lane.b32.xlu1 %v5348_v57, %s5863_s13 }
 0x156   : > { %v6289_v60 = vpop.permute.xlu2 %1584  ;;  %v468_v2 = vpop.permute.xlu0 %467 }
 0x157   : > { %8808 = vst [vmem:[#allocation14_spill] sm:$0xff] %v6289_v60  ;;  %v6291_v0 = vpop.permute.xlu1 %5294  ;;  %5014 = vmatpush.xpose.msk.msrb.mxu2 %vm433_vm2, %v468_v2 }
 0x15a   : > { %5015 = vmatmul.msk.f32.vlgmr.msrb.gmra.mxu2 %vm433_vm2, %v6051_v51 }
 0x15b   : > { %5025 = vmatpush.xpose.msk.msra.mxu2 %vm433_vm2, %v581_v52  ;;  %v5301_v52 = vunpack.i.l.bf16 %v6269_v46 }
 0x15c   : > { %2447 = vrot.lane.b32.xlu2 %v6013_v39, %s5865_s15 }
 0x15d   : > { %2369 = vrot.lane.b32.xlu1 %v6010_v38, %s5865_s15 }
 0x15e   : > { %v6303_v3 = vpop.permute.xlu2 %1666  ;;  %v616_v15 = vpop.permute.xlu0 %615 }
 0x15f   : > { %5026 = vmatpush.xpose.msk.msra.mxu2 %vm433_vm2, %v6199_v24  ;;  %v542_v14 = vpop.permute.xlu1 %541  ;;  %5030 = vmatpush.xpose.msk.msra.mxu3 %vm433_vm2, %v616_v15  ;;  %v5312_v24 = vunpack.i.h.bf16 %v6223_v30  ;;  %v5292_v30 = vunpack.i.h.bf16 %v6253_v40  ;;  %v5302_v40 = vunpack.i.h.bf16 %v6269_v46 }
 0x160   : > { %5022 = vmatpush.xpose.msk.msra.mxu1 %vm433_vm2, %v542_v14 }
 0x162   : > { %5016 = vmatmul.msk.f32.gmra.mxu2 %vm433_vm2, %v6059_v54  ;;  %5031 = vmatmul.msk.f32.vlgmr.msra.gmra.mxu3 %vm433_vm2, %v6123_v6 }
 0x163   : > { %5037 = vmatpush.xpose.msk.msrb.mxu2 %vm433_vm2, %v692_v49  ;;  %847 = vmatpush.msrb.mxu3 %v5286_v7 }
 0x164   : > { %5033 = vmatpush.xpose.msk.msrb.mxu1 %vm433_vm2, %v6168_v13  ;;  %2408 = vrot.lane.b32.xlu2 %v6051_v51, %s5865_s15 }
 0x165   : > { %5023 = vmatmul.msk.f32.vlgmr.msra.gmra.mxu1 %vm433_vm2, %v6120_v5  ;;  %848 = vmatpush.msrb.mxu3 %v5287_v20 }
 0x166   : > { %2525 = vrot.lane.b32.xlu1 %v6020_v41, %s5865_s15  ;;  %v5325_v13 = vpop.permute.xlu2 %5324  ;;  %v690_v29 = vpop.permute.xlu0 %689 }
 0x167   : > { %v6324_v26 = vpop.permute.xlu1 %1428  ;;  %v5326_v32 = vunpack.i.l.bf16 %v5325_v13  ;;  %5038 = vmatpush.xpose.msk.msrb.mxu2 %vm433_vm2, %v690_v29  ;;  %v5327_v34 = vunpack.i.h.bf16 %v5325_v13 }
 0x168   : > { %5034 = vmatpush.xpose.msk.msrb.mxu1 %vm433_vm2, %v6225_v31 }
 0x169   : > { %1823 = vmatpush.msrb.mxu0 %v5326_v32 }
 0x16a   : > { %5027 = vmatmul.msk.f32.vlgmr.msra.gmra.mxu2 %vm433_vm2, %v6020_v41  ;;  %5032 = vmatmul.msk.f32.gmra.mxu3 %vm433_vm2, %v6117_v4 }
 0x16b   : > { %1824 = vmatpush.msrb.mxu0 %v5327_v34  ;;  %917 = vmatpush.msra.mxu2 %v5291_v35 }
 0x16c   : > { %882 = vmatpush.msra.mxu1 %v5311_v22  ;;  %2443 = vrot.lane.b32.xlu2 %v6013_v39, %s5864_s14 }
 0x16d   : > { %5024 = vmatmul.msk.f32.gmra.mxu1 %vm433_vm2, %v6073_v58  ;;  %918 = vmatpush.msra.mxu2 %v5292_v30 }
 0x16e   : > { %883 = vmatpush.msra.mxu1 %v5312_v24  ;;  %v6337_v31 = vpop.permute.xlu2 %1664  ;;  %v5305_v43 = vpop.permute.xlu0 %5304 }
 0x16f   : > { %8809 = vst [vmem:[#allocation15_spill] sm:$0xff] %v6337_v31  ;;  %v6339_v36 = vpop.permute.xlu1 %1510  ;;  %v5306_v49 = vunpack.i.l.bf16 %v5305_v43  ;;  %v5307_v57 = vunpack.i.h.bf16 %v5305_v43 }
 0x171   : > { %952 = vmatpush.msra.mxu3 %v5306_v49 }
 0x172   : > { %5028 = vmatmul.msk.f32.gmra.mxu2 %vm433_vm2, %v6089_v62 }
 0x173   : > { %953 = vmatpush.msra.mxu3 %v5307_v57 }
 0x174   : > { %2404 = vrot.lane.b32.xlu2 %v6051_v51, %s5864_s14 }
 0x175   : > { %5035 = vmatmul.msk.f32.vlgmr.msrb.gmra.mxu1 %vm433_vm2, %v6048_v50 }
 0x176   : > { %987 = vmatpush.msrb.mxu1 %v5301_v52  ;;  %v6349_v2 = vpop.permute.xlu2 %5334  ;;  %v6354_v15 = vpop.permute.xlu0 %1629 }
 0x177   : > { %8810 = vst [vmem:[#allocation16_spill] sm:$0xff] %v6349_v2  ;;  %v5337_v7 = vunpack.i.h.bf16 %v6349_v2  ;;  %v6352_v14 = vpop.permute.xlu1 %1506 }
 0x178   : > { %988 = vmatpush.msrb.mxu1 %v5302_v40  ;;  %8811 = vst [vmem:[#allocation17_spill] sm:$0xff] %v6352_v14 }
 0x179   : > { %1963 = vmatpush.msra.mxu0 %v5337_v7 }
 0x17a   : > { %5039 = vmatmul.msk.f32.vlgmr.msrb.gmra.mxu2 %vm433_vm2, %v6134_v9 }
 0x17d   : > { %5036 = vmatmul.msk.f32.gmra.mxu1 %vm433_vm2, %v6039_v47 }
 0x17e   : > { %v6360_v20 = vpop.permute.xlu0 %1469 }
 0x17f   : > { %8812 = vst [vmem:[#allocation18_spill] sm:$0xff] %v6360_v20  ;;  %v6362_v46 = vpop.permute.xlu1 %1434 }
 0x182   : > { %5040 = vmatmul.msk.f32.gmra.mxu2 %vm433_vm2, %v6131_v8 }
 0x186   : > { %v5315_v22 = vpop.permute.xlu0 %5314 }
 0x187   : > { %v6366_v13 = vpop.permute.xlu1 %1512  ;;  %v5316_v24 = vunpack.i.l.bf16 %v5315_v22  ;;  %v5317_v29 = vunpack.i.h.bf16 %v5315_v22 }
 0x189   : > { %1022 = vmatpush.msrb.mxu2 %v5316_v24 }
 0x18b   : > { %1023 = vmatpush.msrb.mxu2 %v5317_v29 }
 0x18f   : > { %v6368_v32 = vpop.permute.xlu1 %1430 }
 0x190   : > { %8813 = vst [vmem:[#allocation19_spill] sm:$0xff] %v6368_v32 }
 0x197   : > { %v6370_v34 = vpop.permute.xlu1 %1508 }
 0x198   : > { %8814 = vst [vmem:[#allocation20_spill] sm:$0xff] %v6370_v34 }
 0x19f   : > { %v6372_v35 = vpop.permute.xlu1 %1627 }
 0x1a7   : > { %v6374_v30 = vpop.permute.xlu1 %1590 }
 0x1a8   : > { %8815 = vst [vmem:[#allocation21_spill] sm:$0xff] %v6374_v30 }
 0x1af   : > { %v6376_v43 = vpop.permute.xlu1 %1625 }
 0x1b0   : > { %8816 = vst [vmem:[#allocation22_spill] sm:$0xff] %v6376_v43 }
 0x1b3   : > { %v6378_v49 = vpop.f32.mrf.mxu1 }
 0x1b4   : > { %v725_v52 = vsel %vm724_vm3, %v6378_v49, -inf }
 0x1b5   : > { %726 = vmax.xlane.f32.xlu1 %v725_v52  ;;  %v6395_v52 = vpop.permute.xlu2 %5344 }
 0x1b6   : > { %8819 = vst [vmem:[#allocation25_spill] sm:$0xff] %v6395_v52 }
 0x1b7   : > { %v6382_v57 = vpop.permute.xlu1 %1586 }
 0x1b8   : > { %8817 = vst [vmem:[#allocation23_spill] sm:$0xff] %v6382_v57 }
 0x1bb   : > { %v6384_v40 = vpop.f32.mrf.mxu1 }
 0x1bc   : > { %v728_v7 = vsel %vm724_vm3, %v6384_v40, -inf }
 0x1bd   : > { %729 = vmax.xlane.f32.xlu2 %v728_v7  ;;  %v6401_v7 = vpop.permute.xlu2 %5354 }
 0x1be   : > { %8820 = vst [vmem:[#allocation26_spill] sm:$0xff] %v6401_v7 }
 0x1bf   : > { %v6388_v22 = vpop.permute.xlu1 %5339 }
 0x1c0   : > { %8818 = vst [vmem:[#allocation24_spill] sm:$0xff] %v6388_v22  ;;  %v5342_v24 = vunpack.i.h.bf16 %v6388_v22 }
 0x1c2   : > { %v6391_v29 = vpop.f32.mrf.mxu3  ;;  %1964 = vmatpush.msra.mxu0 %v5342_v24 }
 0x1c3   : > { %v737_v63 = vsel %vm724_vm3, %v6391_v29, -inf }
 0x1c4   : > { %738 = vmax.xlane.f32.xlu0 %v737_v63 }
 0x1c5   : > { %v6403_v1 = vpop.permute.xlu2 %2365 }
 0x1c6   : > { %8821 = vst [vmem:[#allocation27_spill] sm:$0xff] %v6403_v1 }
 0x1ca   : > { %v6397_v10 = vpop.f32.mrf.mxu3 }
 0x1cb   : > { %v740_v61 = vsel %vm724_vm3, %v6397_v10, -inf }
 0x1cc   : > { %741 = vmax.xlane.f32.xlu2 %v740_v61 }
 0x1cd   : > { %v6413_v31 = vpop.permute.xlu2 %2449 }
 0x1ce   : > { %8822 = vst [vmem:[#allocation28_spill] sm:$0xff] %v6413_v31 }
 0x1d5   : > { %v6425_v22 = vpop.permute.xlu2 %2410 }
 0x1d6   : > { %8823 = vst [vmem:[#allocation29_spill] sm:$0xff] %v6425_v22 }
 0x1dd   : > { %v6405_v57 = vpop.f32.mrf.mxu2  ;;  %v6441_v22 = vpop.permute.xlu2 %2527 }
 0x1de   : > { %v731_v24 = vsel %vm724_vm3, %v6405_v57, -inf  ;;  %8824 = vst [vmem:[#allocation30_spill] sm:$0xff] %v6441_v22 }
 0x1df   : > { %732 = vmax.xlane.f32.xlu1 %v731_v24 }
 0x1e2   : > { %v6409_v60 = vpop.f32.mrf.mxu1 }
 0x1e3   : > { %v743_v63 = vsel %vm724_vm3, %v6409_v60, -inf }
 0x1e4   : > { %744 = vmax.xlane.f32.xlu2 %v743_v63 }
 0x1e5   : > { %v6415_v20 = vpop.f32.mrf.mxu2  ;;  %v6417_v61 = vpop.f32.mrf.mxu3 }
 0x1e6   : > { %v755_v1 = vsel %vm724_vm3, %v6417_v61, -inf  ;;  %v734_v7 = vsel %vm724_vm3, %v6415_v20, -inf }
 0x1e7   : > { %756 = vmax.xlane.f32.xlu1 %v755_v1 }
 0x1ea   : > { %v6419_v43 = vpop.f32.mrf.mxu1 }
 0x1eb   : > { %v746_v24 = vsel %vm724_vm3, %v6419_v43, -inf }
 0x1ec   : > { %747 = vmax.xlane.f32.xlu2 %v746_v24  ;;  %v6439_v24 = vpop.permute.xlu0 %5319 }
 0x1ed   : > { %v6427_v19 = vpop.f32.mrf.mxu2  ;;  %v6429_v63 = vpop.f32.mrf.mxu3 }
 0x1ee   : > { %v758_v33 = vsel %vm724_vm3, %v6429_v63, -inf  ;;  %v749_v34 = vsel %vm724_vm3, %v6427_v19, -inf }
 0x1ef   : > { %759 = vmax.xlane.f32.xlu1 %v758_v33 }
 0x1f2   : > { %v6431_v31 = vpop.f32.mrf.mxu1 }
 0x1f3   : > { %v761_v1 = vsel %vm724_vm3, %v6431_v31, -inf }
 0x1f4   : > { %735 = vmax.xlane.f32.xlu2 %v734_v7  ;;  %762 = vmax.xlane.f32.xlu0 %v761_v1  ;;  %v6451_v30 = vpop.permute.xlu0 %1588  ;;  %v6457_v1 = vpop.permute.xlu2 %5359 }
 0x1f5   : > { %v6443_v37 = vpop.f32.mrf.mxu2  ;;  %8825 = vst [vmem:[#allocation31_spill] sm:$0xff] %v6451_v30  ;;  %v6469_v30 = vpop.permute.xlu1 %5349 }
 0x1f6   : > { %8826 = vst [vmem:[#allocation32_spill] sm:$0xff] %v6457_v1  ;;  %v752_v22 = vsel %vm724_vm3, %v6443_v37, -inf }
 0x1f7   : > { %8828 = vst [vmem:[#allocation34_spill] sm:$0xff] %v6469_v30 }
 0x1fa   : > { %v6445_v28 = vpop.f32.mrf.mxu1 }
 0x1fb   : > { %v764_v52 = vsel %vm724_vm3, %v6445_v28, -inf }
 0x1fc   : > { %750 = vmax.xlane.f32.xlu2 %v749_v34  ;;  %765 = vmax.xlane.f32.xlu1 %v764_v52  ;;  %v6461_v32 = vpop.permute.xlu0 %1668  ;;  %v6467_v52 = vpop.permute.xlu2 %2447 }
 0x1fd   : > { %v6453_v33 = vpop.f32.mrf.mxu2  ;;  %8827 = vst [vmem:[#allocation33_spill] sm:$0xff] %v6467_v52 }
 0x1fe   : > { %v767_v7 = vsel %vm724_vm3, %v6453_v33, -inf }
 0x1ff   : > { %768 = vmax.xlane.f32.xlu0 %v767_v7 }
 0x204   : > { %753 = vmax.xlane.f32.xlu2 %v752_v22  ;;  %v6471_v14 = vpop.permute.xlu0 %1662  ;;  %v6475_v7 = vpop.permute.xlu2 %2408 }
 0x205   : > { %v6463_v2 = vpop.f32.mrf.mxu2  ;;  %8829 = vst [vmem:[#allocation35_spill] sm:$0xff] %v6471_v14  ;;  %v6479_v22 = vpop.permute.xlu1 %2369 }
 0x206   : > { %v770_v34 = vsel %vm724_vm3, %v6463_v2, -inf  ;;  %8830 = vst [vmem:[#allocation36_spill] sm:$0xff] %v6475_v7 }
 0x207   : > { %8831 = vst [vmem:[#allocation37_spill] sm:$0xff] %v6479_v22 }
 0x20c   : > { %771 = vmax.xlane.f32.xlu2 %v770_v34  ;;  %v6481_v1 = vpop.permute.xlu0 %5329  ;;  %v6487_v34 = vpop.permute.xlu2 %2443 }
 0x20d   : > { %8832 = vst [vmem:[#allocation38_spill] sm:$0xff] %v6487_v34  ;;  %v6489_v52 = vpop.permute.xlu1 %2525 }
 0x20e   : > { %8833 = vst [vmem:[#allocation39_spill] sm:$0xff] %v6489_v52 }
 0x213   : > { %2445 = vrot.lane.b32.xlu0 %v6061_v55, %s5864_s14 }
 0x214   : > { %v6495_v7 = vpop.permute.xlu0 %2371  ;;  %v6499_v22 = vpop.permute.xlu2 %2404 }
 0x215   : > { %2488 = vrot.lane.b32.xlu1 %v6073_v58, %s5865_s15  ;;  %8834 = vst [vmem:[#allocation40_spill] sm:$0xff] %v6495_v7 }
 0x216   : > { %8835 = vst [vmem:[#allocation41_spill] sm:$0xff] %v6499_v22 }
 0x21b   : > { %2486 = vrot.lane.b32.xlu0 %v6120_v5, %s5865_s15 }
 0x21c   : > { %v6508_v52 = vpop.permute.xlu0 %2367 }
 0x21d   : > { %2406 = vrot.lane.b32.xlu1 %v6059_v54, %s5864_s14 }
 0x223   : > { %2482 = vrot.lane.b32.xlu0 %v6120_v5, %s5864_s14 }
 0x224   : > { %2521 = vrot.lane.b32.xlu2 %v6020_v41, %s5864_s14 }
 0x225   : > { %2566 = vrot.lane.b32.xlu1 %v6117_v4, %s5865_s15 }
 0x228   : > { %v727_v14 = vpop.xlane.xlu1 %726 }
 0x229   : > { %v773_v30 = vsub.f32 %v6378_v49, %v727_v14  ;;  %v5296_v49 = vunpack.i.l.bf16 %v6291_v0 }
 0x22b   : > { %v789_v34 = vmul.f32 1.442695, %v773_v30  ;;  %2484 = vrot.lane.b32.xlu0 %v6073_v58, %s5864_s14 }
 0x22c   : > { %2605 = vrot.lane.b32.xlu2 %v6039_v47, %s5865_s15 }
 0x22d   : > { %2564 = vrot.lane.b32.xlu1 %v6123_v6, %s5865_s15  ;;  %5443 = vpow2.f32 %v789_v34  ;;  %v5297_v34 = vunpack.i.h.bf16 %v6291_v0 }
 0x230   : > { %v730_v7 = vpop.xlane.xlu2 %729 }
 0x231   : > { %v774_v41 = vsub.f32 %v6384_v40, %v730_v7 }
 0x233   : > { %v6515_v14 = vpop.eup %5443  ;;  %v791_v30 = vmul.f32 1.442695, %v774_v41  ;;  %2562 = vrot.lane.b32.xlu0 %v6117_v4, %s5864_s14 }
 0x234   : > { %2523 = vrot.lane.b32.xlu2 %v6089_v62, %s5864_s14  ;;  %5041 = vmatmul.msk.f32.vlgmr.msrb.gmra.mxu3 %vm724_vm3, %v6515_v14 }
 0x235   : > { %2560 = vrot.lane.b32.xlu1 %v6123_v6, %s5864_s14  ;;  %5445 = vpow2.f32 %v791_v30  ;;  %1057 = vmatpush.msrb.mxu3 %v5296_v49 }
 0x237   : > { %v739_v40 = vpop.xlane.xlu0 %738  ;;  %1058 = vmatpush.msrb.mxu3 %v5297_v34 }
 0x238   : > { %v777_v7 = vsub.f32 %v6391_v29, %v739_v40 }
 0x23a   : > { %v797_v22 = vmul.f32 1.442695, %v777_v7 }
 0x23b   : > { %v6528_v41 = vpop.eup %5445  ;;  %2640 = vrot.lane.b32.xlu0 %v6131_v8, %s5864_s14 }
 0x23c   : > { %2603 = vrot.lane.b32.xlu2 %v6048_v50, %s5865_s15  ;;  %5447 = vpow2.f32 %v797_v22  ;;  %5042 = vmatmul.msk.f32.gmra.mxu3 %vm724_vm3, %v6528_v41 }
 0x23d   : > { %2644 = vrot.lane.b32.xlu1 %v6131_v8, %s5865_s15 }
 0x23f   : > { %v742_v0 = vpop.xlane.xlu2 %741 }
 0x240   : > { %v778_v29 = vsub.f32 %v6397_v10, %v742_v0 }
 0x242   : > { %v6535_v49 = vpop.eup %5447  ;;  %v799_v30 = vmul.f32 1.442695, %v778_v29 }
 0x243   : > { %8836 = vst [vmem:[#allocation42_spill] sm:$0xff] %v6535_v49  ;;  %5045 = vmatmul.msk.f32.vlgmr.msra.gmra.mxu2 %vm724_vm3, %v6535_v49  ;;  %5364 = vrot.lane.b32.xlu0 %v6065_v56, %s5866_s16 }
 0x244   : > { %2599 = vrot.lane.b32.xlu2 %v6048_v50, %s5864_s14  ;;  %5449 = vpow2.f32 %v799_v30  ;;  %5057 = vmatpush.xpose.msk.msra.mxu2 %vm433_vm2, %v6160_v12  ;;  %v5368_v12 = vpack.i.bf16 %v6089_v62, %v6059_v54 }
 0x245   : > { %2638 = vrot.lane.b32.xlu1 %v6134_v9, %s5864_s14 }
 0x248   : > { %5058 = vmatpush.xpose.msk.msra.mxu2 %vm433_vm2, %v6182_v18 }
 0x24a   : > { %v6549_v10 = vpop.eup %5449 }
 0x24b   : > { %8837 = vst [vmem:[#allocation43_spill] sm:$0xff] %v6549_v10  ;;  %5046 = vmatmul.msk.f32.gmra.mxu2 %vm724_vm3, %v6549_v10  ;;  %5369 = vrot.lane.b32.xlu0 %v5368_v12, %s5866_s16 }
 0x24c   : > { %2601 = vrot.lane.b32.xlu2 %v6039_v47, %s5864_s14 }
 0x24d   : > { %5379 = vrot.lane.b32.xlu1 %v6077_v59, %s5866_s16 }
 0x252   : > { %v733_v18 = vpop.xlane.xlu1 %732 }
 0x253   : > { %v775_v22 = vsub.f32 %v6405_v57, %v733_v18  ;;  %3347 = vrot.lane.b32.xlu0 %v6031_v45, %s5867_s17 }
 0x254   : > { %2642 = vrot.lane.b32.xlu2 %v6134_v9, %s5865_s15 }
 0x255   : > { %3345 = vrot.lane.b32.xlu1 %v6010_v38, %s5867_s17  ;;  %v793_v40 = vmul.f32 1.442695, %v775_v22 }
 0x257   : > { %v745_v34 = vpop.xlane.xlu2 %744  ;;  %5451 = vpow2.f32 %v793_v40 }
 0x258   : > { %v779_v7 = vsub.f32 %v6409_v60, %v745_v34  ;;  %v5321_v60 = vunpack.i.l.bf16 %v6439_v24 }
 0x25a   : > { %v801_v0 = vmul.f32 1.442695, %v779_v7  ;;  %v757_v29 = vpop.xlane.xlu1 %756 }
 0x25b   : > { %v783_v57 = vsub.f32 %v6417_v61, %v757_v29  ;;  %3386 = vrot.lane.b32.xlu0 %v6059_v54, %s5867_s17 }
 0x25c   : > { %5453 = vpow2.f32 %v801_v0  ;;  %5374 = vrot.lane.b32.xlu2 %v6274_v48, %s5866_s16 }
 0x25d   : > { %3341 = vrot.lane.b32.xlu1 %v6010_v38, %s5868_s18  ;;  %v6575_v12 = vpop.eup %5451  ;;  %v809_v22 = vmul.f32 1.442695, %v783_v57  ;;  %v5322_v38 = vunpack.i.h.bf16 %v6439_v24 }
 0x25e   : > { %5043 = vmatmul.msk.f32.vlgmr.msra.gmra.mxu1 %vm724_vm3, %v6575_v12 }
 0x25f   : > { %v748_v30 = vpop.xlane.xlu2 %747  ;;  %1092 = vmatpush.msra.mxu1 %v5321_v60  ;;  %5455 = vpow2.f32 %v809_v22 }
 0x260   : > { %v780_v18 = vsub.f32 %v6419_v43, %v748_v30 }
 0x261   : > { %1093 = vmatpush.msra.mxu1 %v5322_v38 }
 0x262   : > { %v6581_v48 = vpop.eup %5453  ;;  %v803_v34 = vmul.f32 1.442695, %v780_v18  ;;  %v760_v43 = vpop.xlane.xlu1 %759 }
 0x263   : > { %8838 = vst [vmem:[#allocation44_spill] sm:$0xff] %v6581_v48  ;;  %5047 = vmatmul.msk.f32.vlgmr.msra.gmra.mxu3 %vm724_vm3, %v6581_v48  ;;  %3380 = vrot.lane.b32.xlu0 %v6051_v51, %s5868_s18  ;;  %v784_v24 = vsub.f32 %v6429_v63, %v760_v43 }
 0x264   : > { %5457 = vpow2.f32 %v803_v34  ;;  %5061 = vmatpush.xpose.msk.msra.mxu3 %vm433_vm2, %v6362_v46  ;;  %5384 = vrot.lane.b32.xlu2 %v6172_v16, %s5866_s16 }
 0x265   : > { %5389 = vrot.lane.b32.xlu1 %v6204_v25, %s5866_s16  ;;  %v6598_v46 = vpop.eup %5455  ;;  %v811_v25 = vmul.f32 1.442695, %v784_v24 }
 0x266   : > { %8839 = vst [vmem:[#allocation45_spill] sm:$0xff] %v6598_v46  ;;  %5051 = vmatmul.msk.f32.vlgmr.msrb.gmra.mxu2 %vm724_vm3, %v6598_v46 }
 0x267   : > { %v736_v61 = vpop.xlane.xlu2 %735  ;;  %v763_v40 = vpop.xlane.xlu0 %762  ;;  %5069 = vmatpush.xpose.msk.msrb.mxu2 %vm433_vm2, %v6366_v13  ;;  %5459 = vpow2.f32 %v811_v25  ;;  %v8860_v25 = vld [vmem:[#allocation26_spill] sm:$0xff] }
 0x268   : > { %5062 = vmatpush.xpose.msk.msra.mxu3 %vm433_vm2, %v6180_v17  ;;  %v776_v7 = vsub.f32 %v6415_v20, %v736_v61  ;;  %v785_v0 = vsub.f32 %v6431_v31, %v763_v40  ;;  %v5393_v17 = vpack.i.bf16 %v6048_v50, %v6120_v5  ;;  %v8858_v40 = vld [vmem:[#allocation5_spill] sm:$0xff] }
 0x26a   : > { %v6601_v29 = vpop.eup %5457  ;;  %v795_v57 = vmul.f32 1.442695, %v776_v7  ;;  %v813_v30 = vmul.f32 1.442695, %v785_v0  ;;  %v8859_v0 = vld [vmem:[#allocation13_spill] sm:$0xff] }
 0x26b   : > { %8840 = vst [vmem:[#allocation46_spill] sm:$0xff] %v6601_v29  ;;  %5048 = vmatmul.msk.f32.gmra.mxu3 %vm724_vm3, %v6601_v29  ;;  %5070 = vmatpush.xpose.msk.msrb.mxu2 %vm433_vm2, %v6339_v36 }
 0x26c   : > { %5461 = vpow2.f32 %v813_v30  ;;  %3425 = vrot.lane.b32.xlu2 %v6061_v55, %s5867_s17  ;;  %5399 = vrot.lane.b32.xlu0 %v6190_v21, %s5866_s16  ;;  %v5332_v30 = vunpack.i.h.bf16 %v6481_v1 }
 0x26d   : > { %5394 = vrot.lane.b32.xlu1 %v5393_v17, %s5866_s16  ;;  %5463 = vpow2.f32 %v795_v57  ;;  %v6620_v60 = vpop.eup %5459  ;;  %v5356_v57 = vunpack.i.l.bf16 %v8860_v25  ;;  %v8861_v17 = vld [vmem:[#allocation12_spill] sm:$0xff] }
 0x26e   : > { %8841 = vst [vmem:[#allocation47_spill] sm:$0xff] %v6620_v60  ;;  %5052 = vmatmul.msk.f32.gmra.mxu2 %vm724_vm3, %v6620_v60 }
 0x26f   : > { %v766_v31 = vpop.xlane.xlu1 %765  ;;  %v751_v20 = vpop.xlane.xlu2 %750 }
 0x270   : > { %v786_v13 = vsub.f32 %v6445_v28, %v766_v31  ;;  %v781_v63 = vsub.f32 %v6427_v19, %v751_v20  ;;  %v8862_v31 = vld [vmem:[#allocation10_spill] sm:$0xff]  ;;  %v8863_v20 = vld [vmem:[#allocation24_spill] sm:$0xff] }
 0x272   : > { %v815_v18 = vmul.f32 1.442695, %v786_v13  ;;  %v805_v22 = vmul.f32 1.442695, %v781_v63  ;;  %v6622_v38 = vpop.eup %5461  ;;  %v5341_v13 = vunpack.i.l.bf16 %v8863_v20  ;;  %v8864_v63 = vld [vmem:[#allocation32_spill] sm:$0xff] }
 0x273   : > { %8842 = vst [vmem:[#allocation48_spill] sm:$0xff] %v6622_v38  ;;  %v6626_v34 = vpop.eup %5463  ;;  %5053 = vmatmul.msk.f32.vlgmr.msrb.gmra.mxu3 %vm724_vm3, %v6622_v38 }
 0x274   : > { %8843 = vst [vmem:[#allocation49_spill] sm:$0xff] %v6626_v34  ;;  %5465 = vpow2.f32 %v815_v18  ;;  %5044 = vmatmul.msk.f32.gmra.mxu1 %vm724_vm3, %v6626_v34  ;;  %5073 = vmatpush.xpose.msk.msrb.mxu3 %vm433_vm2, %v6282_v53  ;;  %v769_v53 = vpop.xlane.xlu0 %768  ;;  %v8865_v18 = vld [vmem:[#allocation22_spill] sm:$0xff] }
 0x275   : > { %5467 = vpow2.f32 %v805_v22  ;;  %3423 = vrot.lane.b32.xlu2 %v6013_v39, %s5867_s17  ;;  %3343 = vrot.lane.b32.xlu1 %v6031_v45, %s5868_s18  ;;  %v8866_v22 = vld [vmem:[#allocation35_spill] sm:$0xff] }
 0x276   : > { %3419 = vrot.lane.b32.xlu0 %v6013_v39, %s5868_s18  ;;  %5059 = vmatmul.msk.f32.vlgmr.msra.gmra.mxu2 %vm433_vm2, %v6197_v23  ;;  %v787_v39 = vsub.f32 %v6453_v33, %v769_v53  ;;  %v8856_v33 = vld [vmem:[#allocation11_spill] sm:$0xff]  ;;  %v8869_v53 = vld [vmem:[#allocation14_spill] sm:$0xff] }
 0x277   : > { %v754_v19 = vpop.xlane.xlu2 %753  ;;  %5081 = vmatpush.xpose.msk.msra.mxu2 %vm433_vm2, %v6354_v15 }
 0x278   : > { %v782_v28 = vsub.f32 %v6443_v37, %v754_v19  ;;  %5074 = vmatpush.xpose.msk.msrb.mxu3 %vm433_vm2, %v6152_v11  ;;  %v817_v11 = vmul.f32 1.442695, %v787_v39  ;;  %v5362_v19 = vunpack.i.h.bf16 %v8864_v63  ;;  %v5357_v39 = vunpack.i.h.bf16 %v8860_v25 }
 0x27a   : > { %v6643_v36 = vpop.eup %5465  ;;  %v807_v43 = vmul.f32 1.442695, %v782_v28  ;;  %v8867_v28 = vld [vmem:[#allocation18_spill] sm:$0xff] }
 0x27b   : > { %8844 = vst [vmem:[#allocation50_spill] sm:$0xff] %v6643_v36  ;;  %v6645_v61 = vpop.eup %5467  ;;  %5054 = vmatmul.msk.f32.gmra.mxu3 %vm724_vm3, %v6643_v36  ;;  %5082 = vmatpush.xpose.msk.msra.mxu2 %vm433_vm2, %v6372_v35 }
 0x27c   : > { %8845 = vst [vmem:[#allocation51_spill] sm:$0xff] %v6645_v61  ;;  %5469 = vpow2.f32 %v807_v43  ;;  %5049 = vmatmul.msk.f32.vlgmr.msrb.gmra.mxu1 %vm724_vm3, %v6645_v61  ;;  %v8868_v43 = vld [vmem:[#allocation15_spill] sm:$0xff] }
 0x27d   : > { %5065 = vmatpush.xpose.msk.msrb.mxu1 %vm433_vm2, %v6257_v42  ;;  %3382 = vrot.lane.b32.xlu2 %v6059_v54, %s5868_s18  ;;  %5471 = vpow2.f32 %v817_v11  ;;  %v5331_v54 = vunpack.i.l.bf16 %v6481_v1  ;;  %v8849_v42 = vld [vmem:[#allocation16_spill] sm:$0xff]  ;;  %v5361_v1 = vunpack.i.l.bf16 %v8864_v63  ;;  %v8870_v11 = vld [vmem:[#allocation23_spill] sm:$0xff] }
 0x27e   : > { %3384 = vrot.lane.b32.xlu1 %v6051_v51, %s5867_s17  ;;  %3421 = vrot.lane.b32.xlu0 %v6061_v55, %s5868_s18 }
 0x27f   : > { %v772_v23 = vpop.xlane.xlu2 %771  ;;  %5060 = vmatmul.msk.f32.gmra.mxu2 %vm433_vm2, %v6267_v44  ;;  %v5336_v44 = vunpack.i.l.bf16 %v8849_v42 }
 0x280   : > { %v788_v51 = vsub.f32 %v6463_v2, %v772_v23  ;;  %v8853_v2 = vld [vmem:[#allocation25_spill] sm:$0xff] }
 0x281   : > { %5066 = vmatpush.xpose.msk.msrb.mxu1 %vm433_vm2, %v6212_v27  ;;  %v8847_v27 = vld [vmem:[#allocation17_spill] sm:$0xff]  ;;  %v5346_v15 = vunpack.i.l.bf16 %v8853_v2  ;;  %v5347_v7 = vunpack.i.h.bf16 %v8853_v2 }
 0x282   : > { %v6666_v45 = vpop.eup %5469  ;;  %v819_v55 = vmul.f32 1.442695, %v788_v51 }
 0x283   : > { %8846 = vst [vmem:[#allocation52_spill] sm:$0xff] %v6666_v45  ;;  %5063 = vmatmul.msk.f32.vlgmr.msra.gmra.mxu3 %vm433_vm2, %v6324_v26  ;;  %v6690_v37 = vpop.eup %5471  ;;  %v8850_v26 = vld [vmem:[#allocation19_spill] sm:$0xff] }
 0x284   : > { %5050 = vmatmul.msk.f32.gmra.mxu1 %vm724_vm3, %v6666_v45  ;;  %5085 = vmatpush.xpose.msk.msra.mxu3 %vm433_vm2, %v6461_v32  ;;  %8848 = vst [vmem:[#allocation17_spill] sm:$0xff] %v6690_v37  ;;  %5473 = vpow2.f32 %v819_v55  ;;  %v8854_v32 = vld [vmem:[#allocation20_spill] sm:$0xff] }
 0x285   : > { %3464 = vrot.lane.b32.xlu2 %v6073_v58, %s5867_s17  ;;  %v6751_v23 = vpop.permute.xlu0 %2445 }
 0x286   : > { %3458 = vrot.lane.b32.xlu1 %v6120_v5, %s5868_s18  ;;  %3462 = vrot.lane.b32.xlu0 %v6120_v5, %s5867_s17  ;;  %v8851_v5 = vld [vmem:[#allocation21_spill] sm:$0xff] }
 0x287   : > { %5071 = vmatmul.msk.f32.vlgmr.msrb.gmra.mxu2 %vm433_vm2, %v8847_v27  ;;  %v6757_v55 = vpop.permute.xlu1 %2488 }
 0x288   : > { %5086 = vmatpush.xpose.msk.msra.mxu3 %vm433_vm2, %v6303_v3  ;;  %1893 = vmatpush.msrb.mxu2 %v5331_v54  ;;  %v8852_v3 = vld [vmem:[#allocation31_spill] sm:$0xff] }
 0x28a   : > { %1894 = vmatpush.msrb.mxu2 %v5336_v44  ;;  %v6710_v35 = vpop.eup %5473 }
 0x28b   : > { %5064 = vmatmul.msk.f32.gmra.mxu3 %vm433_vm2, %v8850_v26  ;;  %8855 = vst [vmem:[#allocation16_spill] sm:$0xff] %v6710_v35 }
 0x28c   : > { %5055 = vmatmul.msk.f32.vlgmr.msra.gmra.mxu1 %vm724_vm3, %v6690_v37 }
 0x28d   : > { %5077 = vmatpush.xpose.msk.msra.mxu1 %vm433_vm2, %v8851_v5  ;;  %3460 = vrot.lane.b32.xlu2 %v6073_v58, %s5868_s18  ;;  %v8857_v58 = vld [vmem:[#allocation34_spill] sm:$0xff]  ;;  %v6753_v51 = vpop.permute.xlu0 %2486 }
 0x28e   : > { %3540 = vrot.lane.b32.xlu1 %v6123_v6, %s5867_s17  ;;  %3503 = vrot.lane.b32.xlu0 %v6089_v62, %s5867_s17  ;;  %v5351_v24 = vunpack.i.l.bf16 %v8857_v58 }
 0x28f   : > { %5072 = vmatmul.msk.f32.gmra.mxu2 %vm433_vm2, %v8854_v32  ;;  %v6765_v26 = vpop.permute.xlu1 %2406 }
 0x291   : > { %5078 = vmatpush.xpose.msk.msra.mxu1 %vm433_vm2, %v8852_v3  ;;  %v6769_v3 = vpop.permute.xlu2 %2521 }
 0x293   : > { %5075 = vmatmul.msk.f32.vlgmr.msrb.gmra.mxu3 %vm433_vm2, %v8856_v33 }
 0x294   : > { %5056 = vmatmul.msk.f32.gmra.mxu1 %vm724_vm3, %v6710_v35  ;;  %1928 = vmatpush.msrb.mxu3 %v5346_v15 }
 0x295   : > { %3501 = vrot.lane.b32.xlu2 %v8858_v40, %s5867_s17  ;;  %v6761_v42 = vpop.permute.xlu0 %2482 }
 0x296   : > { %1929 = vmatpush.msrb.mxu3 %v5351_v24  ;;  %3497 = vrot.lane.b32.xlu0 %v8858_v40, %s5868_s18 }
 0x297   : > { %5083 = vmatmul.msk.f32.vlgmr.msra.gmra.mxu2 %vm433_vm2, %v8859_v0  ;;  %v6775_v32 = vpop.permute.xlu1 %2566 }
 0x298   : > { %2033 = vmatpush.msra.mxu2 %v5347_v7 }
 0x299   : > { %v6783_v40 = vpop.permute.xlu2 %2605 }
 0x29a   : > { %2034 = vmatpush.msra.mxu2 %v5356_v57 }
 0x29b   : > { %5076 = vmatmul.msk.f32.gmra.mxu3 %vm433_vm2, %v8861_v17 }
 0x29c   : > { %5067 = vmatmul.msk.f32.vlgmr.msrb.gmra.mxu1 %vm433_vm2, %v8862_v31 }
 0x29d   : > { %1858 = vmatpush.msrb.mxu1 %v5332_v30  ;;  %3499 = vrot.lane.b32.xlu2 %v6089_v62, %s5868_s18  ;;  %v5352_v62 = vunpack.i.h.bf16 %v8857_v58  ;;  %v6773_v15 = vpop.permute.xlu0 %2484 }
 0x29e   : > { %3542 = vrot.lane.b32.xlu0 %v6117_v4, %s5867_s17 }
 0x29f   : > { %1859 = vmatpush.msrb.mxu1 %v5341_v13  ;;  %5084 = vmatmul.msk.f32.gmra.mxu2 %vm433_vm2, %v8865_v18  ;;  %v6789_v25 = vpop.permute.xlu1 %2564 }
 0x2a1   : > { %v6795_v17 = vpop.permute.xlu2 %2523 }
 0x2a3   : > { %5087 = vmatmul.msk.f32.vlgmr.msra.gmra.mxu3 %vm433_vm2, %v8866_v22 }
 0x2a4   : > { %5068 = vmatmul.msk.f32.gmra.mxu1 %vm433_vm2, %v8867_v28  ;;  %2068 = vmatpush.msra.mxu3 %v5361_v1 }
 0x2a5   : > { %v6785_v7 = vpop.permute.xlu0 %2562 }
 0x2a6   : > { %2069 = vmatpush.msra.mxu3 %v5362_v19 }
 0x2a7   : > { %v6801_v13 = vpop.permute.xlu1 %2560 }
 0x2a9   : > { %v6811_v19 = vpop.permute.xlu2 %2603 }
 0x2ab   : > { %5088 = vmatmul.msk.f32.gmra.mxu3 %vm433_vm2, %v8868_v43 }
 0x2ac   : > { %5079 = vmatmul.msk.f32.vlgmr.msra.gmra.mxu1 %vm433_vm2, %v8869_v53 }
 0x2ad   : > { %1998 = vmatpush.msra.mxu1 %v5352_v62  ;;  %v6799_v20 = vpop.permute.xlu0 %2640 }
 0x2ae   : > { %8883 = vst [vmem:[#allocation24_spill] sm:$0xff] %v6799_v20 }
 0x2af   : > { %1999 = vmatpush.msra.mxu1 %v5357_v39  ;;  %v6817_v43 = vpop.permute.xlu1 %2644 }
 0x2b4   : > { %5080 = vmatmul.msk.f32.gmra.mxu1 %vm433_vm2, %v8870_v11 }
 0x2b5   : > { %v6813_v28 = vpop.permute.xlu0 %5364 }
 0x2b7   : > { %v6755_v54 = vpop.f32.mrf.mxu3 }
 0x2b8   : > { %8871 = vst [vmem:[#allocation19_spill] sm:$0xff] %v6755_v54 }
 0x2bf   : > { %v6763_v44 = vpop.f32.mrf.mxu3 }
 0x2c0   : > { %8873 = vst [vmem:[#allocation31_spill] sm:$0xff] %v6763_v44 }
 0x2c6   : > { %v6759_v27 = vpop.f32.mrf.mxu2 }
 0x2c7   : > { %8872 = vst [vmem:[#allocation21_spill] sm:$0xff] %v6759_v27 }
 0x2ce   : > { %v6767_v5 = vpop.f32.mrf.mxu2 }
 0x2cf   : > { %8874 = vst [vmem:[#allocation25_spill] sm:$0xff] %v6767_v5 }
 0x2db   : > { %v6777_v33 = vpop.f32.mrf.mxu1 }
 0x2dc   : > { %8876 = vst [vmem:[#allocation11_spill] sm:$0xff] %v6777_v33 }
 0x2e6   : > { %v6771_v2 = vpop.f32.mrf.mxu3 }
 0x2e7   : > { %8875 = vst [vmem:[#allocation20_spill] sm:$0xff] %v6771_v2 }
 0x2e9   : > { %v6779_v58 = vpop.f32.mrf.mxu2 }
 0x2ea   : > { %8877 = vst [vmem:[#allocation34_spill] sm:$0xff] %v6779_v58 }
 0x2ee   : > { %v6781_v24 = vpop.f32.mrf.mxu3 }
 0x2ef   : > { %8878 = vst [vmem:[#allocation5_spill] sm:$0xff] %v6781_v24 }
 0x2f1   : > { %v6787_v0 = vpop.f32.mrf.mxu1  ;;  %v6791_v57 = vpop.f32.mrf.mxu2 }
 0x2f2   : > { %8879 = vst [vmem:[#allocation13_spill] sm:$0xff] %v6787_v0 }
 0x2f3   : > { %8880 = vst [vmem:[#allocation26_spill] sm:$0xff] %v6791_v57  ;;  %v6831_v57 = vpop.permute.xlu0 %5369 }
 0x2f6   : > { %v6793_v30 = vpop.f32.mrf.mxu3 }
 0x2f7   : > { %8881 = vst [vmem:[#allocation12_spill] sm:$0xff] %v6793_v30 }
 0x2f9   : > { %v6797_v31 = vpop.f32.mrf.mxu1  ;;  %v6803_v63 = vpop.f32.mrf.mxu2 }
 0x2fa   : > { %8882 = vst [vmem:[#allocation10_spill] sm:$0xff] %v6797_v31  ;;  %v1701_v1 = vsel %vm724_vm3, %v6803_v63, -inf  ;;  %v6839_v31 = vpop.permute.xlu1 %2638 }
 0x2fb   : > { %1702 = vmax.xlane.f32.xlu1 %v1701_v1  ;;  %v6849_v24 = vpop.permute.xlu0 %3347 }
 0x2fc   : > { %8888 = vst [vmem:[#allocation15_spill] sm:$0xff] %v6849_v24 }
 0x2fe   : > { %v6807_v18 = vpop.f32.mrf.mxu3 }
 0x2ff   : > { %8884 = vst [vmem:[#allocation32_spill] sm:$0xff] %v6807_v18  ;;  %v6827_v18 = vpop.permute.xlu2 %2599 }
 0x301   : > { %v6809_v22 = vpop.f32.mrf.mxu1 }
 0x302   : > { %8885 = vst [vmem:[#allocation22_spill] sm:$0xff] %v6809_v22  ;;  %v6815_v62 = vpop.f32.mrf.mxu2 }
 0x303   : > { %v1704_v53 = vsel %vm724_vm3, %v6815_v62, -inf  ;;  %v6863_v2 = vpop.permute.xlu0 %3386 }
 0x304   : > { %1705 = vmax.xlane.f32.xlu0 %v1704_v53  ;;  %8889 = vst [vmem:[#allocation14_spill] sm:$0xff] %v6863_v2 }
 0x306   : > { %v6821_v39 = vpop.f32.mrf.mxu3 }
 0x307   : > { %v1707_v11 = vsel %vm724_vm3, %v6821_v39, -inf  ;;  %v6845_v37 = vpop.permute.xlu2 %2601 }
 0x308   : > { %1708 = vmax.xlane.f32.xlu1 %v1707_v11 }
 0x309   : > { %v6825_v1 = vpop.f32.mrf.mxu1 }
 0x30a   : > { %8886 = vst [vmem:[#allocation35_spill] sm:$0xff] %v6825_v1  ;;  %v6829_v30 = vpop.f32.mrf.mxu2 }
 0x30b   : > { %v1719_v58 = vsel %vm724_vm3, %v6829_v30, -inf  ;;  %v6883_v0 = vpop.permute.xlu0 %3380 }
 0x30c   : > { %1720 = vmax.xlane.f32.xlu0 %v1719_v58  ;;  %v6853_v58 = vpop.permute.xlu1 %5379  ;;  %8891 = vst [vmem:[#allocation53_spill] sm:$0xff] %v6883_v0 }
 0x30e   : > { %v6835_v22 = vpop.f32.mrf.mxu3 }
 0x30f   : > { %v1710_v53 = vsel %vm724_vm3, %v6835_v22, -inf }
 0x310   : > { %1711 = vmax.xlane.f32.xlu2 %v1710_v53 }
 0x311   : > { %v6841_v11 = vpop.f32.mrf.mxu1 }
 0x312   : > { %8887 = vst [vmem:[#allocation18_spill] sm:$0xff] %v6841_v11  ;;  %v6857_v53 = vpop.f32.mrf.mxu2  ;;  %v6859_v11 = vpop.permute.xlu2 %2642 }
 0x313   : > { %v1722_v5 = vsel %vm724_vm3, %v6857_v53, -inf }
 0x314   : > { %v6871_v44 = vpop.permute.xlu1 %3345 }
 0x315   : > { %8890 = vst [vmem:[#allocation23_spill] sm:$0xff] %v6871_v44 }
 0x316   : > { %v6843_v1 = vpop.f32.mrf.mxu3 }
 0x317   : > { %v1725_v35 = vsel %vm724_vm3, %v6843_v1, -inf }
 0x318   : > { %1726 = vmax.xlane.f32.xlu0 %v1725_v35 }
 0x319   : > { %v6851_v38 = vpop.f32.mrf.mxu1 }
 0x31a   : > { %v1713_v36 = vsel %vm724_vm3, %v6851_v38, -inf  ;;  %v6881_v29 = vpop.permute.xlu2 %5374 }
 0x31b   : > { %1714 = vmax.xlane.f32.xlu2 %v1713_v36  ;;  %v6873_v36 = vpop.f32.mrf.mxu2 }
 0x31c   : > { %v1737_v45 = vsel %vm724_vm3, %v6873_v36, -inf }
 0x31e   : > { %v6869_v27 = vpop.f32.mrf.mxu3 }
 0x31f   : > { %v1728_v61 = vsel %vm724_vm3, %v6869_v27, -inf }
 0x321   : > { %v6861_v60 = vpop.f32.mrf.mxu1 }
 0x322   : > { %v1716_v35 = vsel %vm724_vm3, %v6861_v60, -inf  ;;  %v6895_v10 = vpop.permute.xlu2 %5384 }
 0x323   : > { %1723 = vmax.xlane.f32.xlu2 %v1722_v5  ;;  %1717 = vmax.xlane.f32.xlu1 %v1716_v35  ;;  %v6887_v35 = vpop.permute.xlu1 %3341 }
 0x324   : > { %8892 = vst [vmem:[#allocation54_spill] sm:$0xff] %v6887_v35 }
 0x326   : > { %v6885_v5 = vpop.f32.mrf.mxu3 }
 0x327   : > { %v1743_v35 = vsel %vm724_vm3, %v6885_v5, -inf }
 0x329   : > { %v6875_v46 = vpop.f32.mrf.mxu1 }
 0x32a   : > { %v1731_v33 = vsel %vm724_vm3, %v6875_v46, -inf  ;;  %v6907_v44 = vpop.permute.xlu2 %3425 }
 0x32b   : > { %1738 = vmax.xlane.f32.xlu2 %v1737_v45  ;;  %1729 = vmax.xlane.f32.xlu1 %v1728_v61  ;;  %v6897_v45 = vpop.permute.xlu0 %5399  ;;  %v6901_v0 = vpop.permute.xlu1 %5389  ;;  %8893 = vst [vmem:[#allocation55_spill] sm:$0xff] %v6907_v44 }
 0x32e   : > { %v6899_v61 = vpop.f32.mrf.mxu3 }
 0x32f   : > { %v1746_v2 = vsel %vm724_vm3, %v6899_v61, -inf }
 0x331   : > { %v6889_v48 = vpop.f32.mrf.mxu1 }
 0x332   : > { %v1734_v54 = vsel %vm724_vm3, %v6889_v48, -inf  ;;  %v6919_v49 = vpop.permute.xlu2 %3423 }
 0x333   : > { %1732 = vmax.xlane.f32.xlu1 %v1731_v33  ;;  %1735 = vmax.xlane.f32.xlu0 %v1734_v54  ;;  %v6909_v33 = vpop.f32.mrf.mxu2  ;;  %v6911_v54 = vpop.permute.xlu0 %3419  ;;  %8895 = vst [vmem:[#allocation57_spill] sm:$0xff] %v6919_v49  ;;  %v8908_v49 = vld [vmem:[#allocation9_spill] sm:$0xff] }
 0x334   : > { %8894 = vst [vmem:[#allocation56_spill] sm:$0xff] %v6911_v54  ;;  %v6913_v24 = vpop.permute.xlu1 %5394  ;;  %v1740_v34 = vsel %vm724_vm3, %v6909_v33, -inf }
 0x33b   : > { %1744 = vmax.xlane.f32.xlu1 %v1743_v35  ;;  %1747 = vmax.xlane.f32.xlu0 %v1746_v2  ;;  %v6921_v20 = vpop.permute.xlu0 %3421  ;;  %v6929_v35 = vpop.permute.xlu2 %3382 }
 0x33c   : > { %8896 = vst [vmem:[#allocation58_spill] sm:$0xff] %v6921_v20  ;;  %v6925_v2 = vpop.permute.xlu1 %3343 }
 0x33d   : > { %8897 = vst [vmem:[#allocation59_spill] sm:$0xff] %v6925_v2 }
 0x33e   : > { %8898 = vst [vmem:[#allocation60_spill] sm:$0xff] %v6929_v35 }
 0x343   : > { %3581 = vrot.lane.b32.xlu2 %v6039_v47, %s5867_s17  ;;  %1741 = vmax.xlane.f32.xlu1 %v1740_v34  ;;  %v6933_v54 = vpop.permute.xlu0 %3462  ;;  %v6943_v20 = vpop.permute.xlu2 %3464 }
 0x344   : > { %8899 = vst [vmem:[#allocation61_spill] sm:$0xff] %v6933_v54  ;;  %v6935_v34 = vpop.permute.xlu1 %3384 }
 0x345   : > { %8900 = vst [vmem:[#allocation62_spill] sm:$0xff] %v6943_v20 }
 0x34b   : > { %3575 = vrot.lane.b32.xlu2 %v6048_v50, %s5868_s18 }
 0x34c   : > { %v6949_v35 = vpop.permute.xlu1 %3458 }
 0x34d   : > { %8901 = vst [vmem:[#allocation63_spill] sm:$0xff] %v6949_v35 }
 0x34f   : > { %3536 = vrot.lane.b32.xlu0 %v6123_v6, %s5868_s18  ;;  %v6945_v6 = vpop.permute.xlu0 %3503 }
 0x353   : > { %3620 = vrot.lane.b32.xlu2 %v6131_v8, %s5867_s17 }
 0x357   : > { %3538 = vrot.lane.b32.xlu0 %v6117_v4, %s5868_s18  ;;  %v6955_v4 = vpop.permute.xlu2 %3460 }
 0x358   : > { %8902 = vst [vmem:[#allocation64_spill] sm:$0xff] %v6955_v4 }
 0x35b   : > { %3616 = vrot.lane.b32.xlu2 %v6131_v8, %s5868_s18  ;;  %v6961_v8 = vpop.permute.xlu1 %3540 }
 0x35c   : > { %3579 = vrot.lane.b32.xlu1 %v6048_v50, %s5867_s17  ;;  %v6959_v50 = vpop.permute.xlu0 %3497  ;;  %8904 = vst [vmem:[#allocation66_spill] sm:$0xff] %v6961_v8 }
 0x35d   : > { %8903 = vst [vmem:[#allocation65_spill] sm:$0xff] %v6959_v50  ;;  %v8907_v50 = vld [vmem:[#allocation6_spill] sm:$0xff] }
 0x35f   : > { %3618 = vrot.lane.b32.xlu0 %v6134_v9, %s5867_s17  ;;  %v6969_v35 = vpop.permute.xlu2 %3501  ;;  %s5815_s17 = scalar_lea.hbm %s8767_s6, 256 }
 0x363   : > { %5404 = vrot.lane.b32.xlu2 %v6065_v56, %s5869_s19  ;;  %v8905_v56 = vld [vmem:[#allocation8_spill] sm:$0xff] }
 0x364   : > { %3577 = vrot.lane.b32.xlu1 %v6039_v47, %s5868_s18  ;;  %v6971_v47 = vpop.permute.xlu0 %3542 }
 0x365   : > { %8906 = vst [vmem:[#allocation8_spill] sm:$0xff] %v6971_v47 }
 0x367   : > { %5414 = vrot.lane.b32.xlu0 %v6077_v59, %s5869_s19 }
 0x36b   : > { %5429 = vrot.lane.b32.xlu2 %v6172_v16, %s5869_s19  ;;  %v6976_v16 = vpop.permute.xlu2 %3499 }
 0x36c   : > { %3614 = vrot.lane.b32.xlu1 %v6134_v9, %s5868_s18  ;;  %s245_s18 = sand.u32 1, %s5849_s22  }
 0x36e   : > { %v1703_v4 = vpop.xlane.xlu1 %1702 }
 0x36f   : > { %5434 = vrot.lane.b32.xlu0 %v8905_v56, %s5869_s19  ;;  %v1749_v59 = vsub.f32 %v6803_v63, %v1703_v4  ;;  %v8909_v63 = vld [vmem:[#allocation40_spill] sm:$0xff] }
 0x371   : > { %v1765_v2 = vmul.f32 1.442695, %v1749_v59 }
 0x373   : > { %5475 = vpow2.f32 %v1765_v2 }
 0x374   : > { %5409 = vrot.lane.b32.xlu1 %v8907_v50, %s5869_s19 }
 0x377   : > { %v1706_v8 = vpop.xlane.xlu0 %1705 }
 0x378   : > { %v1750_v9 = vsub.f32 %v6815_v62, %v1706_v8  ;;  %v8910_v62 = vld [vmem:[#allocation37_spill] sm:$0xff] }
 0x379   : > { %v5476_v47 = vpop.eup %5475 }
 0x37a   : > { %v1767_v20 = vmul.f32 1.442695, %v1750_v9  ;;  %5089 = vmatmul.msk.f32.vlgmr.msrb.gmra.mxu0 %vm724_vm3, %v5476_v47  ;;  %v8913_v9 = vld [vmem:[#allocation36_spill] sm:$0xff] }
 0x37b   : > { %v1709_v54 = vpop.xlane.xlu1 %1708  ;;  %5105 = vmatpush.xpose.msk.msrb.mxu0 %vm433_vm2, %v8909_v63 }
 0x37c   : > { %v1751_v56 = vsub.f32 %v6821_v39, %v1709_v54  ;;  %5419 = vrot.lane.b32.xlu1 %v8908_v49, %s5869_s19  ;;  %5477 = vpow2.f32 %v1767_v20  ;;  %v8911_v49 = vld [vmem:[#allocation7_spill] sm:$0xff] }
 0x37e   : > { %v1769_v44 = vmul.f32 1.442695, %v1751_v56 }
 0x37f   : > { %v1721_v2 = vpop.xlane.xlu0 %1720  ;;  %5106 = vmatpush.xpose.msk.msrb.mxu0 %vm433_vm2, %v8910_v62 }
 0x380   : > { %5479 = vpow2.f32 %v1769_v44  ;;  %v1755_v4 = vsub.f32 %v6829_v30, %v1721_v2  ;;  %v8912_v44 = vld [vmem:[#allocation29_spill] sm:$0xff] }
 0x382   : > { %v6991_v50 = vpop.eup %5477  ;;  %v1777_v8 = vmul.f32 1.442695, %v1755_v4 }
 0x383   : > { %v1712_v39 = vpop.xlane.xlu2 %1711  ;;  %5090 = vmatmul.msk.f32.gmra.mxu0 %vm724_vm3, %v6991_v50 }
 0x384   : > { %v1752_v54 = vsub.f32 %v6835_v22, %v1712_v39  ;;  %5424 = vrot.lane.b32.xlu1 %v8911_v49, %s5869_s19  ;;  %5481 = vpow2.f32 %v1777_v8 }
 0x386   : > { %v5480_v20 = vpop.eup %5479  ;;  %v1771_v59 = vmul.f32 1.442695, %v1752_v54 }
 0x387   : > { %5091 = vmatmul.msk.f32.vlgmr.msrb.gmra.mxu1 %vm724_vm3, %v5480_v20 }
 0x388   : > { %5483 = vpow2.f32 %v1771_v59  ;;  %5109 = vmatpush.xpose.msk.msrb.mxu1 %vm433_vm2, %v8912_v44  ;;  %v2077_v59 = vsel %vm724_vm3, %v5476_v47, 0.0 }
 0x38a   : > { %v5482_v56 = vpop.eup %5481 }
 0x38b   : > { %v1727_v30 = vpop.xlane.xlu0 %1726  ;;  %5095 = vmatmul.msk.f32.vlgmr.msrb.gmra.mxu3 %vm724_vm3, %v5482_v56 }
 0x38c   : > { %v1757_v22 = vsub.f32 %v6843_v1, %v1727_v30  ;;  %5110 = vmatpush.xpose.msk.msrb.mxu1 %vm433_vm2, %v8913_v9  ;;  %5439 = vrot.lane.b32.xlu1 %v6190_v21, %s5869_s19  ;;  %s8470_s19 = sshll.u32 %s245_s18, 7 }
 0x38d   : > { %5117 = vmatpush.xpose.msk.msrb.mxu3 %vm433_vm2, %v6757_v55 }
 0x38e   : > { %v5484_v63 = vpop.eup %5483  ;;  %v1781_v2 = vmul.f32 1.442695, %v1757_v22  ;;  %v1715_v4 = vpop.xlane.xlu2 %1714  ;;  %v8916_v22 = vld [vmem:[#allocation39_spill] sm:$0xff] }
 0x38f   : > { %v1753_v62 = vsub.f32 %v6851_v38, %v1715_v4  ;;  %5092 = vmatmul.msk.f32.gmra.mxu1 %vm724_vm3, %v5484_v63  ;;  %v2086_v21 = vsel %vm724_vm3, %v5484_v63, 0.0  ;;  %v8914_v38 = vld [vmem:[#allocation30_spill] sm:$0xff]  ;;  %v8917_v63 = vld [vmem:[#allocation33_spill] sm:$0xff] }
 0x390   : > { %5485 = vpow2.f32 %v1781_v2 }
 0x391   : > { %v1773_v1 = vmul.f32 1.442695, %v1753_v62  ;;  %5118 = vmatpush.xpose.msk.msrb.mxu3 %vm433_vm2, %v6753_v51  ;;  %v2083_v62 = vsel %vm724_vm3, %v5480_v20, 0.0 }
 0x393   : > { %5487 = vpow2.f32 %v1773_v1 }
 0x394   : > { %2087 = vadd.xlane.f32.xlu2 %v2086_v21 }
 0x396   : > { %v7011_v39 = vpop.eup %5485  ;;  %v1724_v54 = vpop.xlane.xlu2 %1723 }
 0x397   : > { %v1718_v49 = vpop.xlane.xlu1 %1717  ;;  %v1756_v8 = vsub.f32 %v6857_v53, %v1724_v54  ;;  %5097 = vmatmul.msk.f32.vlgmr.msra.gmra.mxu0 %vm724_vm3, %v7011_v39  ;;  %v8915_v53 = vld [vmem:[#allocation28_spill] sm:$0xff] }
 0x398   : > { %v1754_v55 = vsub.f32 %v6861_v60, %v1718_v49  ;;  %5121 = vmatpush.xpose.msk.msra.mxu0 %vm433_vm2, %v8914_v38  ;;  %v2095_v60 = vsel %vm724_vm3, %v5482_v56, 0.0  ;;  %v1107_v49 = vsel %vm724_vm3, %v6575_v12, 0.0 }
 0x399   : > { %v7020_v51 = vpop.eup %5487  ;;  %v1779_v44 = vmul.f32 1.442695, %v1756_v8  ;;  %2078 = vadd.xlane.f32.xlu0 %v2077_v59 }
 0x39a   : > { %v1775_v30 = vmul.f32 1.442695, %v1754_v55  ;;  %5093 = vmatmul.msk.f32.vlgmr.msrb.gmra.mxu2 %vm724_vm3, %v7020_v51 }
 0x39b   : > { %5489 = vpow2.f32 %v1779_v44  ;;  %5113 = vmatpush.xpose.msk.msrb.mxu2 %vm433_vm2, %v8915_v53 }
 0x39c   : > { %5491 = vpow2.f32 %v1775_v30  ;;  %5122 = vmatpush.xpose.msk.msra.mxu0 %vm433_vm2, %v8916_v22  ;;  %2096 = vadd.xlane.f32.xlu2 %v2095_v60 }
 0x39e   : > { %v1739_v47 = vpop.xlane.xlu2 %1738 }
 0x39f   : > { %v1730_v9 = vpop.xlane.xlu1 %1729  ;;  %5114 = vmatpush.xpose.msk.msrb.mxu2 %vm433_vm2, %v8917_v63  ;;  %v1761_v2 = vsub.f32 %v6873_v36, %v1739_v47  ;;  %v5366_v47 = vunpack.i.l.bf16 %v6813_v28 }
 0x3a0   : > { %v1758_v4 = vsub.f32 %v6869_v27, %v1730_v9 }
 0x3a1   : > { %v7034_v1 = vpop.eup %5489  ;;  %v1789_v21 = vmul.f32 1.442695, %v1761_v2  ;;  %2084 = vadd.xlane.f32.xlu0 %v2083_v62  ;;  %v5371_v62 = vunpack.i.l.bf16 %v6831_v57 }
 0x3a2   : > { %v1783_v56 = vmul.f32 1.442695, %v1758_v4  ;;  %v5492_v54 = vpop.eup %5491  ;;  %5096 = vmatmul.msk.f32.gmra.mxu3 %vm724_vm3, %v7034_v1 }
 0x3a3   : > { %5493 = vpow2.f32 %v1789_v21  ;;  %5094 = vmatmul.msk.f32.gmra.mxu2 %vm724_vm3, %v5492_v54  ;;  %v2092_v8 = vsel %vm724_vm3, %v5492_v54, 0.0  ;;  %v5391_v21 = vunpack.i.l.bf16 %v6901_v0 }
 0x3a4   : > { %5495 = vpow2.f32 %v1783_v56  ;;  %1108 = vadd.xlane.f32.xlu2 %v1107_v49  ;;  %v8922_v56 = vld [vmem:[#allocation38_spill] sm:$0xff] }
 0x3a6   : > { %v1736_v20 = vpop.xlane.xlu0 %1735 }
 0x3a7   : > { %v1733_v27 = vpop.xlane.xlu1 %1732  ;;  %v1760_v44 = vsub.f32 %v6889_v48, %v1736_v20  ;;  %v1104_v48 = vsel %vm724_vm3, %v6528_v41, 0.0  ;;  %v5367_v41 = vunpack.i.h.bf16 %v6813_v28 }
 0x3a8   : > { %v1759_v36 = vsub.f32 %v6875_v46, %v1733_v27 }
 0x3a9   : > { %v7043_v55 = vpop.eup %5493  ;;  %2093 = vadd.xlane.f32.xlu0 %v2092_v8  ;;  %v1787_v12 = vmul.f32 1.442695, %v1760_v44 }
 0x3aa   : > { %v1785_v38 = vmul.f32 1.442695, %v1759_v36  ;;  %v7045_v59 = vpop.eup %5495 }
 0x3ab   : > { %5098 = vmatmul.msk.f32.gmra.mxu0 %vm724_vm3, %v7045_v59  ;;  %5101 = vmatmul.msk.f32.vlgmr.msra.gmra.mxu2 %vm724_vm3, %v7043_v55 }
 0x3ac   : > { %5497 = vpow2.f32 %v1785_v38  ;;  %5129 = vmatpush.xpose.msk.msra.mxu2 %vm433_vm2, %v6783_v40 }
 0x3ad   : > { %5499 = vpow2.f32 %v1787_v12 }
 0x3ae   : > { %v1748_v53 = vpop.xlane.xlu0 %1747 }
 0x3af   : > { %v1745_v46 = vpop.xlane.xlu1 %1744  ;;  %v1764_v40 = vsub.f32 %v6899_v61, %v1748_v53 }
 0x3b0   : > { %v1763_v30 = vsub.f32 %v6885_v5, %v1745_v46  ;;  %5130 = vmatpush.xpose.msk.msra.mxu2 %vm433_vm2, %v6811_v19  ;;  %v8918_v5 = vld [vmem:[#allocation27_spill] sm:$0xff]  ;;  %v2080_v19 = vsel %vm724_vm3, %v6991_v50, 0.0  ;;  %v5372_v50 = vunpack.i.h.bf16 %v6831_v57  ;;  %v1101_v57 = vsel %vm724_vm3, %v6515_v14, 0.0 }
 0x3b1   : > { %1105 = vadd.xlane.f32.xlu0 %v1104_v48  ;;  %v1795_v9 = vmul.f32 1.442695, %v1764_v40  ;;  %v5396_v14 = vunpack.i.l.bf16 %v6913_v24 }
 0x3b2   : > { %v7059_v60 = vpop.eup %5497  ;;  %v1793_v22 = vmul.f32 1.442695, %v1763_v30 }
 0x3b3   : > { %5099 = vmatmul.msk.f32.vlgmr.msra.gmra.mxu1 %vm724_vm3, %v7059_v60  ;;  %5107 = vmatmul.msk.f32.vlgmr.msrb.gmra.mxu0 %vm433_vm2, %v8918_v5  ;;  %v7075_v2 = vpop.eup %5499 }
 0x3b4   : > { %5501 = vpow2.f32 %v1793_v22  ;;  %5125 = vmatpush.xpose.msk.msra.mxu1 %vm433_vm2, %v6775_v32  ;;  %2799 = vmatpush.msrb.mxu0 %v5366_v47 }
 0x3b5   : > { %5503 = vpow2.f32 %v1795_v9 }
 0x3b6   : > { %2800 = vmatpush.msrb.mxu0 %v5367_v41  ;;  %2081 = vadd.xlane.f32.xlu1 %v2080_v19 }
 0x3b7   : > { %v1742_v61 = vpop.xlane.xlu1 %1741 }
 0x3b8   : > { %5126 = vmatpush.xpose.msk.msra.mxu1 %vm433_vm2, %v6789_v25  ;;  %v1762_v63 = vsub.f32 %v6909_v33, %v1742_v61  ;;  %v2089_v25 = vsel %vm724_vm3, %v7020_v51, 0.0  ;;  %v5381_v51 = vunpack.i.l.bf16 %v6853_v58 }
 0x3ba   : > { %v7077_v4 = vpop.eup %5501  ;;  %v1791_v32 = vmul.f32 1.442695, %v1762_v63 }
 0x3bb   : > { %8919 = vst [vmem:[#allocation6_spill] sm:$0xff] %v7077_v4  ;;  %5100 = vmatmul.msk.f32.gmra.mxu1 %vm724_vm3, %v7075_v2  ;;  %5103 = vmatmul.msk.f32.vlgmr.msra.gmra.mxu3 %vm724_vm3, %v7077_v4  ;;  %v7091_v28 = vpop.eup %5503 }
 0x3bc   : > { %5505 = vpow2.f32 %v1791_v32  ;;  %5108 = vmatmul.msk.f32.gmra.mxu0 %vm433_vm2, %v6508_v52  ;;  %5133 = vmatpush.xpose.msk.msra.mxu3 %vm433_vm2, %v6817_v43  ;;  %8920 = vst [vmem:[#allocation9_spill] sm:$0xff] %v7091_v28  ;;  %v8921_v52 = vld [vmem:[#allocation41_spill] sm:$0xff]  ;;  %v5377_v43 = vunpack.i.h.bf16 %v6881_v29 }
 0x3be   : > { %2090 = vadd.xlane.f32.xlu1 %v2089_v25 }
 0x3c0   : > { %5134 = vmatpush.xpose.msk.msra.mxu3 %vm433_vm2, %v6859_v11  ;;  %v5376_v11 = vunpack.i.l.bf16 %v6881_v29  ;;  %v5382_v29 = vunpack.i.h.bf16 %v6853_v58 }
 0x3c2   : > { %v7093_v33 = vpop.eup %5505 }
 0x3c3   : > { %5102 = vmatmul.msk.f32.gmra.mxu2 %vm724_vm3, %v7093_v33  ;;  %5104 = vmatmul.msk.f32.gmra.mxu3 %vm724_vm3, %v7091_v28 }
 0x3c4   : > { %5111 = vmatmul.msk.f32.vlgmr.msrb.gmra.mxu1 %vm433_vm2, %v8921_v52  ;;  %5123 = vmatmul.msk.f32.vlgmr.msra.gmra.mxu0 %vm433_vm2, %v6769_v3  ;;  %v5386_v3 = vunpack.i.l.bf16 %v6895_v10 }
 0x3c5   : > { %2834 = vmatpush.msrb.mxu1 %v5371_v62  ;;  %2939 = vmatpush.msra.mxu0 %v5372_v50 }
 0x3c6   : > { %1102 = vadd.xlane.f32.xlu1 %v1101_v57 }
 0x3c7   : > { %2835 = vmatpush.msrb.mxu1 %v5376_v11  ;;  %2940 = vmatpush.msra.mxu0 %v5377_v43 }
 0x3cb   : > { %5115 = vmatmul.msk.f32.vlgmr.msrb.gmra.mxu2 %vm433_vm2, %v8922_v56  ;;  %5119 = vmatmul.msk.f32.vlgmr.msrb.gmra.mxu3 %vm433_vm2, %v6761_v42  ;;  %v5387_v42 = vunpack.i.h.bf16 %v6895_v10  ;;  %v5402_v10 = vunpack.i.h.bf16 %v6897_v45 }
 0x3cc   : > { %5112 = vmatmul.msk.f32.gmra.mxu1 %vm433_vm2, %v6765_v26  ;;  %5124 = vmatmul.msk.f32.gmra.mxu0 %vm433_vm2, %v6795_v17  ;;  %v5392_v26 = vunpack.i.h.bf16 %v6901_v0  ;;  %v5401_v17 = vunpack.i.l.bf16 %v6897_v45  ;;  %v8923_v0 = vld [vmem:[#allocation24_spill] sm:$0xff] }
 0x3cd   : > { %2869 = vmatpush.msrb.mxu2 %v5381_v51  ;;  %2904 = vmatpush.msrb.mxu3 %v5391_v21 }
 0x3cf   : > { %2870 = vmatpush.msrb.mxu2 %v5382_v29  ;;  %2905 = vmatpush.msrb.mxu3 %v5396_v14 }
 0x3d3   : > { %5116 = vmatmul.msk.f32.gmra.mxu2 %vm433_vm2, %v6751_v23  ;;  %5120 = vmatmul.msk.f32.gmra.mxu3 %vm433_vm2, %v6773_v15  ;;  %v5397_v23 = vunpack.i.h.bf16 %v6913_v24  ;;  %v7139_v15 = vpop.permute.xlu0 %3536 }
 0x3d4   : > { %5127 = vmatmul.msk.f32.vlgmr.msra.gmra.mxu1 %vm433_vm2, %v6801_v13 }
 0x3d5   : > { %2974 = vmatpush.msra.mxu1 %v5386_v3 }
 0x3d7   : > { %2975 = vmatpush.msra.mxu1 %v5387_v42 }
 0x3db   : > { %5131 = vmatmul.msk.f32.vlgmr.msra.gmra.mxu2 %vm433_vm2, %v6827_v18  ;;  %5135 = vmatmul.msk.f32.vlgmr.msra.gmra.mxu3 %vm433_vm2, %v6839_v31  ;;  %v7145_v31 = vpop.permute.xlu1 %3579  ;;  %v7147_v24 = vpop.permute.xlu0 %3538 }
 0x3dc   : > { %5128 = vmatmul.msk.f32.gmra.mxu1 %vm433_vm2, %v6785_v7  ;;  %3009 = vmatpush.msra.mxu2 %v5392_v26 }
 0x3dd   : > { %3044 = vmatpush.msra.mxu3 %v5401_v17 }
 0x3de   : > { %3010 = vmatpush.msra.mxu2 %v5397_v23 }
 0x3df   : > { %3045 = vmatpush.msra.mxu3 %v5402_v10 }
 0x3e3   : > { %5132 = vmatmul.msk.f32.gmra.mxu2 %vm433_vm2, %v6845_v37  ;;  %5136 = vmatmul.msk.f32.gmra.mxu3 %vm433_vm2, %v8923_v0  ;;  %v7149_v13 = vpop.permute.xlu1 %3577  ;;  %v7151_v7 = vpop.permute.xlu0 %3618 }
 0x3eb   : > { %v7153_v18 = vpop.permute.xlu1 %3614  ;;  %v7155_v58 = vpop.permute.xlu0 %5414 }
 0x3f3   : > { %v7157_v45 = vpop.permute.xlu1 %5409  ;;  %v7159_v54 = vpop.permute.xlu0 %5434 }
 0x3f7   : > { %v7165_v27 = vpop.f32.mrf.mxu0 }
 0x3fb   : > { %v7163_v49 = vpop.permute.xlu1 %5419 }
 0x400   : > { %v7169_v8 = vpop.f32.mrf.mxu0 }
 0x403   : > { %v7167_v20 = vpop.permute.xlu1 %5424 }
 0x404   : > { %v1861_v46 = vpop.f32.mrf.mxu1 }
 0x40b   : > { %v7173_v47 = vpop.permute.xlu1 %5439 }
 0x40c   : > { %v7161_v37 = vpop.xlane.xlu0 %2078  ;;  %v7175_v50 = vpop.f32.mrf.mxu1 }
 0x40d   : > { %vm2130_vm1 = vweird.f32 %v7161_v37 }
 0x40e   : > { %v7183_v14 = vpop.f32.mrf.mxu3 }
 0x40f   : > { %8926 = vst [vmem:[#allocation7_spill] sm:$0xff] %v7183_v14 }
 0x414   : > { %v2085_v36 = vpop.xlane.xlu0 %2084  ;;  %v7171_v22 = vpop.f32.mrf.mxu0 }
 0x415   : > { %5507 = vrcp.f32 %v2085_v36  ;;  %v2166_v48 = vand.u32 2147483648, %v2085_v36  ;;  %8924 = vst [vmem:[#allocation40_spill] sm:$0xff] %v7171_v22  ;;  %v2164_v40 = vand.u32 2147483647, %v2085_v36  ;;  %vm2160_vm5 = vweird.f32 %v2085_v36 }
 0x417   : > { %v2167_v9 = vor.u32 1.1754944e-38, %v2166_v48  ;;  %vm2165_vm7 = vcmp.eq.f32.partialorder %v2164_v40, 8.507059e+37 }
 0x41b   : > { %v5508_v38 = vpop.eup %5507 }
 0x41c   : > { %v2156_v44 = vmul.f32 %v5508_v38, %v2085_v36  ;;  %v2094_v12 = vpop.xlane.xlu0 %2093  ;;  %vm2161_vm4 = vweird.f32 %v5508_v38 }
 0x41d   : > { %5509 = vrcp.f32 %v2094_v12  ;;  %vm2162_vm6 = vmor %vm2160_vm5, %vm2161_vm4  ;;  %v1896_v19 = vpop.f32.mrf.mxu2  ;;  %v2211_v62 = vand.u32 2147483648, %v2094_v12  ;;  %v2209_v11 = vand.u32 2147483647, %v2094_v12  ;;  %vm2205_vm9 = vweird.f32 %v2094_v12 }
 0x41e   : > { %v2157_v30 = vsub.f32 1.0, %v2156_v44 }
 0x41f   : > { %v2212_v56 = vor.u32 1.1754944e-38, %v2211_v62  ;;  %vm2210_vm11 = vcmp.eq.f32.partialorder %v2209_v11, 8.507059e+37 }
 0x420   : > { %v2158_v53 = vmul.f32 %v5508_v38, %v2157_v30 }
 0x422   : > { %v2159_v5 = vadd.f32 %v5508_v38, %v2158_v53 }
 0x423   : > { %v5510_v41 = vpop.eup %5509 }
 0x424   : > { %v2201_v61 = vmul.f32 %v5510_v41, %v2094_v12  ;;  %v2163_v63 = vsel %vm2162_vm6, %v5508_v38, %v2159_v5  ;;  %vm2206_vm8 = vweird.f32 %v5510_v41 }
 0x425   : > { %v2168_v25 = vsel %vm2165_vm7, %v2167_v9, %v2163_v63  ;;  %vm2207_vm10 = vmor %vm2205_vm9, %vm2206_vm8  ;;  %v7193_v36 = vpop.f32.mrf.mxu3 }
 0x426   : > { %v2202_v32 = vsub.f32 1.0, %v2201_v61  ;;  %v7177_v52 = vmul.f32 %v2168_v25, %v1861_v46  ;;  %v1899_v3 = vpop.f32.mrf.mxu2  ;;  %8928 = vst [vmem:[#allocation36_spill] sm:$0xff] %v7193_v36 }
 0x428   : > { %v2203_v43 = vmul.f32 %v5510_v41, %v2202_v32  ;;  %v7179_v57 = vpop.f32.mrf.mxu0 }
 0x429   : > { %8925 = vst [vmem:[#allocation37_spill] sm:$0xff] %v7179_v57  ;;  %v7181_v51 = vpop.xlane.xlu1 %2081 }
 0x42a   : > { %v2204_v21 = vadd.f32 %v5510_v41, %v2203_v43  ;;  %vm2145_vm7 = vweird.f32 %v7181_v51 }
 0x42c   : > { %v2208_v29 = vsel %vm2207_vm10, %v5510_v41, %v2204_v21 }
 0x42d   : > { %v2213_v42 = vsel %vm2210_vm11, %v2212_v56, %v2208_v29 }
 0x42e   : > { %v7185_v26 = vmul.f32 %v2213_v42, %v1899_v3  ;;  %v7201_v40 = vpop.f32.mrf.mxu2 }
 0x42f   : > { %8930 = vst [vmem:[#allocation28_spill] sm:$0xff] %v7201_v40 }
 0x430   : > { %v7187_v17 = vpop.f32.mrf.mxu1  ;;  %v7189_v23 = vpop.f32.mrf.mxu0 }
 0x431   : > { %8927 = vst [vmem:[#allocation29_spill] sm:$0xff] %v7187_v17  ;;  %v2677_v10 = vsel %vm724_vm3, %v7189_v23, -inf  ;;  %v2091_v0 = vpop.xlane.xlu1 %2090  ;;  %v8935_v17 = vld [vmem:[#allocation49_spill] sm:$0xff] }
 0x432   : > { %2678 = vmax.xlane.f32.xlu2 %v2677_v10  ;;  %5511 = vrcp.f32 %v2091_v0  ;;  %v2196_v48 = vand.u32 2147483648, %v2091_v0  ;;  %v2194_v41 = vand.u32 2147483647, %v2091_v0  ;;  %vm2190_vm13 = vweird.f32 %v2091_v0 }
 0x433   : > { %5513 = vrcp.f32 %v7161_v37 }
 0x434   : > { %v2197_v63 = vor.u32 1.1754944e-38, %v2196_v48  ;;  %vm2195_vm15 = vcmp.eq.f32.partialorder %v2194_v41, 8.507059e+37 }
 0x438   : > { %v7195_v38 = vpop.f32.mrf.mxu1  ;;  %v5512_v44 = vpop.eup %5511 }
 0x439   : > { %8929 = vst [vmem:[#allocation30_spill] sm:$0xff] %v7195_v38  ;;  %v7197_v12 = vpop.f32.mrf.mxu0  ;;  %v2186_v46 = vmul.f32 %v5512_v44, %v2091_v0  ;;  %vm2191_vm12 = vweird.f32 %v5512_v44  ;;  %v8934_v38 = vld [vmem:[#allocation42_spill] sm:$0xff] }
 0x43a   : > { %v2680_v30 = vsel %vm724_vm3, %v7197_v12, -inf  ;;  %vm2192_vm14 = vmor %vm2190_vm13, %vm2191_vm12 }
 0x43b   : > { %2681 = vmax.xlane.f32.xlu1 %v2680_v30  ;;  %v2187_v53 = vsub.f32 1.0, %v2186_v46  ;;  %v7229_v30 = vpop.permute.xlu2 %3581 }
 0x43d   : > { %v2188_v5 = vmul.f32 %v5512_v44, %v2187_v53 }
 0x43e   : > { %v7203_v9 = vpop.f32.mrf.mxu3 }
 0x43f   : > { %8931 = vst [vmem:[#allocation39_spill] sm:$0xff] %v7203_v9  ;;  %v2189_v61 = vadd.f32 %v5512_v44, %v2188_v5 }
 0x441   : > { %v7205_v32 = vpop.f32.mrf.mxu1  ;;  %v7207_v25 = vpop.f32.mrf.mxu0  ;;  %v2193_v11 = vsel %vm2192_vm14, %v5512_v44, %v2189_v61 }
 0x442   : > { %v2701_v62 = vsel %vm724_vm3, %v7207_v25, -inf  ;;  %v2683_v43 = vsel %vm724_vm3, %v7205_v32, -inf  ;;  %v2198_v21 = vsel %vm2195_vm15, %v2197_v63, %v2193_v11 }
 0x443   : > { %2702 = vmax.xlane.f32.xlu2 %v2701_v62  ;;  %2684 = vmax.xlane.f32.xlu0 %v2683_v43  ;;  %v7213_v56 = vmul.f32 %v2198_v21, %v1896_v19  ;;  %v7245_v62 = vpop.permute.xlu2 %3575 }
 0x446   : > { %v7215_v29 = vpop.f32.mrf.mxu2  ;;  %v7217_v3 = vpop.f32.mrf.mxu3 }
 0x447   : > { %8932 = vst [vmem:[#allocation33_spill] sm:$0xff] %v7215_v29  ;;  %v1113_v29 = vsel %vm724_vm3, %v8934_v38, 0.0  ;;  %v2104_v38 = vsel %vm724_vm3, %v7045_v59, 0.0 }
 0x448   : > { %8933 = vst [vmem:[#allocation27_spill] sm:$0xff] %v7217_v3 }
 0x449   : > { %v7219_v42 = vpop.f32.mrf.mxu1  ;;  %v7233_v53 = vpop.f32.mrf.mxu0 }
 0x44a   : > { %v2704_v41 = vsel %vm724_vm3, %v7233_v53, -inf  ;;  %v2686_v61 = vsel %vm724_vm3, %v7219_v42, -inf }
 0x44e   : > { %v7221_v10 = vpop.f32.mrf.mxu2  ;;  %v7223_v0 = vpop.f32.mrf.mxu3 }
 0x44f   : > { %v2689_v46 = vsel %vm724_vm3, %v7221_v10, -inf  ;;  %v2695_v44 = vsel %vm724_vm3, %v7223_v0, -inf }
 0x450   : > { %2690 = vmax.xlane.f32.xlu1 %v2689_v46  ;;  %2696 = vmax.xlane.f32.xlu2 %v2695_v44 }
 0x451   : > { %v7231_v19 = vpop.f32.mrf.mxu1 }
 0x452   : > { %v2707_v44 = vsel %vm724_vm3, %v7231_v19, -inf }
 0x456   : > { %v7235_v48 = vpop.f32.mrf.mxu2  ;;  %v7237_v5 = vpop.f32.mrf.mxu3 }
 0x457   : > { %v2698_v63 = vsel %vm724_vm3, %v7237_v5, -inf  ;;  %v2692_v21 = vsel %vm724_vm3, %v7235_v48, -inf }
 0x458   : > { %2705 = vmax.xlane.f32.xlu1 %v2704_v41  ;;  %2687 = vmax.xlane.f32.xlu2 %v2686_v61  ;;  %v7259_v61 = vpop.permute.xlu2 %3620 }
 0x459   : > { %2699 = vmax.xlane.f32.xlu0 %v2698_v63  ;;  %v7247_v43 = vpop.f32.mrf.mxu1 }
 0x45a   : > { %v2710_v46 = vsel %vm724_vm3, %v7247_v43, -inf }
 0x45e   : > { %v7249_v11 = vpop.f32.mrf.mxu2  ;;  %v7257_v41 = vpop.f32.mrf.mxu3 }
 0x45f   : > { %v2713_v3 = vsel %vm724_vm3, %v7249_v11, -inf }
 0x460   : > { %2693 = vmax.xlane.f32.xlu1 %v2692_v21  ;;  %2711 = vmax.xlane.f32.xlu2 %v2710_v46  ;;  %v2719_v21 = vsel %vm724_vm3, %v7257_v41, -inf }
 0x461   : > { %2708 = vmax.xlane.f32.xlu0 %v2707_v44  ;;  %v7271_v44 = vpop.permute.xlu2 %3616 }
 0x466   : > { %v7261_v63 = vpop.f32.mrf.mxu2  ;;  %v7269_v46 = vpop.f32.mrf.mxu3 }
 0x467   : > { %v2716_v9 = vsel %vm724_vm3, %v7261_v63, -inf  ;;  %v2722_v40 = vsel %vm724_vm3, %v7269_v46, -inf }
 0x468   : > { %2714 = vmax.xlane.f32.xlu1 %v2713_v3  ;;  %2717 = vmax.xlane.f32.xlu2 %v2716_v9  ;;  %v1110_v9 = vsel %vm724_vm3, %v8935_v17, 0.0  ;;  %v5514_v3 = vpop.eup %5513 }
 0x469   : > { %2720 = vmax.xlane.f32.xlu0 %v2719_v21  ;;  %v2098_v21 = vsel %vm724_vm3, %v7034_v1, 0.0  ;;  %v7282_v57 = vpop.permute.xlu2 %5404  ;;  %v2126_v28 = vmul.f32 %v5514_v3, %v7161_v37  ;;  %vm2131_vm0 = vweird.f32 %v5514_v3  ;;  %v2134_v1 = vand.u32 2147483647, %v7161_v37 }
 0x46a   : > { %vm2132_vm4 = vmor %vm2130_vm1, %vm2131_vm0 }
 0x46b   : > { %v2127_v22 = vsub.f32 1.0, %v2126_v28  ;;  %vm2135_vm5 = vcmp.eq.f32.partialorder %v2134_v1, 8.507059e+37 }
 0x470   : > { %1114 = vadd.xlane.f32.xlu2 %v1113_v29  ;;  %2723 = vmax.xlane.f32.xlu1 %v2722_v40  ;;  %v2128_v29 = vmul.f32 %v5514_v3, %v2127_v22  ;;  %v2136_v40 = vand.u32 2147483648, %v7161_v37 }
 0x471   : > { %1111 = vadd.xlane.f32.xlu0 %v1110_v9  ;;  %v7287_v36 = vpop.permute.xlu2 %5429 }
 0x472   : > { %v2129_v17 = vadd.f32 %v5514_v3, %v2128_v29  ;;  %v2137_v59 = vor.u32 1.1754944e-38, %v2136_v40  ;;  %v7300_v29 = vpop.xlane.xlu1 %1102 }
 0x474   : > { %v2133_v9 = vsel %vm2132_vm4, %v5514_v3, %v2129_v17  ;;  %v7303_v17 = vpop.xlane.xlu0 %1105 }
 0x475   : > { %8936 = vst [vmem:[#allocation41_spill] sm:$0xff] %v7303_v17 }
 0x478   : > { %2099 = vadd.xlane.f32.xlu1 %v2098_v21  ;;  %v2138_v21 = vsel %vm2135_vm5, %v2137_v59, %v2133_v9 }
 0x479   : > { %2105 = vadd.xlane.f32.xlu0 %v2104_v38  ;;  %v7292_v4 = vpop.xlane.xlu2 %2087  ;;  %v2139_v28 = vmul.f32 %v2138_v21, %v7165_v27  ;;  %v8937_v21 = vld [vmem:[#allocation15_spill] sm:$0xff] }
 0x481   : > { %v7296_v22 = vpop.xlane.xlu2 %2096 }
 0x489   : > { %v7298_v38 = vpop.xlane.xlu2 %1108 }
 0x491   : > { %4333 = vrot.lane.b32.xlu1 %v2139_v28, %s5870_s20  ;;  %v8938_v28 = vld [vmem:[#allocation23_spill] sm:$0xff] }
 0x4a5   : > { %v2679_v14 = vpop.xlane.xlu2 %2678 }
 0x4a6   : > { %v2725_v37 = vsub.f32 %v7189_v23, %v2679_v14 }
 0x4a8   : > { %v2741_v3 = vmul.f32 1.442695, %v2725_v37 }
 0x4aa   : > { %5515 = vpow2.f32 %v2741_v3 }
 0x4ab   : > { %5517 = vrcp.f32 %v7181_v51 }
 0x4ae   : > { %v2682_v40 = vpop.xlane.xlu1 %2681 }
 0x4af   : > { %v2726_v1 = vsub.f32 %v7197_v12, %v2682_v40 }
 0x4b0   : > { %v5516_v27 = vpop.eup %5515 }
 0x4b1   : > { %v2743_v9 = vmul.f32 1.442695, %v2726_v1  ;;  %5137 = vmatmul.msk.f32.vlgmr.msrb.gmra.mxu0 %vm724_vm3, %v5516_v27  ;;  %v3053_v59 = vsel %vm724_vm3, %v5516_v27, 0.0  ;;  %v5518_v3 = vpop.eup %5517 }
 0x4b2   : > { %5153 = vmatpush.xpose.msk.msrb.mxu0 %vm433_vm2, %v8937_v21  ;;  %3054 = vadd.xlane.f32.xlu2 %v3053_v59  ;;  %v2141_v59 = vmul.f32 %v5518_v3, %v7181_v51  ;;  %vm2146_vm6 = vweird.f32 %v5518_v3 }
 0x4b3   : > { %5519 = vpow2.f32 %v2743_v9  ;;  %v2101_v9 = vsel %vm724_vm3, %v7011_v39, 0.0  ;;  %vm7336_vm8 = vmor %vm2145_vm7, %vm2146_vm6 }
 0x4b6   : > { %v2703_v14 = vpop.xlane.xlu2 %2702  ;;  %v2685_v23 = vpop.xlane.xlu0 %2684  ;;  %5154 = vmatpush.xpose.msk.msrb.mxu0 %vm433_vm2, %v8938_v28 }
 0x4b7   : > { %v2733_v12 = vsub.f32 %v7207_v25, %v2703_v14  ;;  %v2727_v37 = vsub.f32 %v7205_v32, %v2685_v23  ;;  %v2142_v25 = vsub.f32 1.0, %v2141_v59 }
 0x4b9   : > { %v5520_v40 = vpop.eup %5519  ;;  %v2757_v1 = vmul.f32 1.442695, %v2733_v12  ;;  %v2745_v17 = vmul.f32 1.442695, %v2727_v37  ;;  %v2143_v28 = vmul.f32 %v5518_v3, %v2142_v25  ;;  %v8939_v12 = vld [vmem:[#allocation14_spill] sm:$0xff] }
 0x4ba   : > { %5138 = vmatmul.msk.f32.gmra.mxu0 %vm724_vm3, %v5520_v40  ;;  %v3056_v27 = vsel %vm724_vm3, %v5520_v40, 0.0 }
 0x4bb   : > { %5521 = vpow2.f32 %v2757_v1  ;;  %3057 = vadd.xlane.f32.xlu2 %v3056_v27  ;;  %2102 = vadd.xlane.f32.xlu1 %v2101_v9  ;;  %v2144_v27 = vadd.f32 %v5518_v3, %v2143_v28 }
 0x4bc   : > { %5523 = vpow2.f32 %v2745_v17 }
 0x4c1   : > { %v5522_v21 = vpop.eup %5521 }
 0x4c2   : > { %v5524_v32 = vpop.eup %5523  ;;  %5145 = vmatmul.msk.f32.vlgmr.msra.gmra.mxu0 %vm724_vm3, %v5522_v21  ;;  %v3077_v9 = vsel %vm724_vm3, %v5522_v21, 0.0 }
 0x4c3   : > { %5139 = vmatmul.msk.f32.vlgmr.msrb.gmra.mxu1 %vm724_vm3, %v5524_v32  ;;  %5169 = vmatpush.xpose.msk.msra.mxu0 %vm433_vm2, %v6945_v6  ;;  %v3059_v14 = vsel %vm724_vm3, %v5524_v32, 0.0  ;;  %v2691_v23 = vpop.xlane.xlu1 %2690  ;;  %v2697_v39 = vpop.xlane.xlu2 %2696  ;;  %v2151_v6 = vand.u32 2147483648, %v7181_v51 }
 0x4c4   : > { %5157 = vmatpush.xpose.msk.msrb.mxu1 %vm433_vm2, %v8939_v12  ;;  %3060 = vadd.xlane.f32.xlu2 %v3059_v14  ;;  %v2729_v17 = vsub.f32 %v7221_v10, %v2691_v23  ;;  %v2731_v37 = vsub.f32 %v7223_v0, %v2697_v39  ;;  %v2149_v10 = vand.u32 2147483647, %v7181_v51  ;;  %v2148_v14 = vsel %vm7336_vm8, %v5518_v3, %v2144_v27  ;;  %v8944_v27 = vld [vmem:[#allocation57_spill] sm:$0xff] }
 0x4c5   : > { %v2152_v23 = vor.u32 1.1754944e-38, %v2151_v6  ;;  %v8945_v0 = vld [vmem:[#allocation61_spill] sm:$0xff] }
 0x4c6   : > { %v2749_v40 = vmul.f32 1.442695, %v2729_v17  ;;  %v2753_v1 = vmul.f32 1.442695, %v2731_v37  ;;  %vm2150_vm9 = vcmp.eq.f32.partialorder %v2149_v10, 8.507059e+37 }
 0x4c7   : > { %5170 = vmatpush.xpose.msk.msra.mxu0 %vm433_vm2, %v6969_v35  ;;  %v2153_v37 = vsel %vm2150_vm9, %v2152_v23, %v2148_v14 }
 0x4c8   : > { %5525 = vpow2.f32 %v2749_v40  ;;  %5158 = vmatpush.xpose.msk.msrb.mxu1 %vm433_vm2, %v6935_v34  ;;  %v2154_v3 = vmul.f32 %v2153_v37, %v7169_v8 }
 0x4c9   : > { %5527 = vpow2.f32 %v2753_v1 }
 0x4cb   : > { %v2706_v35 = vpop.xlane.xlu1 %2705  ;;  %v2688_v59 = vpop.xlane.xlu2 %2687 }
 0x4cc   : > { %3078 = vadd.xlane.f32.xlu2 %v3077_v9  ;;  %v2734_v25 = vsub.f32 %v7233_v53, %v2706_v35  ;;  %v2728_v34 = vsub.f32 %v7219_v42, %v2688_v59  ;;  %v2700_v32 = vpop.xlane.xlu0 %2699  ;;  %v8942_v42 = vld [vmem:[#allocation55_spill] sm:$0xff] }
 0x4cd   : > { %v2732_v51 = vsub.f32 %v7237_v5, %v2700_v32  ;;  %v8943_v5 = vld [vmem:[#allocation62_spill] sm:$0xff] }
 0x4ce   : > { %v5526_v39 = vpop.eup %5525  ;;  %v2759_v28 = vmul.f32 1.442695, %v2734_v25  ;;  %v2747_v12 = vmul.f32 1.442695, %v2728_v34 }
 0x4cf   : > { %v7346_v17 = vpop.eup %5527  ;;  %v2755_v21 = vmul.f32 1.442695, %v2732_v51  ;;  %5141 = vmatmul.msk.f32.vlgmr.msrb.gmra.mxu2 %vm724_vm3, %v5526_v39  ;;  %v3065_v53 = vsel %vm724_vm3, %v5526_v39, 0.0 }
 0x4d0   : > { %5529 = vpow2.f32 %v2759_v28  ;;  %5143 = vmatmul.msk.f32.vlgmr.msrb.gmra.mxu3 %vm724_vm3, %v7346_v17  ;;  %5161 = vmatpush.xpose.msk.msrb.mxu2 %vm433_vm2, %v8942_v42 }
 0x4d1   : > { %5531 = vpow2.f32 %v2747_v12  ;;  %5165 = vmatpush.xpose.msk.msrb.mxu3 %vm433_vm2, %v8943_v5  ;;  %3066 = vadd.xlane.f32.xlu0 %v3065_v53 }
 0x4d2   : > { %5533 = vpow2.f32 %v2755_v21  ;;  %v5406_v21 = vunpack.i.l.bf16 %v7282_v57 }
 0x4d3   : > { %v2694_v40 = vpop.xlane.xlu1 %2693  ;;  %v2712_v1 = vpop.xlane.xlu2 %2711 }
 0x4d4   : > { %5162 = vmatpush.xpose.msk.msrb.mxu2 %vm433_vm2, %v8944_v27  ;;  %v2730_v6 = vsub.f32 %v7235_v48, %v2694_v40  ;;  %v2709_v10 = vpop.xlane.xlu0 %2708  ;;  %4335 = vrot.lane.b32.xlu1 %v2154_v3, %s5870_s20  ;;  %v2736_v32 = vsub.f32 %v7247_v43, %v2712_v1  ;;  %v8946_v43 = vld [vmem:[#allocation54_spill] sm:$0xff] }
 0x4d5   : > { %5166 = vmatpush.xpose.msk.msrb.mxu3 %vm433_vm2, %v8945_v0  ;;  %v2735_v9 = vsub.f32 %v7231_v19, %v2709_v10  ;;  %v8949_v0 = vld [vmem:[#allocation59_spill] sm:$0xff] }
 0x4d6   : > { %v7364_v35 = vpop.eup %5529  ;;  %v2751_v59 = vmul.f32 1.442695, %v2730_v6  ;;  %v2763_v51 = vmul.f32 1.442695, %v2736_v32  ;;  %v5421_v32 = vunpack.i.l.bf16 %v7163_v49 }
 0x4d7   : > { %v5532_v25 = vpop.eup %5531  ;;  %v2761_v8 = vmul.f32 1.442695, %v2735_v9  ;;  %5146 = vmatmul.msk.f32.gmra.mxu0 %vm724_vm3, %v7364_v35 }
 0x4d8   : > { %v7368_v34 = vpop.eup %5533  ;;  %5535 = vpow2.f32 %v2751_v59  ;;  %5140 = vmatmul.msk.f32.gmra.mxu1 %vm724_vm3, %v5532_v25  ;;  %v3062_v48 = vsel %vm724_vm3, %v5532_v25, 0.0  ;;  %v8950_v25 = vld [vmem:[#allocation65_spill] sm:$0xff] }
 0x4d9   : > { %5144 = vmatmul.msk.f32.gmra.mxu3 %vm724_vm3, %v7368_v34  ;;  %3063 = vadd.xlane.f32.xlu0 %v3062_v48  ;;  %5537 = vpow2.f32 %v2761_v8  ;;  %v5416_v8 = vunpack.i.l.bf16 %v7155_v58  ;;  %v8952_v48 = vld [vmem:[#allocation56_spill] sm:$0xff] }
 0x4db   : > { %v2715_v19 = vpop.xlane.xlu1 %2714  ;;  %v2718_v39 = vpop.xlane.xlu2 %2717 }
 0x4dc   : > { %v2737_v14 = vsub.f32 %v7249_v11, %v2715_v19  ;;  %v2721_v23 = vpop.xlane.xlu0 %2720  ;;  %v5407_v11 = vunpack.i.h.bf16 %v7282_v57  ;;  %v2738_v3 = vsub.f32 %v7261_v63, %v2718_v39  ;;  %v8948_v57 = vld [vmem:[#allocation66_spill] sm:$0xff]  ;;  %v8953_v19 = vld [vmem:[#allocation60_spill] sm:$0xff]  ;;  %v3080_v39 = vsel %vm724_vm3, %v7364_v35, 0.0 }
 0x4dd   : > { %v2739_v28 = vsub.f32 %v7257_v41, %v2721_v23  ;;  %v8947_v41 = vld [vmem:[#allocation8_spill] sm:$0xff]  ;;  %v3071_v23 = vsel %vm724_vm3, %v7346_v17, 0.0  ;;  %v5436_v17 = vunpack.i.l.bf16 %v7159_v54 }
 0x4de   : > { %v5536_v12 = vpop.eup %5535  ;;  %v2765_v53 = vmul.f32 1.442695, %v2737_v14  ;;  %v2767_v1 = vmul.f32 1.442695, %v2738_v3  ;;  %v5422_v14 = vunpack.i.h.bf16 %v7163_v49  ;;  %v5432_v49 = vunpack.i.h.bf16 %v7287_v36 }
 0x4df   : > { %v2769_v37 = vmul.f32 1.442695, %v2739_v28  ;;  %5142 = vmatmul.msk.f32.gmra.mxu2 %vm724_vm3, %v5536_v12  ;;  %5155 = vmatmul.msk.f32.vlgmr.msrb.gmra.mxu0 %vm433_vm2, %v8946_v43  ;;  %v3068_v42 = vsel %vm724_vm3, %v5536_v12, 0.0  ;;  %v7382_v5 = vpop.eup %5537  ;;  %v5437_v28 = vunpack.i.h.bf16 %v7159_v54  ;;  %v5441_v12 = vunpack.i.l.bf16 %v7173_v47 }
 0x4e0   : > { %5539 = vpow2.f32 %v2765_v53  ;;  %3775 = vmatpush.msrb.mxu0 %v5406_v21  ;;  %3069 = vadd.xlane.f32.xlu2 %v3068_v42  ;;  %v3074_v54 = vsel %vm724_vm3, %v7368_v34, 0.0 }
 0x4e1   : > { %5541 = vpow2.f32 %v2763_v51  ;;  %5147 = vmatmul.msk.f32.vlgmr.msra.gmra.mxu1 %vm724_vm3, %v7382_v5  ;;  %v8956_v51 = vld [vmem:[#allocation64_spill] sm:$0xff] }
 0x4e2   : > { %5543 = vpow2.f32 %v2769_v37  ;;  %5173 = vmatpush.xpose.msk.msra.mxu1 %vm433_vm2, %v8947_v41  ;;  %3776 = vmatpush.msrb.mxu0 %v5407_v11 }
 0x4e3   : > { %v2724_v40 = vpop.xlane.xlu1 %2723  ;;  %5545 = vpow2.f32 %v2767_v1 }
 0x4e4   : > { %v2740_v27 = vsub.f32 %v7269_v46, %v2724_v40  ;;  %v7477_v37 = vpop.xlane.xlu0 %1111 }
 0x4e6   : > { %v7391_v6 = vpop.eup %5539  ;;  %5174 = vmatpush.xpose.msk.msra.mxu1 %vm433_vm2, %v8948_v57  ;;  %v2771_v10 = vmul.f32 1.442695, %v2740_v27 }
 0x4e7   : > { %v7395_v63 = vpop.eup %5541  ;;  %5149 = vmatmul.msk.f32.vlgmr.msra.gmra.mxu2 %vm724_vm3, %v7391_v6  ;;  %5156 = vmatmul.msk.f32.gmra.mxu0 %vm433_vm2, %v8949_v0 }
 0x4e8   : > { %v7401_v9 = vpop.eup %5543  ;;  %5177 = vmatpush.xpose.msk.msra.mxu2 %vm433_vm2, %v7229_v30  ;;  %5547 = vpow2.f32 %v2771_v10  ;;  %v5426_v30 = vunpack.i.l.bf16 %v7167_v20 }
 0x4e9   : > { %5148 = vmatmul.msk.f32.gmra.mxu1 %vm724_vm3, %v7395_v63  ;;  %5151 = vmatmul.msk.f32.vlgmr.msra.gmra.mxu3 %vm724_vm3, %v7401_v9  ;;  %v7415_v46 = vpop.eup %5545 }
 0x4ea   : > { %5181 = vmatpush.xpose.msk.msra.mxu3 %vm433_vm2, %v7259_v61  ;;  %v5427_v61 = vunpack.i.h.bf16 %v7167_v20  ;;  %v5417_v20 = vunpack.i.h.bf16 %v7155_v58  ;;  %v5431_v58 = vunpack.i.l.bf16 %v7287_v36  ;;  %v7473_v36 = vpop.xlane.xlu2 %1114 }
 0x4ec   : > { %5178 = vmatpush.xpose.msk.msra.mxu2 %vm433_vm2, %v7145_v31  ;;  %v5411_v31 = vunpack.i.l.bf16 %v7157_v45 }
 0x4ed   : > { %4337 = vrot.lane.b32.xlu0 %v7177_v52, %s5870_s20  ;;  %v8951_v52 = vld [vmem:[#allocation53_spill] sm:$0xff] }
 0x4ee   : > { %5182 = vmatpush.xpose.msk.msra.mxu3 %vm433_vm2, %v7151_v7  ;;  %v7420_v59 = vpop.eup %5547  ;;  %v5412_v7 = vunpack.i.h.bf16 %v7157_v45  ;;  %v8954_v45 = vld [vmem:[#allocation63_spill] sm:$0xff] }
 0x4ef   : > { %5150 = vmatmul.msk.f32.gmra.mxu2 %vm724_vm3, %v7415_v46  ;;  %5171 = vmatmul.msk.f32.vlgmr.msra.gmra.mxu0 %vm433_vm2, %v8950_v25 }
 0x4f0   : > { %3915 = vmatpush.msra.mxu0 %v5426_v30 }
 0x4f1   : > { %5152 = vmatmul.msk.f32.gmra.mxu3 %vm724_vm3, %v7420_v59  ;;  %5159 = vmatmul.msk.f32.vlgmr.msrb.gmra.mxu1 %vm433_vm2, %v8951_v52 }
 0x4f2   : > { %3810 = vmatpush.msrb.mxu1 %v5411_v31  ;;  %3916 = vmatpush.msra.mxu0 %v5427_v61  ;;  %v7480_v31 = vpop.xlane.xlu0 %2105 }
 0x4f3   : > { %8958 = vst [vmem:[#allocation38_spill] sm:$0xff] %v7480_v31 }
 0x4f4   : > { %3811 = vmatpush.msrb.mxu1 %v5412_v7 }
 0x4f7   : > { %5163 = vmatmul.msk.f32.vlgmr.msrb.gmra.mxu2 %vm433_vm2, %v8952_v48  ;;  %5172 = vmatmul.msk.f32.gmra.mxu0 %vm433_vm2, %v6976_v16  ;;  %v8955_v16 = vld [vmem:[#allocation58_spill] sm:$0xff] }
 0x4f8   : > { %3845 = vmatpush.msrb.mxu2 %v5416_v8 }
 0x4f9   : > { %5160 = vmatmul.msk.f32.gmra.mxu1 %vm433_vm2, %v8953_v19  ;;  %5167 = vmatmul.msk.f32.vlgmr.msrb.gmra.mxu3 %vm433_vm2, %v8954_v45 }
 0x4fa   : > { %3880 = vmatpush.msrb.mxu3 %v5421_v32  ;;  %3846 = vmatpush.msrb.mxu2 %v5417_v20 }
 0x4fc   : > { %3881 = vmatpush.msrb.mxu3 %v5422_v14 }
 0x4fe   : > { %3072 = vadd.xlane.f32.xlu1 %v3071_v23 }
 0x4ff   : > { %5164 = vmatmul.msk.f32.gmra.mxu2 %vm433_vm2, %v8955_v16 }
 0x501   : > { %5168 = vmatmul.msk.f32.gmra.mxu3 %vm433_vm2, %v8956_v51  ;;  %5175 = vmatmul.msk.f32.vlgmr.msra.gmra.mxu1 %vm433_vm2, %v7139_v15  ;;  %v5442_v15 = vunpack.i.h.bf16 %v7173_v47 }
 0x502   : > { %3950 = vmatpush.msra.mxu1 %v5431_v58 }
 0x504   : > { %3951 = vmatpush.msra.mxu1 %v5432_v49 }
 0x506   : > { %3081 = vadd.xlane.f32.xlu1 %v3080_v39 }
 0x507   : > { %5179 = vmatmul.msk.f32.vlgmr.msra.gmra.mxu2 %vm433_vm2, %v7245_v62 }
 0x508   : > { %3985 = vmatpush.msra.mxu2 %v5436_v17 }
 0x509   : > { %5176 = vmatmul.msk.f32.gmra.mxu1 %vm433_vm2, %v7147_v24  ;;  %5183 = vmatmul.msk.f32.vlgmr.msra.gmra.mxu3 %vm433_vm2, %v7153_v18  ;;  %v8957_v24 = vld [vmem:[#allocation43_spill] sm:$0xff] }
 0x50a   : > { %4020 = vmatpush.msra.mxu3 %v5441_v12  ;;  %3986 = vmatpush.msra.mxu2 %v5437_v28  ;;  %v1116_v18 = vsel %vm724_vm3, %v8957_v24, 0.0 }
 0x50c   : > { %4021 = vmatpush.msra.mxu3 %v5442_v15 }
 0x50f   : > { %5180 = vmatmul.msk.f32.gmra.mxu2 %vm433_vm2, %v7149_v13 }
 0x511   : > { %5184 = vmatmul.msk.f32.gmra.mxu3 %vm433_vm2, %v7271_v44 }
 0x517   : > { %3075 = vadd.xlane.f32.xlu0 %v3074_v54 }
 0x51f   : > { %1117 = vadd.xlane.f32.xlu0 %v1116_v18 }
 0x525   : > { %v3055_v47 = vpop.xlane.xlu2 %3054 }
 0x526   : > { %5549 = vrcp.f32 %v3055_v47  ;;  %v3112_v53 = vand.u32 2147483648, %v3055_v47  ;;  %v3110_v34 = vand.u32 2147483647, %v3055_v47  ;;  %vm3106_vm10 = vweird.f32 %v3055_v47 }
 0x528   : > { %v3113_v3 = vor.u32 1.1754944e-38, %v3112_v53  ;;  %vm3111_vm12 = vcmp.eq.f32.partialorder %v3110_v34, 8.507059e+37 }
 0x52c   : > { %v5550_v62 = vpop.eup %5549 }
 0x52d   : > { %v3102_v35 = vmul.f32 %v5550_v62, %v3055_v47  ;;  %vm3107_vm2 = vweird.f32 %v5550_v62 }
 0x52e   : > { %v3058_v21 = vpop.xlane.xlu2 %3057  ;;  %v2802_v11 = vpop.f32.mrf.mxu0  ;;  %vm3108_vm11 = vmor %vm3106_vm10, %vm3107_vm2 }
 0x52f   : > { %5551 = vrcp.f32 %v3058_v21  ;;  %v3103_v13 = vsub.f32 1.0, %v3102_v35  ;;  %v3127_v0 = vand.u32 2147483648, %v3058_v21  ;;  %v3125_v25 = vand.u32 2147483647, %v3058_v21 }
 0x530   : > { %vm3121_vm14 = vweird.f32 %v3058_v21 }
 0x531   : > { %v3104_v44 = vmul.f32 %v5550_v62, %v3103_v13  ;;  %v3128_v52 = vor.u32 1.1754944e-38, %v3127_v0  ;;  %vm3126_vm0 = vcmp.eq.f32.partialorder %v3125_v25, 8.507059e+37 }
 0x533   : > { %v3105_v43 = vadd.f32 %v5550_v62, %v3104_v44 }
 0x535   : > { %v5552_v42 = vpop.eup %5551  ;;  %v3109_v40 = vsel %vm3108_vm11, %v5550_v62, %v3105_v43 }
 0x536   : > { %v3117_v41 = vmul.f32 %v5552_v42, %v3058_v21  ;;  %v3114_v1 = vsel %vm3111_vm12, %v3113_v3, %v3109_v40  ;;  %vm3122_vm13 = vweird.f32 %v5552_v42  ;;  %v7486_v21 = vpop.xlane.xlu1 %2099 }
 0x537   : > { %v3061_v27 = vpop.xlane.xlu2 %3060  ;;  %v3115_v10 = vmul.f32 %v3114_v1, %v2802_v11  ;;  %vm3123_vm15 = vmor %vm3121_vm14, %vm3122_vm13  ;;  %v2805_v20 = vpop.f32.mrf.mxu0 }
 0x538   : > { %v3118_v57 = vsub.f32 1.0, %v3117_v41  ;;  %5553 = vrcp.f32 %v3061_v27  ;;  %v3142_v14 = vand.u32 2147483648, %v3061_v27  ;;  %v3140_v16 = vand.u32 2147483647, %v3061_v27 }
 0x539   : > { %4397 = vrot.lane.b32.xlu0 %v3115_v10, %s5871_s26  ;;  %vm3136_vm4 = vweird.f32 %v3061_v27 }
 0x53a   : > { %v3119_v30 = vmul.f32 %v5552_v42, %v3118_v57  ;;  %v3143_v49 = vor.u32 1.1754944e-38, %v3142_v14  ;;  %vm3141_vm6 = vcmp.eq.f32.partialorder %v3140_v16, 8.507059e+37 }
 0x53c   : > { %v3120_v61 = vadd.f32 %v5552_v42, %v3119_v30 }
 0x53e   : > { %v5554_v7 = vpop.eup %5553  ;;  %v3124_v8 = vsel %vm3123_vm15, %v5552_v42, %v3120_v61  ;;  %v7494_v41 = vpop.permute.xlu1 %4333 }
 0x53f   : > { %v3132_v48 = vmul.f32 %v5554_v7, %v3061_v27  ;;  %v3129_v32 = vsel %vm3126_vm0, %v3128_v52, %v3124_v8  ;;  %vm3137_vm1 = vweird.f32 %v5554_v7  ;;  %v7484_v54 = vpop.f32.mrf.mxu0 }
 0x540   : > { %v3130_v19 = vmul.f32 %v3129_v32, %v2805_v20  ;;  %vm3138_vm5 = vmor %vm3136_vm4, %vm3137_vm1  ;;  %v2837_v17 = vpop.f32.mrf.mxu1  ;;  %8959 = vst [vmem:[#allocation24_spill] sm:$0xff] %v7484_v54 }
 0x541   : > { %v3133_v45 = vsub.f32 1.0, %v3132_v48 }
 0x542   : > { %4399 = vrot.lane.b32.xlu2 %v3130_v19, %s5871_s26 }
 0x543   : > { %v3134_v23 = vmul.f32 %v5554_v7, %v3133_v45 }
 0x544   : > { %v3067_v58 = vpop.xlane.xlu0 %3066 }
 0x545   : > { %v3135_v51 = vadd.f32 %v5554_v7, %v3134_v23  ;;  %5555 = vrcp.f32 %v3067_v58  ;;  %v3172_v47 = vand.u32 2147483648, %v3067_v58  ;;  %v3170_v35 = vand.u32 2147483647, %v3067_v58 }
 0x546   : > { %vm3166_vm8 = vweird.f32 %v3067_v58  ;;  %v7500_v57 = vpop.xlane.xlu1 %2102 }
 0x547   : > { %v3139_v39 = vsel %vm3138_vm5, %v5554_v7, %v3135_v51  ;;  %v3173_v53 = vor.u32 1.1754944e-38, %v3172_v47  ;;  %vm3171_vm2 = vcmp.eq.f32.partialorder %v3170_v35, 8.507059e+37 }
 0x548   : > { %v3144_v28 = vsel %vm3141_vm6, %v3143_v49, %v3139_v39 }
 0x549   : > { %v3145_v12 = vmul.f32 %v3144_v28, %v2837_v17 }
 0x54b   : > { %v5556_v15 = vpop.eup %5555  ;;  %4401 = vrot.lane.b32.xlu1 %v3145_v12, %s5871_s26 }
 0x54c   : > { %v3162_v24 = vmul.f32 %v5556_v15, %v3067_v58  ;;  %vm3167_vm7 = vweird.f32 %v5556_v15  ;;  %v7536_v17 = vpop.xlane.xlu0 %3063 }
 0x54d   : > { %vm3168_vm9 = vmor %vm3166_vm8, %vm3167_vm7  ;;  %vm3151_vm5 = vweird.f32 %v7536_v17  ;;  %vm1154_vm8 = vweird.f32 %v7300_v29 }
 0x54e   : > { %v3163_v18 = vsub.f32 1.0, %v3162_v24  ;;  %v7512_v52 = vpop.permute.xlu1 %4335 }
 0x54f   : > { %8963 = vst [vmem:[#allocation23_spill] sm:$0xff] %v7512_v52 }
 0x550   : > { %v3164_v62 = vmul.f32 %v5556_v15, %v3163_v18 }
 0x552   : > { %v3165_v13 = vadd.f32 %v5556_v15, %v3164_v62  ;;  %v2872_v43 = vpop.f32.mrf.mxu2 }
 0x553   : > { %v2907_v40 = vpop.f32.mrf.mxu3 }
 0x554   : > { %v3169_v44 = vsel %vm3168_vm9, %v5556_v15, %v3165_v13  ;;  %v7488_v34 = vpop.f32.mrf.mxu0 }
 0x555   : > { %8960 = vst [vmem:[#allocation42_spill] sm:$0xff] %v7488_v34  ;;  %v3174_v42 = vsel %vm3171_vm2, %v3173_v53, %v3169_v44  ;;  %v7490_v11 = vpop.f32.mrf.mxu1 }
 0x556   : > { %v7492_v3 = vmul.f32 %v3174_v42, %v2872_v43 }
 0x55c   : > { %v7498_v27 = vpop.f32.mrf.mxu0  ;;  %v7506_v30 = vpop.f32.mrf.mxu3 }
 0x55d   : > { %v3653_v0 = vsel %vm724_vm3, %v7498_v27, -inf }
 0x55e   : > { %v7496_v1 = vpop.f32.mrf.mxu1 }
 0x55f   : > { %8961 = vst [vmem:[#allocation49_spill] sm:$0xff] %v7496_v1 }
 0x562   : > { %v7502_v10 = vpop.f32.mrf.mxu2 }
 0x563   : > { %3654 = vmax.xlane.f32.xlu0 %v3653_v0  ;;  %v7550_v0 = vpop.permute.xlu0 %4337 }
 0x564   : > { %v7510_v61 = vpop.f32.mrf.mxu0 }
 0x565   : > { %v3656_v23 = vsel %vm724_vm3, %v7510_v61, -inf }
 0x566   : > { %v7508_v25 = vpop.f32.mrf.mxu1 }
 0x567   : > { %8962 = vst [vmem:[#allocation15_spill] sm:$0xff] %v7508_v25 }
 0x56a   : > { %v7514_v7 = vpop.f32.mrf.mxu2 }
 0x56b   : > { %8964 = vst [vmem:[#allocation14_spill] sm:$0xff] %v7514_v7 }
 0x56c   : > { %v7516_v8 = vpop.f32.mrf.mxu3  ;;  %v7522_v19 = vpop.f32.mrf.mxu0 }
 0x56d   : > { %8965 = vst [vmem:[#allocation55_spill] sm:$0xff] %v7516_v8  ;;  %v3677_v58 = vsel %vm724_vm3, %v7522_v19, -inf }
 0x56e   : > { %v7518_v48 = vpop.f32.mrf.mxu1 }
 0x56f   : > { %v3659_v20 = vsel %vm724_vm3, %v7518_v48, -inf }
 0x570   : > { %3660 = vmax.xlane.f32.xlu2 %v3659_v20 }
 0x571   : > { %v3073_v32 = vpop.xlane.xlu1 %3072 }
 0x572   : > { %5557 = vrcp.f32 %v3073_v32  ;;  %v7524_v45 = vpop.f32.mrf.mxu2  ;;  %v3202_v15 = vand.u32 2147483648, %v3073_v32  ;;  %v3200_v62 = vand.u32 2147483647, %v3073_v32  ;;  %vm3196_vm11 = vweird.f32 %v3073_v32 }
 0x573   : > { %8966 = vst [vmem:[#allocation62_spill] sm:$0xff] %v7524_v45  ;;  %5559 = vrcp.f32 %v7536_v17 }
 0x574   : > { %v7526_v14 = vpop.f32.mrf.mxu3  ;;  %v7540_v24 = vpop.f32.mrf.mxu0  ;;  %v3203_v43 = vor.u32 1.1754944e-38, %v3202_v15  ;;  %vm3201_vm13 = vcmp.eq.f32.partialorder %v3200_v62, 8.507059e+37  ;;  %5561 = vrcp.f32 %v7300_v29 }
 0x575   : > { %8967 = vst [vmem:[#allocation57_spill] sm:$0xff] %v7526_v14  ;;  %3657 = vmax.xlane.f32.xlu1 %v3656_v23  ;;  %v3680_v53 = vsel %vm724_vm3, %v7540_v24, -inf }
 0x576   : > { %v7530_v16 = vpop.f32.mrf.mxu1 }
 0x577   : > { %v3662_v51 = vsel %vm724_vm3, %v7530_v16, -inf }
 0x578   : > { %v5558_v49 = vpop.eup %5557  ;;  %3678 = vmax.xlane.f32.xlu2 %v3677_v58  ;;  %3663 = vmax.xlane.f32.xlu0 %v3662_v51 }
 0x579   : > { %v3192_v39 = vmul.f32 %v5558_v49, %v3073_v32  ;;  %vm3197_vm10 = vweird.f32 %v5558_v49  ;;  %v5560_v62 = vpop.eup %5559 }
 0x57a   : > { %v7538_v28 = vpop.f32.mrf.mxu2  ;;  %vm3198_vm12 = vmor %vm3196_vm11, %vm3197_vm10  ;;  %vm3152_vm4 = vweird.f32 %v5560_v62  ;;  %vm4509_vm11 = vcmask 64512  }
 0x57b   : > { %v3193_v12 = vsub.f32 1.0, %v3192_v39  ;;  %v3665_v39 = vsel %vm724_vm3, %v7538_v28, -inf  ;;  %vm3153_vm7 = vmor %vm3151_vm5, %vm3152_vm4 }
 0x57c   : > { %v7542_v18 = vpop.f32.mrf.mxu3 }
 0x57d   : > { %v3194_v47 = vmul.f32 %v5558_v49, %v3193_v12  ;;  %v3671_v44 = vsel %vm724_vm3, %v7542_v18, -inf }
 0x57e   : > { %v7544_v35 = vpop.f32.mrf.mxu1 }
 0x57f   : > { %v3195_v13 = vadd.f32 %v5558_v49, %v3194_v47 }
 0x580   : > { %3681 = vmax.xlane.f32.xlu0 %v3680_v53  ;;  %3672 = vmax.xlane.f32.xlu2 %v3671_v44  ;;  %v7574_v53 = vpop.eup %5561 }
 0x581   : > { %v3199_v42 = vsel %vm3198_vm12, %v5558_v49, %v3195_v13  ;;  %v3683_v49 = vsel %vm724_vm3, %v7544_v35, -inf  ;;  %vm1155_vm6 = vweird.f32 %v7574_v53 }
 0x582   : > { %v7552_v20 = vpop.f32.mrf.mxu2  ;;  %v3204_v23 = vsel %vm3201_vm13, %v3203_v43, %v3199_v42  ;;  %v3147_v42 = vmul.f32 %v5560_v62, %v7536_v17  ;;  %vm1156_vm9 = vmor %vm1154_vm8, %vm1155_vm6  ;;  %vm2175_vm13 = vweird.f32 %v7292_v4 }
 0x583   : > { %v7554_v58 = vmul.f32 %v3204_v23, %v2907_v40  ;;  %v3668_v44 = vsel %vm724_vm3, %v7552_v20, -inf }
 0x584   : > { %v7556_v32 = vpop.f32.mrf.mxu3  ;;  %v3148_v45 = vsub.f32 1.0, %v3147_v42 }
 0x586   : > { %v7558_v51 = vpop.f32.mrf.mxu1  ;;  %v3149_v31 = vmul.f32 %v5560_v62, %v3148_v45 }
 0x587   : > { %v3686_v12 = vsel %vm724_vm3, %v7558_v51, -inf }
 0x588   : > { %3666 = vmax.xlane.f32.xlu0 %v3665_v39  ;;  %3687 = vmax.xlane.f32.xlu1 %v3686_v12  ;;  %v1150_v12 = vmul.f32 %v7574_v53, %v7300_v29 }
 0x589   : > { %3684 = vmax.xlane.f32.xlu2 %v3683_v49 }
 0x58a   : > { %v3076_v40 = vpop.xlane.xlu0 %3075  ;;  %v7568_v15 = vpop.f32.mrf.mxu2  ;;  %v1151_v1 = vsub.f32 1.0, %v1150_v12 }
 0x58b   : > { %5563 = vrcp.f32 %v3076_v40  ;;  %v3217_v7 = vand.u32 2147483648, %v3076_v40  ;;  %v3215_v25 = vand.u32 2147483647, %v3076_v40  ;;  %vm3211_vm15 = vweird.f32 %v3076_v40 }
 0x58c   : > { %v7570_v47 = vpop.f32.mrf.mxu3  ;;  %5565 = vrcp.f32 %v7292_v4  ;;  %v1152_v34 = vmul.f32 %v7574_v53, %v1151_v1  ;;  %v3689_v1 = vsel %vm724_vm3, %v7568_v15, -inf }
 0x58d   : > { %v3695_v13 = vsel %vm724_vm3, %v7570_v47, -inf  ;;  %v3218_v42 = vor.u32 1.1754944e-38, %v3217_v7  ;;  %vm3216_vm1 = vcmp.eq.f32.partialorder %v3215_v25, 8.507059e+37  ;;  %5567 = vrcp.f32 %v7298_v38 }
 0x58e   : > { %v3155_v7 = vand.u32 2147483647, %v7536_v17  ;;  %v1153_v25 = vadd.f32 %v7574_v53, %v1152_v34 }
 0x590   : > { %3696 = vmax.xlane.f32.xlu1 %v3695_v13  ;;  %vm3156_vm2 = vcmp.eq.f32.partialorder %v3155_v7, 8.507059e+37  ;;  %v1157_v34 = vsel %vm1156_vm9, %v7574_v53, %v1153_v25  ;;  %v8968_v53 = vld [vmem:[#allocation19_spill] sm:$0xff] }
 0x591   : > { %v5564_v43 = vpop.eup %5563  ;;  %3669 = vmax.xlane.f32.xlu2 %v3668_v44 }
 0x592   : > { %v3207_v23 = vmul.f32 %v5564_v43, %v3076_v40  ;;  %v7579_v39 = vpop.f32.mrf.mxu2  ;;  %vm3212_vm14 = vweird.f32 %v5564_v43  ;;  %v5566_v12 = vpop.eup %5565  ;;  %v3150_v40 = vadd.f32 %v5560_v62, %v3149_v31 }
 0x593   : > { %v3692_v8 = vsel %vm724_vm3, %v7579_v39, -inf  ;;  %vm3213_vm0 = vmor %vm3211_vm15, %vm3212_vm14  ;;  %v2171_v31 = vmul.f32 %v5566_v12, %v7292_v4  ;;  %vm2176_vm12 = vweird.f32 %v5566_v12 }
 0x594   : > { %v3208_v49 = vsub.f32 1.0, %v3207_v23  ;;  %v7583_v14 = vpop.f32.mrf.mxu3  ;;  %3693 = vmax.xlane.f32.xlu0 %v3692_v8  ;;  %v3674_v23 = vsel %vm724_vm3, %v7556_v32, -inf  ;;  %v3154_v45 = vsel %vm3153_vm7, %v5560_v62, %v3150_v40  ;;  %vm2177_vm14 = vmor %vm2175_vm13, %vm2176_vm12  ;;  %vm1199_vm7 = vweird.f32 %v7477_v37 }
 0x595   : > { %v3698_v44 = vsel %vm724_vm3, %v7583_v14, -inf }
 0x596   : > { %v3209_v13 = vmul.f32 %v5564_v43, %v3208_v49 }
 0x598   : > { %v3210_v54 = vadd.f32 %v5564_v43, %v3209_v13  ;;  %3699 = vmax.xlane.f32.xlu1 %v3698_v44  ;;  %v3157_v13 = vand.u32 2147483648, %v7536_v17 }
 0x599   : > { %3675 = vmax.xlane.f32.xlu2 %v3674_v23  ;;  %v7611_v23 = vpop.xlane.xlu0 %1117 }
 0x59a   : > { %v3214_v8 = vsel %vm3213_vm0, %v5564_v43, %v3210_v54  ;;  %v2107_v54 = vsel %vm724_vm3, %v7059_v60, 0.0  ;;  %v5568_v43 = vpop.eup %5567  ;;  %v1158_v60 = vand.u32 2147483647, %v7300_v29  ;;  %v3158_v17 = vor.u32 1.1754944e-38, %v3157_v13 }
 0x59b   : > { %v3219_v49 = vsel %vm3216_vm1, %v3218_v42, %v3214_v8  ;;  %v2172_v42 = vsub.f32 1.0, %v2171_v31  ;;  %v1180_v8 = vmul.f32 %v5568_v43, %v7298_v38  ;;  %vm1185_vm15 = vweird.f32 %v5568_v43 }
 0x59c   : > { %v7595_v52 = vmul.f32 %v3219_v49, %v7506_v30  ;;  %v1160_v30 = vand.u32 2147483648, %v7300_v29  ;;  %v3159_v44 = vsel %vm3156_vm2, %v3158_v17, %v3154_v45  ;;  %vm1159_vm10 = vcmp.eq.f32.partialorder %v1158_v60, 8.507059e+37 }
 0x59d   : > { %v3160_v40 = vmul.f32 %v3159_v44, %v7490_v11  ;;  %v2173_v29 = vmul.f32 %v5566_v12, %v2172_v42  ;;  %v1181_v13 = vsub.f32 1.0, %v1180_v8  ;;  %v2179_v45 = vand.u32 2147483647, %v7292_v4 }
 0x59e   : > { %v1161_v49 = vor.u32 1.1754944e-38, %v1160_v30  ;;  %v3086_v60 = vsel %vm724_vm3, %v7395_v63, 0.0  ;;  %v1190_v44 = vand.u32 2147483648, %v7298_v38  ;;  %vm1184_vm1 = vweird.f32 %v7298_v38 }
 0x59f   : > { %v2174_v31 = vadd.f32 %v5566_v12, %v2173_v29  ;;  %v1182_v30 = vmul.f32 %v5568_v43, %v1181_v13  ;;  %vm2180_vm0 = vcmp.eq.f32.partialorder %v2179_v45, 8.507059e+37  ;;  %v1188_v42 = vand.u32 2147483647, %v7298_v38  ;;  %vm1186_vm4 = vmor %vm1184_vm1, %vm1185_vm15 }
 0x5a0   : > { %2108 = vadd.xlane.f32.xlu1 %v2107_v54  ;;  %v1162_v62 = vsel %vm1159_vm10, %v1161_v49, %v1157_v34  ;;  %v3083_v54 = vsel %vm724_vm3, %v7382_v5, 0.0  ;;  %v2181_v5 = vand.u32 2147483648, %v7292_v4  ;;  %v7632_v4 = vpop.xlane.xlu1 %3081 }
 0x5a1   : > { %3690 = vmax.xlane.f32.xlu2 %v3689_v1  ;;  %v1163_v7 = vmul.f32 %v1162_v62, %v8968_v53  ;;  %v2178_v17 = vsel %vm2177_vm14, %v5566_v12, %v2174_v31  ;;  %v1183_v34 = vadd.f32 %v5568_v43, %v1182_v30  ;;  %v1191_v62 = vor.u32 1.1754944e-38, %v1190_v44  ;;  %v7642_v53 = vpop.xlane.xlu2 %3078 }
 0x5a2   : > { %vm1189_vm5 = vcmp.eq.f32.partialorder %v1188_v42, 8.507059e+37 }
 0x5a3   : > { %v4510_v25 = vsel %vm4509_vm11, %v1163_v7, %v7494_v41  ;;  %v2182_v41 = vor.u32 1.1754944e-38, %v2181_v5  ;;  %v1187_v49 = vsel %vm1186_vm4, %v5568_v43, %v1183_v34  ;;  %v8970_v43 = vld [vmem:[#allocation44_spill] sm:$0xff]  ;;  %v2110_v5 = vsel %vm724_vm3, %v7075_v2, 0.0 }
 0x5a4   : > { %v1192_v12 = vsel %vm1189_vm5, %v1191_v62, %v1187_v49  ;;  %v1119_v7 = vsel %vm724_vm3, %v8970_v43, 0.0 }
 0x5a5   : > { %v2183_v8 = vsel %vm2180_vm0, %v2182_v41, %v2178_v17 }
 0x5a6   : > { %v2184_v63 = vmul.f32 %v2183_v8, %v7175_v50 }
 0x5a8   : > { %4403 = vrot.lane.b32.xlu0 %v3160_v40, %s5871_s26  ;;  %v8969_v40 = vld [vmem:[#allocation11_spill] sm:$0xff] }
 0x5a9   : > { %3084 = vadd.xlane.f32.xlu2 %v3083_v54  ;;  %v1193_v54 = vmul.f32 %v1192_v12, %v8969_v40 }
 0x5ab   : > { %v4398_v1 = vpop.permute.xlu0 %4397  ;;  %v4512_v29 = vsel %vm4509_vm11, %v1193_v54, %v7550_v0 }
 0x5ac   : > { %v7622_v11 = vsel %vm724_vm3, %v4510_v25, %v4398_v1  ;;  %v7646_v25 = vpop.xlane.xlu2 %3069 }
 0x5ad   : > { %vm3181_vm2 = vweird.f32 %v7646_v25 }
 0x5b1   : > { %3087 = vadd.xlane.f32.xlu2 %v3086_v60 }
 0x5b4   : > { %v7649_v30 = vpop.permute.xlu2 %4399 }
 0x5b9   : > { %4339 = vrot.lane.b32.xlu1 %v2184_v63, %s5870_s20 }
 0x5bd   : > { %v4402_v13 = vpop.permute.xlu1 %4401 }
 0x5be   : > { %v7640_v38 = vsel %vm724_vm3, %v4512_v29, %v4402_v13 }
 0x5d2   : > { %1120 = vadd.xlane.f32.xlu0 %v1119_v7 }
 0x5d6   : > { %v3655_v50 = vpop.xlane.xlu0 %3654 }
 0x5d7   : > { %v3701_v1 = vsub.f32 %v7498_v27, %v3655_v50 }
 0x5d9   : > { %v3717_v31 = vmul.f32 1.442695, %v3701_v1 }
 0x5db   : > { %5569 = vpow2.f32 %v3717_v31 }
 0x5e1   : > { %v5570_v0 = vpop.eup %5569 }
 0x5e2   : > { %5185 = vmatmul.msk.f32.vlgmr.msrb.gmra.mxu0 %vm724_vm3, %v5570_v0  ;;  %v4029_v60 = vsel %vm724_vm3, %v5570_v0, 0.0 }
 0x5e3   : > { %v3661_v45 = vpop.xlane.xlu2 %3660  ;;  %2111 = vadd.xlane.f32.xlu1 %v2110_v5  ;;  %4030 = vadd.xlane.f32.xlu2 %v4029_v60 }
 0x5e4   : > { %v3703_v17 = vsub.f32 %v7518_v48, %v3661_v45 }
 0x5e6   : > { %v3721_v34 = vmul.f32 1.442695, %v3703_v17 }
 0x5e8   : > { %5571 = vpow2.f32 %v3721_v34  ;;  %v3658_v27 = vpop.xlane.xlu1 %3657 }
 0x5e9   : > { %v3702_v41 = vsub.f32 %v7510_v61, %v3658_v27 }
 0x5eb   : > { %v3719_v44 = vmul.f32 1.442695, %v3702_v41  ;;  %v3679_v42 = vpop.xlane.xlu2 %3678  ;;  %v3664_v8 = vpop.xlane.xlu0 %3663 }
 0x5ec   : > { %v3709_v49 = vsub.f32 %v7522_v19, %v3679_v42  ;;  %v3704_v2 = vsub.f32 %v7530_v16, %v3664_v8 }
 0x5ed   : > { %5573 = vpow2.f32 %v3719_v44 }
 0x5ee   : > { %v5572_v62 = vpop.eup %5571  ;;  %v3733_v63 = vmul.f32 1.442695, %v3709_v49  ;;  %v3723_v12 = vmul.f32 1.442695, %v3704_v2 }
 0x5ef   : > { %5187 = vmatmul.msk.f32.vlgmr.msrb.gmra.mxu1 %vm724_vm3, %v5572_v62  ;;  %v4035_v48 = vsel %vm724_vm3, %v5572_v62, 0.0 }
 0x5f0   : > { %5575 = vpow2.f32 %v3733_v63  ;;  %4036 = vadd.xlane.f32.xlu0 %v4035_v48 }
 0x5f1   : > { %5577 = vpow2.f32 %v3723_v12 }
 0x5f3   : > { %v5574_v40 = vpop.eup %5573  ;;  %v3673_v61 = vpop.xlane.xlu2 %3672 }
 0x5f4   : > { %v3682_v54 = vpop.xlane.xlu0 %3681  ;;  %v3707_v29 = vsub.f32 %v7542_v18, %v3673_v61  ;;  %5186 = vmatmul.msk.f32.gmra.mxu0 %vm724_vm3, %v5574_v40  ;;  %v4032_v16 = vsel %vm724_vm3, %v5574_v40, 0.0 }
 0x5f5   : > { %v3710_v19 = vsub.f32 %v7540_v24, %v3682_v54  ;;  %4033 = vadd.xlane.f32.xlu2 %v4032_v16 }
 0x5f6   : > { %v5576_v13 = vpop.eup %5575  ;;  %v3729_v43 = vmul.f32 1.442695, %v3707_v29 }
 0x5f7   : > { %v5578_v7 = vpop.eup %5577  ;;  %v3735_v50 = vmul.f32 1.442695, %v3710_v19  ;;  %v4053_v1 = vsel %vm724_vm3, %v5576_v13, 0.0 }
 0x5f8   : > { %5579 = vpow2.f32 %v3729_v43  ;;  %5188 = vmatmul.msk.f32.gmra.mxu1 %vm724_vm3, %v5578_v7  ;;  %4054 = vadd.xlane.f32.xlu0 %v4053_v1  ;;  %v4038_v0 = vsel %vm724_vm3, %v5578_v7, 0.0 }
 0x5f9   : > { %5581 = vpow2.f32 %v3735_v50 }
 0x5fb   : > { %v3688_v5 = vpop.xlane.xlu1 %3687 }
 0x5fc   : > { %v3667_v31 = vpop.xlane.xlu0 %3666  ;;  %v3685_v18 = vpop.xlane.xlu2 %3684  ;;  %5193 = vmatmul.msk.f32.vlgmr.msra.gmra.mxu0 %vm724_vm3, %v5576_v13  ;;  %v3712_v41 = vsub.f32 %v7558_v51, %v3688_v5 }
 0x5fd   : > { %v3705_v24 = vsub.f32 %v7538_v28, %v3667_v31  ;;  %v3711_v45 = vsub.f32 %v7544_v35, %v3685_v18  ;;  %4039 = vadd.xlane.f32.xlu2 %v4038_v0 }
 0x5fe   : > { %v5580_v60 = vpop.eup %5579  ;;  %v3739_v28 = vmul.f32 1.442695, %v3712_v41 }
 0x5ff   : > { %v3725_v17 = vmul.f32 1.442695, %v3705_v24  ;;  %v3737_v34 = vmul.f32 1.442695, %v3711_v45  ;;  %5191 = vmatmul.msk.f32.vlgmr.msrb.gmra.mxu3 %vm724_vm3, %v5580_v60  ;;  %v4047_v27 = vsel %vm724_vm3, %v5580_v60, 0.0  ;;  %v5582_v44 = vpop.eup %5581 }
 0x600   : > { %4048 = vadd.xlane.f32.xlu0 %v4047_v27  ;;  %v4056_v35 = vsel %vm724_vm3, %v5582_v44, 0.0 }
 0x601   : > { %5583 = vpow2.f32 %v3737_v34 }
 0x602   : > { %5585 = vpow2.f32 %v3725_v17  ;;  %v2113_v17 = vsel %vm724_vm3, %v7043_v55, 0.0  ;;  %v1203_v55 = vand.u32 2147483647, %v7477_v37 }
 0x603   : > { %5587 = vpow2.f32 %v3739_v28  ;;  %v3697_v63 = vpop.xlane.xlu1 %3696 }
 0x604   : > { %v3670_v42 = vpop.xlane.xlu2 %3669  ;;  %5194 = vmatmul.msk.f32.gmra.mxu0 %vm724_vm3, %v5582_v44  ;;  %v3715_v29 = vsub.f32 %v7570_v47, %v3697_v63  ;;  %vm1204_vm12 = vcmp.eq.f32.partialorder %v1203_v55, 8.507059e+37 }
 0x605   : > { %v3706_v8 = vsub.f32 %v7552_v20, %v3670_v42  ;;  %4057 = vadd.xlane.f32.xlu2 %v4056_v35 }
 0x606   : > { %v3745_v7 = vmul.f32 1.442695, %v3715_v29 }
 0x607   : > { %v5584_v49 = vpop.eup %5583  ;;  %v3727_v2 = vmul.f32 1.442695, %v3706_v8  ;;  %v3694_v1 = vpop.xlane.xlu0 %3693  ;;  %v3187_v8 = vand.u32 2147483648, %v7646_v25 }
 0x608   : > { %v5586_v62 = vpop.eup %5585  ;;  %5195 = vmatmul.msk.f32.vlgmr.msra.gmra.mxu1 %vm724_vm3, %v5584_v49  ;;  %v4059_v51 = vsel %vm724_vm3, %v5584_v49, 0.0  ;;  %v3714_v45 = vsub.f32 %v7579_v39, %v3694_v1 }
 0x609   : > { %5589 = vpow2.f32 %v3727_v2  ;;  %5189 = vmatmul.msk.f32.vlgmr.msrb.gmra.mxu2 %vm724_vm3, %v5586_v62  ;;  %4060 = vadd.xlane.f32.xlu0 %v4059_v51  ;;  %v4041_v48 = vsel %vm724_vm3, %v5586_v62, 0.0  ;;  %v5588_v40 = vpop.eup %5587  ;;  %v3185_v2 = vand.u32 2147483647, %v7646_v25 }
 0x60a   : > { %5591 = vrcp.f32 %v7477_v37  ;;  %v4062_v13 = vsel %vm724_vm3, %v5588_v40, 0.0  ;;  %v3743_v27 = vmul.f32 1.442695, %v3714_v45 }
 0x60b   : > { %5593 = vrcp.f32 %v7646_v25  ;;  %v3700_v18 = vpop.xlane.xlu1 %3699  ;;  %vm3186_vm13 = vcmp.eq.f32.partialorder %v3185_v2, 8.507059e+37 }
 0x60c   : > { %v3676_v12 = vpop.xlane.xlu2 %3675  ;;  %v3716_v60 = vsub.f32 %v7583_v14, %v3700_v18  ;;  %v1205_v14 = vand.u32 2147483648, %v7477_v37 }
 0x60d   : > { %v3708_v20 = vsub.f32 %v7556_v32, %v3676_v12  ;;  %4042 = vadd.xlane.f32.xlu2 %v4041_v48  ;;  %v3188_v48 = vor.u32 1.1754944e-38, %v3187_v8 }
 0x60e   : > { %v3747_v41 = vmul.f32 1.442695, %v3716_v60  ;;  %v1206_v51 = vor.u32 1.1754944e-38, %v1205_v14 }
 0x60f   : > { %v5590_v61 = vpop.eup %5589  ;;  %v3731_v54 = vmul.f32 1.442695, %v3708_v20 }
 0x610   : > { %5196 = vmatmul.msk.f32.gmra.mxu1 %vm724_vm3, %v5588_v40  ;;  %v4044_v19 = vsel %vm724_vm3, %v5590_v61, 0.0  ;;  %v5592_v16 = vpop.eup %5591  ;;  %v8971_v40 = vld [vmem:[#allocation13_spill] sm:$0xff] }
 0x611   : > { %5595 = vpow2.f32 %v3731_v54  ;;  %5190 = vmatmul.msk.f32.gmra.mxu2 %vm724_vm3, %v5590_v61  ;;  %4045 = vadd.xlane.f32.xlu1 %v4044_v19  ;;  %v5594_v43 = vpop.eup %5593  ;;  %v1195_v32 = vmul.f32 %v5592_v16, %v7477_v37  ;;  %vm1200_vm6 = vweird.f32 %v5592_v16 }
 0x612   : > { %4063 = vadd.xlane.f32.xlu0 %v4062_v13  ;;  %v3177_v31 = vmul.f32 %v5594_v43, %v7646_v25  ;;  %5597 = vpow2.f32 %v3745_v7  ;;  %vm3182_vm8 = vweird.f32 %v5594_v43  ;;  %vm1201_vm9 = vmor %vm1199_vm7, %vm1200_vm6  ;;  %v8973_v7 = vld [vmem:[#allocation51_spill] sm:$0xff] }
 0x613   : > { %v1196_v5 = vsub.f32 1.0, %v1195_v32  ;;  %v7706_v49 = vpop.xlane.xlu1 %2108  ;;  %vm3183_vm10 = vmor %vm3181_vm2, %vm3182_vm8  ;;  %v8972_v32 = vld [vmem:[#allocation46_spill] sm:$0xff] }
 0x614   : > { %v3691_v50 = vpop.xlane.xlu2 %3690  ;;  %v3178_v34 = vsub.f32 1.0, %v3177_v31 }
 0x615   : > { %v3713_v47 = vsub.f32 %v7568_v15, %v3691_v50  ;;  %v1197_v15 = vmul.f32 %v5592_v16, %v1196_v5  ;;  %v1125_v50 = vsel %vm724_vm3, %v8973_v7, 0.0 }
 0x616   : > { %v3179_v28 = vmul.f32 %v5594_v43, %v3178_v34 }
 0x617   : > { %v5596_v24 = vpop.eup %5595  ;;  %v3741_v0 = vmul.f32 1.442695, %v3713_v47  ;;  %v1198_v35 = vadd.f32 %v5592_v16, %v1197_v15 }
 0x618   : > { %5192 = vmatmul.msk.f32.gmra.mxu3 %vm724_vm3, %v5596_v24  ;;  %v7697_v44 = vpop.eup %5597  ;;  %v3180_v39 = vadd.f32 %v5594_v43, %v3179_v28  ;;  %v4050_v13 = vsel %vm724_vm3, %v5596_v24, 0.0 }
 0x619   : > { %5599 = vpow2.f32 %v3741_v0  ;;  %v1202_v62 = vsel %vm1201_vm9, %v5592_v16, %v1198_v35 }
 0x61a   : > { %2114 = vadd.xlane.f32.xlu0 %v2113_v17  ;;  %5601 = vpow2.f32 %v3743_v27  ;;  %v3184_v37 = vsel %vm3183_vm10, %v5594_v43, %v3180_v39  ;;  %v1207_v20 = vsel %vm1204_vm12, %v1206_v51, %v1202_v62  ;;  %v4404_v29 = vpop.permute.xlu0 %4403 }
 0x61b   : > { %5603 = vpow2.f32 %v3747_v41  ;;  %v3189_v25 = vsel %vm3186_vm13, %v3188_v48, %v3184_v37  ;;  %v1208_v61 = vmul.f32 %v1207_v20, %v8971_v40 }
 0x61c   : > { %v3190_v54 = vmul.f32 %v3189_v25, %v7502_v10  ;;  %v7727_v43 = vpop.xlane.xlu2 %3084  ;;  %v3089_v10 = vsel %vm724_vm3, %v7391_v6, 0.0  ;;  %v3092_v6 = vsel %vm724_vm3, %v7415_v46, 0.0 }
 0x61f   : > { %v5600_v42 = vpop.eup %5599 }
 0x620   : > { %5197 = vmatmul.msk.f32.vlgmr.msra.gmra.mxu2 %vm724_vm3, %v5600_v42  ;;  %5199 = vmatmul.msk.f32.vlgmr.msra.gmra.mxu3 %vm724_vm3, %v7697_v44  ;;  %v5602_v63 = vpop.eup %5601  ;;  %v4065_v47 = vsel %vm724_vm3, %v5600_v42, 0.0 }
 0x621   : > { %v7712_v12 = vpop.eup %5603  ;;  %v4068_v18 = vsel %vm724_vm3, %v5602_v63, 0.0 }
 0x624   : > { %v7735_v1 = vpop.xlane.xlu2 %3087 }
 0x625   : > { %4405 = vrot.lane.b32.xlu2 %v7492_v3, %s5871_s26 }
 0x628   : > { %5198 = vmatmul.msk.f32.gmra.mxu2 %vm724_vm3, %v5602_v63  ;;  %5200 = vmatmul.msk.f32.gmra.mxu3 %vm724_vm3, %v7712_v12 }
 0x62a   : > { %4341 = vrot.lane.b32.xlu1 %v7213_v56, %s5870_s20  ;;  %v1122_v56 = vsel %vm724_vm3, %v8972_v32, 0.0 }
 0x62b   : > { %v4340_v3 = vpop.permute.xlu1 %4339 }
 0x62c   : > { %v4513_v19 = vsel %vm4509_vm11, %v1208_v61, %v4340_v3 }
 0x62d   : > { %v7723_v16 = vsel %vm724_vm3, %v4513_v19, %v4404_v29 }
 0x62e   : > { %4407 = vrot.lane.b32.xlu0 %v3190_v54, %s5871_s26 }
 0x645   : > { %v7738_v31 = vpop.xlane.xlu0 %1120 }
 0x64e   : > { %4051 = vadd.xlane.f32.xlu2 %v4050_v13 }
 0x654   : > { %1123 = vadd.xlane.f32.xlu1 %v1122_v56 }
 0x656   : > { %3090 = vadd.xlane.f32.xlu2 %v3089_v10  ;;  %v7741_v24 = vpop.xlane.xlu2 %4030  ;;  %v7757_v62 = vpop.xlane.xlu1 %2111 }
 0x658   : > { %1126 = vadd.xlane.f32.xlu0 %v1125_v50 }
 0x65c   : > { %4066 = vadd.xlane.f32.xlu1 %v4065_v47 }
 0x65f   : > { %v7751_v34 = vpop.f32.mrf.mxu0 }
 0x660   : > { %4069 = vadd.xlane.f32.xlu0 %v4068_v18 }
 0x663   : > { %v7745_v0 = vpop.xlane.xlu0 %4036 }
 0x664   : > { %3093 = vadd.xlane.f32.xlu1 %v3092_v6 }
 0x668   : > { %v4034_v5 = vpop.xlane.xlu2 %4033 }
 0x669   : > { %5605 = vrcp.f32 %v4034_v5  ;;  %v4103_v41 = vand.u32 2147483648, %v4034_v5  ;;  %v4101_v46 = vand.u32 2147483647, %v4034_v5  ;;  %vm4097_vm15 = vweird.f32 %v4034_v5 }
 0x66b   : > { %v7753_v15 = vpop.xlane.xlu0 %4054  ;;  %v4104_v35 = vor.u32 1.1754944e-38, %v4103_v41  ;;  %vm4102_vm1 = vcmp.eq.f32.partialorder %v4101_v46, 8.507059e+37 }
 0x66e   : > { %4343 = vrot.lane.b32.xlu2 %v7185_v26, %s5870_s20 }
 0x66f   : > { %v5606_v45 = vpop.eup %5605 }
 0x670   : > { %v4093_v60 = vmul.f32 %v5606_v45, %v4034_v5  ;;  %v7749_v17 = vpop.xlane.xlu2 %4039  ;;  %vm4098_vm14 = vweird.f32 %v5606_v45 }
 0x671   : > { %vm4099_vm0 = vmor %vm4097_vm15, %vm4098_vm14  ;;  %v3781_v55 = vpop.f32.mrf.mxu0 }
 0x672   : > { %v4094_v27 = vsub.f32 1.0, %v4093_v60 }
 0x673   : > { %v4049_v2 = vpop.xlane.xlu0 %4048 }
 0x674   : > { %v4095_v28 = vmul.f32 %v5606_v45, %v4094_v27  ;;  %5607 = vrcp.f32 %v4049_v2  ;;  %vm4172_vm13 = vweird.f32 %v4049_v2 }
 0x676   : > { %v4096_v42 = vadd.f32 %v5606_v45, %v4095_v28 }
 0x678   : > { %v4100_v14 = vsel %vm4099_vm0, %v5606_v45, %v4096_v42  ;;  %v7755_v26 = vpop.xlane.xlu2 %4057 }
 0x679   : > { %v4105_v39 = vsel %vm4102_vm1, %v4104_v35, %v4100_v14  ;;  %v4178_v35 = vand.u32 2147483648, %v4049_v2  ;;  %vm4082_vm1 = vweird.f32 %v7741_v24 }
 0x67a   : > { %v4106_v8 = vmul.f32 %v4105_v39, %v3781_v55  ;;  %v5608_v63 = vpop.eup %5607  ;;  %v2116_v39 = vsel %vm724_vm3, %v7093_v33, 0.0 }
 0x67b   : > { %v4168_v20 = vmul.f32 %v5608_v63, %v4049_v2  ;;  %vm4173_vm10 = vweird.f32 %v5608_v63 }
 0x67c   : > { %4463 = vrot.lane.b32.xlu0 %v4106_v8, %s5872_s28  ;;  %v4176_v8 = vand.u32 2147483647, %v4049_v2  ;;  %vm4174_vm14 = vmor %vm4172_vm13, %vm4173_vm10  ;;  %vm4127_vm10 = vweird.f32 %v7749_v17 }
 0x67d   : > { %v4169_v3 = vsub.f32 1.0, %v4168_v20  ;;  %v4179_v20 = vor.u32 1.1754944e-38, %v4178_v35 }
 0x67e   : > { %vm4177_vm15 = vcmp.eq.f32.partialorder %v4176_v8, 8.507059e+37 }
 0x67f   : > { %v4170_v7 = vmul.f32 %v5608_v63, %v4169_v3 }
 0x680   : > { %v4043_v51 = vpop.xlane.xlu2 %4042 }
 0x681   : > { %5609 = vrcp.f32 %v4043_v51  ;;  %v4146_v54 = vand.u32 2147483647, %v4043_v51  ;;  %v4148_v29 = vand.u32 2147483648, %v4043_v51  ;;  %vm4142_vm5 = vweird.f32 %v4043_v51 }
 0x682   : > { %v4171_v46 = vadd.f32 %v5608_v63, %v4170_v7  ;;  %v3883_v33 = vpop.f32.mrf.mxu3 }
 0x683   : > { %vm4147_vm7 = vcmp.eq.f32.partialorder %v4146_v54, 8.507059e+37  ;;  %v4149_v50 = vor.u32 1.1754944e-38, %v4148_v29 }
 0x684   : > { %v4046_v37 = vpop.xlane.xlu1 %4045 }
 0x685   : > { %5611 = vrcp.f32 %v4046_v37  ;;  %v4163_v47 = vand.u32 2147483648, %v4046_v37  ;;  %v4161_v5 = vand.u32 2147483647, %v4046_v37  ;;  %vm4157_vm9 = vweird.f32 %v4046_v37 }
 0x686   : > { %5613 = vrcp.f32 %v7741_v24 }
 0x687   : > { %v5610_v48 = vpop.eup %5609  ;;  %v4164_v41 = vor.u32 1.1754944e-38, %v4163_v47  ;;  %vm4162_vm12 = vcmp.eq.f32.partialorder %v4161_v5, 8.507059e+37  ;;  %5615 = vrcp.f32 %v7745_v0  ;;  %v4118_v5 = vand.u32 2147483648, %v7745_v0 }
 0x688   : > { %v4138_v25 = vmul.f32 %v5610_v48, %v4043_v51  ;;  %vm4143_vm4 = vweird.f32 %v5610_v48  ;;  %5617 = vrcp.f32 %v7749_v17 }
 0x689   : > { %vm4144_vm6 = vmor %vm4142_vm5, %vm4143_vm4  ;;  %5619 = vrcp.f32 %v7296_v22 }
 0x68a   : > { %v4139_v40 = vsub.f32 1.0, %v4138_v25  ;;  %5621 = vrcp.f32 %v7486_v21 }
 0x68b   : > { %v5612_v61 = vpop.eup %5611 }
 0x68c   : > { %v4153_v19 = vmul.f32 %v5612_v61, %v4046_v37  ;;  %v3848_v13 = vpop.f32.mrf.mxu2  ;;  %v4140_v32 = vmul.f32 %v5610_v48, %v4139_v40  ;;  %vm4158_vm8 = vweird.f32 %v5612_v61  ;;  %v5614_v28 = vpop.eup %5613 }
 0x68d   : > { %vm4159_vm2 = vmor %vm4157_vm9, %vm4158_vm8  ;;  %v4078_v37 = vmul.f32 %v5614_v28, %v7741_v24  ;;  %vm4083_vm0 = vweird.f32 %v5614_v28 }
 0x68e   : > { %v4154_v56 = vsub.f32 1.0, %v4153_v19  ;;  %v4141_v10 = vadd.f32 %v5610_v48, %v4140_v32  ;;  %v4086_v32 = vand.u32 2147483647, %v7741_v24  ;;  %vm4084_vm4 = vmor %vm4082_vm1, %vm4083_vm0 }
 0x68f   : > { %v4079_v25 = vsub.f32 1.0, %v4078_v37  ;;  %v7788_v37 = vpop.permute.xlu2 %4405 }
 0x690   : > { %v4145_v18 = vsel %vm4144_vm6, %v5610_v48, %v4141_v10  ;;  %v4155_v6 = vmul.f32 %v5612_v61, %v4154_v56  ;;  %v4175_v48 = vsel %vm4174_vm14, %v5608_v63, %v4171_v46  ;;  %vm4087_vm5 = vcmp.eq.f32.partialorder %v4086_v32, 8.507059e+37  ;;  %v3813_v46 = vpop.f32.mrf.mxu1  ;;  %v8975_v32 = vld [vmem:[#allocation6_spill] sm:$0xff] }
 0x691   : > { %v4150_v45 = vsel %vm4147_vm7, %v4149_v50, %v4145_v18  ;;  %v4180_v40 = vsel %vm4177_vm15, %v4179_v20, %v4175_v48  ;;  %v4080_v3 = vmul.f32 %v5614_v28, %v4079_v25  ;;  %vm4112_vm7 = vweird.f32 %v7745_v0 }
 0x692   : > { %v4151_v60 = vmul.f32 %v4150_v45, %v3848_v13  ;;  %v4156_v27 = vadd.f32 %v5612_v61, %v4155_v6  ;;  %v4181_v2 = vmul.f32 %v4180_v40, %v3883_v33  ;;  %v4088_v13 = vand.u32 2147483648, %v7741_v24 }
 0x693   : > { %v4081_v63 = vadd.f32 %v5614_v28, %v4080_v3  ;;  %v4116_v24 = vand.u32 2147483647, %v7745_v0  ;;  %v2226_v25 = vand.u32 2147483648, %v7296_v22  ;;  %vm2220_vm15 = vweird.f32 %v7296_v22 }
 0x694   : > { %v4160_v42 = vsel %vm4159_vm2, %v5612_v61, %v4156_v27  ;;  %4469 = vrot.lane.b32.xlu0 %v4151_v60, %s5872_s28  ;;  %v3851_v14 = vpop.f32.mrf.mxu2  ;;  %v5616_v61 = vpop.eup %5615  ;;  %v4089_v7 = vor.u32 1.1754944e-38, %v4088_v13 }
 0x695   : > { %v4165_v55 = vsel %vm4162_vm12, %v4164_v41, %v4160_v42  ;;  %v4108_v54 = vmul.f32 %v5616_v61, %v7745_v0  ;;  %v5618_v19 = vpop.eup %5617  ;;  %vm4113_vm6 = vweird.f32 %v5616_v61  ;;  %vm4117_vm9 = vcmp.eq.f32.partialorder %v4116_v24, 8.507059e+37 }
 0x696   : > { %v4166_v51 = vmul.f32 %v4165_v55, %v3851_v14  ;;  %v4123_v10 = vmul.f32 %v5618_v19, %v7749_v17  ;;  %v5620_v6 = vpop.eup %5619  ;;  %vm4114_vm8 = vmor %vm4112_vm7, %vm4113_vm6  ;;  %vm4128_vm2 = vweird.f32 %v5618_v19  ;;  %v4131_v0 = vand.u32 2147483647, %v7749_v17 }
 0x697   : > { %2117 = vadd.xlane.f32.xlu2 %v2116_v39  ;;  %v4109_v29 = vsub.f32 1.0, %v4108_v54  ;;  %v2216_v60 = vmul.f32 %v5620_v6, %v7296_v22  ;;  %vm4129_vm12 = vmor %vm4127_vm10, %vm4128_vm2  ;;  %vm2221_vm14 = vweird.f32 %v5620_v6  ;;  %v5622_v33 = vpop.eup %5621  ;;  %v2227_v3 = vor.u32 1.1754944e-38, %v2226_v25 }
 0x698   : > { %4471 = vrot.lane.b32.xlu1 %v4166_v51, %s5872_s28  ;;  %v4124_v18 = vsub.f32 1.0, %v4123_v10  ;;  %vm4132_vm13 = vcmp.eq.f32.partialorder %v4131_v0, 8.507059e+37  ;;  %v3816_v40 = vpop.f32.mrf.mxu1  ;;  %vm2222_vm0 = vmor %vm2220_vm15, %vm2221_vm14  ;;  %v3095_v10 = vsel %vm724_vm3, %v7401_v9, 0.0  ;;  %v7806_v0 = vpop.xlane.xlu0 %4060  ;;  %vm4563_vm15 = vcmask 261120  }
 0x699   : > { %v4110_v56 = vmul.f32 %v5616_v61, %v4109_v29  ;;  %v2217_v35 = vsub.f32 1.0, %v2216_v60  ;;  %v2231_v29 = vmul.f32 %v5622_v33, %v7486_v21 }
 0x69a   : > { %v4125_v41 = vmul.f32 %v5618_v19, %v4124_v18  ;;  %v2241_v18 = vand.u32 2147483648, %v7486_v21 }
 0x69b   : > { %v4111_v47 = vadd.f32 %v5616_v61, %v4110_v56  ;;  %v2218_v39 = vmul.f32 %v5620_v6, %v2217_v35  ;;  %v2232_v56 = vsub.f32 1.0, %v2231_v29  ;;  %v8979_v29 = vld [vmem:[#allocation45_spill] sm:$0xff] }
 0x69c   : > { %4409 = vrot.lane.b32.xlu0 %v7554_v58, %s5871_s26  ;;  %v4085_v58 = vsel %vm4084_vm4, %v5614_v28, %v4081_v63  ;;  %v4119_v28 = vor.u32 1.1754944e-38, %v4118_v5  ;;  %v4126_v14 = vadd.f32 %v5618_v19, %v4125_v41  ;;  %vm2236_vm4 = vweird.f32 %v5622_v33 }
 0x69d   : > { %v4090_v50 = vsel %vm4087_vm5, %v4089_v7, %v4085_v58  ;;  %v4115_v27 = vsel %vm4114_vm8, %v5616_v61, %v4111_v47  ;;  %v2219_v20 = vadd.f32 %v5620_v6, %v2218_v39  ;;  %v2119_v58 = vsel %vm724_vm3, %v8975_v32, 0.0 }
 0x69e   : > { %v4091_v45 = vmul.f32 %v4090_v50, %v7751_v34  ;;  %v4120_v42 = vsel %vm4117_vm9, %v4119_v28, %v4115_v27  ;;  %v4133_v34 = vand.u32 2147483648, %v7749_v17  ;;  %v4130_v8 = vsel %vm4129_vm12, %v5618_v19, %v4126_v14  ;;  %v8974_v19 = vld [vmem:[#allocation7_spill] sm:$0xff]  ;;  %v8976_v28 = vld [vmem:[#allocation36_spill] sm:$0xff] }
 0x69f   : > { %v4121_v55 = vmul.f32 %v4120_v42, %v3813_v46  ;;  %v2224_v17 = vand.u32 2147483647, %v7296_v22  ;;  %v2233_v7 = vmul.f32 %v5622_v33, %v2232_v56  ;;  %vm2235_vm5 = vweird.f32 %v7486_v21 }
 0x6a0   : > { %4473 = vrot.lane.b32.xlu1 %v4181_v2, %s5872_s28  ;;  %v4134_v51 = vor.u32 1.1754944e-38, %v4133_v34  ;;  %v2223_v2 = vsel %vm2222_vm0, %v5620_v6, %v2219_v20  ;;  %v2239_v5 = vand.u32 2147483647, %v7486_v21  ;;  %vm2237_vm6 = vmor %vm2235_vm5, %vm2236_vm4  ;;  %v2242_v24 = vor.u32 1.1754944e-38, %v2241_v18  ;;  %v3886_v34 = vpop.f32.mrf.mxu3  ;;  %v7809_v39 = vpop.xlane.xlu0 %4063  ;;  %v4561_v20 = vld [vmem:[%s8765_s4 + $0x10] sm:$0xff] }
 0x6a1   : > { %vm2225_vm1 = vcmp.eq.f32.partialorder %v2224_v17, 8.507059e+37  ;;  %v2234_v47 = vadd.f32 %v5622_v33, %v2233_v7  ;;  %v4560_v17 = vld [vmem:[%s8765_s4 + $0x8] sm:$0xff]  ;;  %v3098_v18 = vsel %vm724_vm3, %v7420_v59, 0.0  ;;  %vm4542_vm0 = vcmask 195584  }
 0x6a2   : > { %v4135_v48 = vsel %vm4132_vm13, %v4134_v51, %v4130_v8  ;;  %v2228_v63 = vsel %vm2225_vm1, %v2227_v3, %v2223_v2  ;;  %vm2240_vm7 = vcmp.eq.f32.partialorder %v2239_v5, 8.507059e+37  ;;  %v8977_v8 = vld [vmem:[#allocation52_spill] sm:$0xff]  ;;  %v4559_v2 = vld [vmem:[%s8765_s4] sm:$0xff]  ;;  %vm2250_vm5 = vweird.f32 %v7500_v57 }
 0x6a3   : > { %v4136_v61 = vmul.f32 %v4135_v48, %v3816_v40  ;;  %v2229_v13 = vmul.f32 %v2228_v63, %v8974_v19  ;;  %v1128_v51 = vsel %vm724_vm3, %v8977_v8, 0.0  ;;  %v4562_v48 = vld [vmem:[%s8765_s4 + $0x18] sm:$0xff]  ;;  %v4071_v40 = vsel %vm724_vm3, %v7697_v44, 0.0 }
 0x6a4   : > { %4624 = vmatpush.msrb.mxu0 %v4562_v48  ;;  %v1131_v19 = vsel %vm724_vm3, %v8979_v29, 0.0  ;;  %v8982_v48 = vld [vmem:[#allocation31_spill] sm:$0xff] }
 0x6a6   : > { %4625 = vmatpush.msrb.mxu0 %v4561_v20 }
 0x6a8   : > { %v7819_v25 = vpop.xlane.xlu0 %2114  ;;  %4626 = vmatpush.msrb.mxu0 %v4560_v17 }
 0x6aa   : > { %4627 = vmatpush.msrb.mxu0 %v4559_v2  ;;  %v8983_v2 = vld [vmem:[#allocation23_spill] sm:$0xff] }
 0x6af   : > { %4461 = vrot.lane.b32.xlu2 %v4091_v45, %s5872_s28  ;;  %v2238_v45 = vsel %vm2237_vm6, %v5622_v33, %v2234_v47 }
 0x6b0   : > { %v2243_v27 = vsel %vm2240_vm7, %v2242_v24, %v2238_v45 }
 0x6b1   : > { %v2244_v46 = vmul.f32 %v2243_v27, %v8976_v28 }
 0x6b7   : > { %4465 = vrot.lane.b32.xlu2 %v4121_v55, %s5872_s28 }
 0x6bf   : > { %4467 = vrot.lane.b32.xlu2 %v4136_v61, %s5872_s28  ;;  %v8978_v61 = vld [vmem:[#allocation41_spill] sm:$0xff] }
 0x6c0   : > { %v1175_v5 = vand.u32 2147483648, %v8978_v61  ;;  %vm1169_vm13 = vweird.f32 %v8978_v61 }
 0x6c1   : > { %v4052_v54 = vpop.xlane.xlu2 %4051 }
 0x6c2   : > { %5623 = vrcp.f32 %v4052_v54  ;;  %v4193_v9 = vand.u32 2147483648, %v4052_v54  ;;  %vm4187_vm9 = vweird.f32 %v4052_v54  ;;  %v4191_v42 = vand.u32 2147483647, %v4052_v54 }
 0x6c3   : > { %5625 = vrcp.f32 %v8978_v61 }
 0x6c4   : > { %v4194_v14 = vor.u32 1.1754944e-38, %v4193_v9  ;;  %vm4192_vm10 = vcmp.eq.f32.partialorder %v4191_v42, 8.507059e+37  ;;  %5627 = vrcp.f32 %v7500_v57 }
 0x6c5   : > { %5629 = vrcp.f32 %v7753_v15 }
 0x6c6   : > { %2120 = vadd.xlane.f32.xlu0 %v2119_v58  ;;  %5631 = vrcp.f32 %v7632_v4 }
 0x6c7   : > { %4345 = vrot.lane.b32.xlu2 %v2229_v13, %s5870_s20  ;;  %5633 = vrcp.f32 %v7473_v36 }
 0x6c8   : > { %v5624_v22 = vpop.eup %5623  ;;  %5635 = vrcp.f32 %v7611_v23 }
 0x6c9   : > { %v4183_v50 = vmul.f32 %v5624_v22, %v4052_v54  ;;  %vm4188_vm8 = vweird.f32 %v5624_v22  ;;  %v7827_v33 = vpop.xlane.xlu2 %3090  ;;  %v5626_v3 = vpop.eup %5625  ;;  %5637 = vrcp.f32 %v7738_v31 }
 0x6ca   : > { %3096 = vadd.xlane.f32.xlu1 %v3095_v10  ;;  %vm4189_vm2 = vmor %vm4187_vm9, %vm4188_vm8  ;;  %v7832_v54 = vpop.permute.xlu0 %4407  ;;  %v1165_v44 = vmul.f32 %v5626_v3, %v8978_v61  ;;  %v7840_v13 = vpop.eup %5627  ;;  %vm1170_vm12 = vweird.f32 %v5626_v3  ;;  %vm4202_vm9 = vweird.f32 %v7753_v15  ;;  %5639 = vrcp.f32 %v7642_v53 }
 0x6cb   : > { %v4184_v6 = vsub.f32 1.0, %v4183_v50  ;;  %v2246_v56 = vmul.f32 %v7840_v13, %v7500_v57  ;;  %v7849_v7 = vpop.eup %5629  ;;  %v4074_v50 = vsel %vm724_vm3, %v7712_v12, 0.0  ;;  %v1173_v12 = vand.u32 2147483647, %v8978_v61  ;;  %vm7862_vm14 = vmor %vm1169_vm13, %vm1170_vm12 }
 0x6cc   : > { %v1166_v32 = vsub.f32 1.0, %v1165_v44  ;;  %v4198_v45 = vmul.f32 %v7849_v7, %v7753_v15  ;;  %vm2251_vm4 = vweird.f32 %v7840_v13  ;;  %vm4203_vm8 = vweird.f32 %v7849_v7 }
 0x6cd   : > { %v4185_v60 = vmul.f32 %v5624_v22, %v4184_v6  ;;  %v2247_v47 = vsub.f32 1.0, %v2246_v56  ;;  %vm1174_vm1 = vcmp.eq.f32.partialorder %v1173_v12, 8.507059e+37  ;;  %vm2252_vm6 = vmor %vm2250_vm5, %vm2251_vm4 }
 0x6ce   : > { %v4199_v9 = vsub.f32 1.0, %v4198_v45 }
 0x6cf   : > { %v4186_v41 = vadd.f32 %v5624_v22, %v4185_v60  ;;  %v2248_v59 = vmul.f32 %v7840_v13, %v2247_v47 }
 0x6d0   : > { %v4200_v8 = vmul.f32 %v7849_v7, %v4199_v9  ;;  %v3247_v9 = vand.u32 2147483648, %v7632_v4 }
 0x6d1   : > { %v4190_v35 = vsel %vm4189_vm2, %v5624_v22, %v4186_v41  ;;  %v7836_v63 = vpop.permute.xlu2 %4343  ;;  %v1167_v22 = vmul.f32 %v5626_v3, %v1166_v32  ;;  %v1176_v41 = vor.u32 1.1754944e-38, %v1175_v5  ;;  %v4208_v32 = vand.u32 2147483648, %v7753_v15  ;;  %vm4204_vm2 = vmor %vm4202_vm9, %vm4203_vm8  ;;  %v8984_v5 = vld [vmem:[#allocation40_spill] sm:$0xff] }
 0x6d2   : > { %v4195_v21 = vsel %vm4192_vm10, %v4194_v14, %v4190_v35  ;;  %v7843_v58 = vpop.xlane.xlu0 %1126  ;;  %v2249_v14 = vadd.f32 %v7840_v13, %v2248_v59  ;;  %v4201_v29 = vadd.f32 %v7849_v7, %v4200_v8  ;;  %vm1229_vm9 = vweird.f32 %v7611_v23 }
 0x6d3   : > { %v4196_v55 = vmul.f32 %v4195_v21, %v3886_v34  ;;  %v1168_v6 = vadd.f32 %v5626_v3, %v1167_v22  ;;  %v7881_v21 = vpop.permute.xlu1 %4341  ;;  %v2254_v34 = vand.u32 2147483647, %v7500_v57  ;;  %v4209_v59 = vor.u32 1.1754944e-38, %v4208_v32  ;;  %v8986_v32 = vld [vmem:[#allocation21_spill] sm:$0xff] }
 0x6d4   : > { %v2253_v17 = vsel %vm2252_vm6, %v7840_v13, %v2249_v14 }
 0x6d5   : > { %v1172_v27 = vsel %vm7862_vm14, %v5626_v3, %v1168_v6  ;;  %vm2255_vm7 = vcmp.eq.f32.partialorder %v2254_v34, 8.507059e+37  ;;  %vm3241_vm14 = vweird.f32 %v7632_v4  ;;  %v3245_v34 = vand.u32 2147483647, %v7632_v4 }
 0x6d7   : > { %vm3246_vm6 = vcmp.eq.f32.partialorder %v3245_v34, 8.507059e+37 }
 0x6da   : > { %4347 = vrot.lane.b32.xlu0 %v2244_v46, %s5870_s20  ;;  %v7867_v60 = vpop.xlane.xlu0 %4069  ;;  %v7873_v46 = vpop.eup %5631 }
 0x6db   : > { %v7877_v35 = vpop.eup %5633  ;;  %v7908_v47 = vpop.xlane.xlu1 %1123  ;;  %vm3242_vm13 = vweird.f32 %v7873_v46 }
 0x6dc   : > { %v7903_v13 = vpop.eup %5635  ;;  %vm1215_vm12 = vweird.f32 %v7877_v35  ;;  %vm3243_vm4 = vmor %vm3241_vm14, %vm3242_vm13  ;;  %vm1244_vm13 = vweird.f32 %v7738_v31 }
 0x6dd   : > { %v1225_v24 = vmul.f32 %v7903_v13, %v7611_v23  ;;  %vm1230_vm8 = vweird.f32 %v7903_v13 }
 0x6e3   : > { %4475 = vrot.lane.b32.xlu1 %v4196_v55, %s5872_s28  ;;  %v2256_v55 = vand.u32 2147483648, %v7500_v57 }
 0x6e5   : > { %v2257_v61 = vor.u32 1.1754944e-38, %v2256_v55 }
 0x6e7   : > { %v2258_v22 = vsel %vm2255_vm7, %v2257_v61, %v2253_v17 }
 0x6e8   : > { %v2259_v45 = vmul.f32 %v2258_v22, %v8984_v5  ;;  %v1250_v5 = vand.u32 2147483648, %v7738_v31 }
 0x6f0   : > { %1129 = vadd.xlane.f32.xlu2 %v1128_v51  ;;  %v1210_v51 = vmul.f32 %v7877_v35, %v7473_v36 }
 0x6f8   : > { %4072 = vadd.xlane.f32.xlu2 %v4071_v40  ;;  %v4464_v40 = vpop.permute.xlu0 %4463 }
 0x704   : > { %1132 = vadd.xlane.f32.xlu0 %v1131_v19  ;;  %v1211_v19 = vsub.f32 1.0, %v1210_v51  ;;  %v3248_v51 = vor.u32 1.1754944e-38, %v3247_v9 }
 0x706   : > { %v1212_v12 = vmul.f32 %v7877_v35, %v1211_v19 }
 0x70a   : > { %v7847_v10 = vpop.xlane.xlu2 %2117 }
 0x70c   : > { %4075 = vadd.xlane.f32.xlu0 %v4074_v50  ;;  %v4206_v50 = vand.u32 2147483647, %v7753_v15 }
 0x70d   : > { %3099 = vadd.xlane.f32.xlu1 %v3098_v18  ;;  %v4205_v18 = vsel %vm4204_vm2, %v7849_v7, %v4201_v29  ;;  %v1213_v7 = vadd.f32 %v7877_v35, %v1212_v12  ;;  %v1233_v29 = vand.u32 2147483647, %v7611_v23  ;;  %vm1231_vm2 = vmor %vm1229_vm9, %vm1230_vm8 }
 0x70e   : > { %vm4207_vm10 = vcmp.eq.f32.partialorder %v4206_v50, 8.507059e+37 }
 0x70f   : > { %v4210_v15 = vsel %vm4207_vm10, %v4209_v59, %v4205_v18  ;;  %v4470_v18 = vpop.permute.xlu0 %4469  ;;  %vm1234_vm10 = vcmp.eq.f32.partialorder %v1233_v29, 8.507059e+37  ;;  %v8988_v59 = vld [vmem:[#allocation25_spill] sm:$0xff] }
 0x710   : > { %4411 = vrot.lane.b32.xlu2 %v7595_v52, %s5871_s26  ;;  %v1177_v52 = vsel %vm1174_vm1, %v1176_v41, %v1172_v27  ;;  %v7918_v27 = vpop.eup %5637  ;;  %vm1214_vm1 = vweird.f32 %v7473_v36 }
 0x711   : > { %v1178_v20 = vmul.f32 %v1177_v52, %v8982_v48  ;;  %v1220_v52 = vand.u32 2147483648, %v7473_v36  ;;  %v1240_v8 = vmul.f32 %v7918_v27, %v7738_v31  ;;  %vm1216_vm5 = vmor %vm1214_vm1, %vm1215_vm12  ;;  %vm1245_vm12 = vweird.f32 %v7918_v27 }
 0x712   : > { %v4462_v28 = vpop.permute.xlu2 %4461  ;;  %vm1246_vm14 = vmor %vm1244_vm13, %vm1245_vm12  ;;  %vm2280_vm12 = vweird.f32 %v7706_v49 }
 0x713   : > { %v4543_v42 = vsel %vm4542_vm0, %v7622_v11, %v4462_v28  ;;  %v3237_v11 = vmul.f32 %v7873_v46, %v7632_v4  ;;  %v4511_v57 = vsel %vm4509_vm11, %v1178_v20, %v8983_v2  ;;  %v1226_v28 = vsub.f32 1.0, %v1225_v24  ;;  %v5640_v24 = vpop.eup %5639 }
 0x714   : > { %5201 = vmatmul.msk.f32.vlgmr.msrb.gmra.mxu0 %vm4563_vm15, %v4543_v42  ;;  %v4527_v44 = vsel %vm724_vm3, %v4511_v57, %v7649_v30  ;;  %v3918_v42 = vpop.f32.mrf.mxu0  ;;  %v1217_v20 = vsel %vm1216_vm5, %v7877_v35, %v1213_v7  ;;  %v1241_v17 = vsub.f32 1.0, %v1240_v8  ;;  %v1251_v7 = vor.u32 1.1754944e-38, %v1250_v5 }
 0x715   : > { %v3238_v3 = vsub.f32 1.0, %v3237_v11  ;;  %v4544_v56 = vsel %vm4542_vm0, %v4527_v44, %v4464_v40  ;;  %v4211_v55 = vmul.f32 %v4210_v15, %v3918_v42  ;;  %v1218_v11 = vand.u32 2147483647, %v7473_v36  ;;  %v8985_v44 = vld [vmem:[#allocation42_spill] sm:$0xff] }
 0x716   : > { %v1227_v48 = vmul.f32 %v7903_v13, %v1226_v28  ;;  %v1221_v40 = vor.u32 1.1754944e-38, %v1220_v52  ;;  %v1242_v19 = vmul.f32 %v7918_v27, %v1241_v17  ;;  %v3222_v28 = vmul.f32 %v5640_v24, %v7642_v53 }
 0x717   : > { %v3239_v30 = vmul.f32 %v7873_v46, %v3238_v3  ;;  %vm1219_vm7 = vcmp.eq.f32.partialorder %v1218_v11, 8.507059e+37  ;;  %vm3226_vm5 = vweird.f32 %v7642_v53 }
 0x718   : > { %v1222_v2 = vsel %vm1219_vm7, %v1221_v40, %v1217_v20  ;;  %v1228_v57 = vadd.f32 %v7903_v13, %v1227_v48  ;;  %v4410_v20 = vpop.permute.xlu0 %4409 }
 0x719   : > { %v3240_v41 = vadd.f32 %v7873_v46, %v3239_v30 }
 0x71a   : > { %v4466_v6 = vpop.permute.xlu2 %4465  ;;  %v1232_v22 = vsel %vm1231_vm2, %v7903_v13, %v1228_v57 }
 0x71b   : > { %v4545_v14 = vsel %vm4542_vm0, %v7640_v38, %v4466_v6  ;;  %v7937_v38 = vpop.xlane.xlu1 %4066  ;;  %v3244_v4 = vsel %vm3243_vm4, %v7873_v46, %v3240_v41  ;;  %v1235_v46 = vand.u32 2147483648, %v7611_v23  ;;  %v1243_v23 = vadd.f32 %v7918_v27, %v1242_v19  ;;  %v8987_v6 = vld [vmem:[#allocation38_spill] sm:$0xff] }
 0x71c   : > { %5202 = vmatmul.msk.f32.gmra.mxu0 %vm4563_vm15, %v4544_v56  ;;  %v3249_v61 = vsel %vm3246_vm6, %v3248_v51, %v3244_v4  ;;  %v1223_v56 = vmul.f32 %v1222_v2, %v8986_v32  ;;  %5641 = vrcp.f32 %v8987_v6  ;;  %v3223_v4 = vsub.f32 1.0, %v3222_v28 }
 0x71d   : > { %v3250_v35 = vmul.f32 %v3249_v61, %v8985_v44  ;;  %v1236_v50 = vor.u32 1.1754944e-38, %v1235_v46  ;;  %v1247_v41 = vsel %vm1246_vm14, %v7918_v27, %v1243_v23  ;;  %5643 = vrcp.f32 %v7706_v49 }
 0x71e   : > { %v3224_v40 = vmul.f32 %v5640_v24, %v3223_v4  ;;  %5645 = vrcp.f32 %v7755_v26  ;;  %vm3227_vm4 = vweird.f32 %v5640_v24  ;;  %v3230_v44 = vand.u32 2147483647, %v7642_v53 }
 0x71f   : > { %5647 = vrcp.f32 %v7727_v43  ;;  %vm3228_vm7 = vmor %vm3226_vm5, %vm3227_vm4  ;;  %vm2265_vm8 = vweird.f32 %v8987_v6  ;;  %v2271_v32 = vand.u32 2147483648, %v8987_v6  ;;  %v2284_v28 = vand.u32 2147483647, %v7706_v49 }
 0x720   : > { %4349 = vrot.lane.b32.xlu0 %v2259_v45, %s5870_s20  ;;  %v1237_v45 = vsel %vm1234_vm10, %v1236_v50, %v1232_v22  ;;  %5649 = vrcp.f32 %v7735_v1  ;;  %v3225_v2 = vadd.f32 %v5640_v24, %v3224_v40  ;;  %v2269_v50 = vand.u32 2147483647, %v8987_v6 }
 0x721   : > { %v1238_v15 = vmul.f32 %v1237_v45, %v8988_v59  ;;  %vm3231_vm2 = vcmp.eq.f32.partialorder %v3230_v44, 8.507059e+37  ;;  %5651 = vrcp.f32 %v7827_v33  ;;  %vm8049_vm14 = vcmp.eq.f32.partialorder %v2284_v28, 8.507059e+37 }
 0x722   : > { %v4468_v36 = vpop.permute.xlu2 %4467  ;;  %vm2270_vm10 = vcmp.eq.f32.partialorder %v2269_v50, 8.507059e+37  ;;  %5653 = vrcp.f32 %v7819_v25  ;;  %v4223_v44 = vand.u32 2147483648, %v7755_v26 }
 0x723   : > { %v4546_v3 = vsel %vm4542_vm0, %v7723_v16, %v4468_v36  ;;  %v4514_v16 = vsel %vm4509_vm11, %v1223_v56, %v7881_v21  ;;  %v7959_v30 = vpop.xlane.xlu1 %3093  ;;  %v1248_v21 = vand.u32 2147483647, %v7738_v31  ;;  %v4515_v9 = vsel %vm4509_vm11, %v1238_v15, %v7836_v63  ;;  %v8990_v63 = vld [vmem:[#allocation20_spill] sm:$0xff] }
 0x724   : > { %5203 = vmatmul.msk.f32.gmra.mxu0 %vm4563_vm15, %v4545_v14  ;;  %v4530_v12 = vsel %vm724_vm3, %v4514_v16, %v7788_v37  ;;  %v7975_v37 = vpop.eup %5641  ;;  %v8989_v14 = vld [vmem:[#allocation9_spill] sm:$0xff]  ;;  %v4531_v34 = vsel %vm724_vm3, %v4515_v9, %v7832_v54  ;;  %v3229_v56 = vsel %vm3228_vm7, %v5640_v24, %v3225_v2  ;;  %v8991_v16 = vld [vmem:[#allocation47_spill] sm:$0xff]  ;;  %v8994_v15 = vld [vmem:[#allocation24_spill] sm:$0xff]  ;;  %5655 = vrcp.f32 %v7908_v47 }
 0x725   : > { %v4547_v13 = vsel %vm4542_vm0, %v4530_v12, %v4470_v18  ;;  %vm1249_vm1 = vcmp.eq.f32.partialorder %v1248_v21, 8.507059e+37  ;;  %v2122_v52 = vsel %vm724_vm3, %v8989_v14, 0.0  ;;  %v2261_v27 = vmul.f32 %v7975_v37, %v8987_v6  ;;  %v7996_v57 = vpop.eup %5643 }
 0x726   : > { %4477 = vrot.lane.b32.xlu1 %v4211_v55, %s5872_s28  ;;  %v1252_v42 = vsel %vm1249_vm1, %v1251_v7, %v1247_v41  ;;  %v7999_v46 = vpop.eup %5645  ;;  %vm2266_vm6 = vweird.f32 %v7975_v37  ;;  %v1134_v22 = vsel %vm724_vm3, %v8991_v16, 0.0  ;;  %v2276_v18 = vmul.f32 %v7996_v57, %v7706_v49 }
 0x727   : > { %v1253_v8 = vmul.f32 %v1252_v42, %v8990_v63  ;;  %v2262_v48 = vsub.f32 1.0, %v2261_v27  ;;  %v4213_v23 = vmul.f32 %v7999_v46, %v7755_v26  ;;  %vm8018_vm9 = vmor %vm2265_vm8, %vm2266_vm6  ;;  %5657 = vrcp.f32 %v7757_v62  ;;  %v8996_v27 = vld [vmem:[#allocation48_spill] sm:$0xff]  ;;  %v8997_v63 = vld [vmem:[#allocation37_spill] sm:$0xff] }
 0x728   : > { %v2277_v24 = vsub.f32 1.0, %v2276_v18  ;;  %vm2281_vm13 = vweird.f32 %v7996_v57  ;;  %5659 = vrcp.f32 %v7806_v0  ;;  %vm3256_vm1 = vweird.f32 %v7727_v43 }
 0x729   : > { %v2263_v17 = vmul.f32 %v7975_v37, %v2262_v48  ;;  %v4214_v59 = vsub.f32 1.0, %v4213_v23  ;;  %5661 = vrcp.f32 %v7937_v38  ;;  %vm4218_vm5 = vweird.f32 %v7999_v46  ;;  %vm8078_vm7 = vmor %vm2280_vm12, %vm2281_vm13 }
 0x72a   : > { %v4346_v55 = vpop.permute.xlu2 %4345  ;;  %vm4217_vm8 = vweird.f32 %v7755_v26  ;;  %v3277_v18 = vand.u32 2147483648, %v7735_v1  ;;  %5663 = vrcp.f32 %v7847_v10  ;;  %vm3271_vm12 = vweird.f32 %v7735_v1 }
 0x72b   : > { %v4472_v31 = vpop.permute.xlu1 %4471  ;;  %v4516_v51 = vsel %vm4509_vm11, %v1253_v8, %v4346_v55  ;;  %v2264_v29 = vadd.f32 %v7975_v37, %v2263_v17  ;;  %v4215_v14 = vmul.f32 %v7999_v46, %v4214_v59  ;;  %5665 = vrcp.f32 %v7959_v30 }
 0x72c   : > { %5204 = vmatmul.msk.f32.gmra.mxu0 %vm4563_vm15, %v4546_v3  ;;  %v4548_v11 = vsel %vm4542_vm0, %v4531_v34, %v4472_v31  ;;  %v4532_v54 = vsel %vm724_vm3, %v4516_v51, %v4410_v20  ;;  %v3232_v3 = vand.u32 2147483648, %v7642_v53  ;;  %v2286_v31 = vand.u32 2147483648, %v7706_v49  ;;  %v9011_v51 = vld [vmem:[#allocation49_spill] sm:$0xff] }
 0x72d   : > { %v2268_v21 = vsel %vm8018_vm9, %v7975_v37, %v2264_v29  ;;  %v2278_v37 = vmul.f32 %v7996_v57, %v2277_v24  ;;  %v4216_v2 = vadd.f32 %v7999_v46, %v4215_v14  ;;  %5667 = vrcp.f32 %v7809_v39 }
 0x72e   : > { %4415 = vrot.lane.b32.xlu1 %v3250_v35, %s5871_s26  ;;  %v8003_v35 = vpop.eup %5647  ;;  %v3233_v53 = vor.u32 1.1754944e-38, %v3232_v3  ;;  %v2287_v48 = vor.u32 1.1754944e-38, %v2286_v31 }
 0x72f   : > { %v8007_v19 = vpop.eup %5649  ;;  %v3252_v45 = vmul.f32 %v8003_v35, %v7727_v43  ;;  %vm3257_vm4 = vweird.f32 %v8003_v35 }
 0x730   : > { %v3234_v12 = vsel %vm3231_vm2, %v3233_v53, %v3229_v56  ;;  %v3267_v6 = vmul.f32 %v8007_v19, %v7735_v1  ;;  %v8046_v4 = vpop.eup %5651  ;;  %vm3272_vm6 = vweird.f32 %v8007_v19  ;;  %vm8092_vm2 = vmor %vm4217_vm8, %vm4218_vm5  ;;  %v3292_v56 = vand.u32 2147483648, %v7827_v33 }
 0x731   : > { %v3235_v41 = vmul.f32 %v3234_v12, %v8994_v15  ;;  %v3253_v7 = vsub.f32 1.0, %v3252_v45  ;;  %v8055_v40 = vpop.eup %5653  ;;  %v3282_v29 = vmul.f32 %v8046_v4, %v7827_v33  ;;  %v3275_v45 = vand.u32 2147483647, %v7735_v1  ;;  %vm8122_vm13 = vmor %vm3271_vm12, %vm3272_vm6 }
 0x732   : > { %v3268_v42 = vsub.f32 1.0, %v3267_v6  ;;  %v8061_v17 = vpop.eup %5655  ;;  %v2306_v50 = vmul.f32 %v8055_v40, %v7819_v25  ;;  %v4220_v12 = vsel %vm8092_vm2, %v7999_v46, %v4216_v2  ;;  %vm3287_vm5 = vweird.f32 %v8046_v4 }
 0x733   : > { %v4474_v36 = vpop.permute.xlu1 %4473  ;;  %v3254_v55 = vmul.f32 %v8003_v35, %v3253_v7  ;;  %v1255_v23 = vmul.f32 %v8061_v17, %v7908_v47  ;;  %v3283_v24 = vsub.f32 1.0, %v3282_v29  ;;  %vm2311_vm6 = vweird.f32 %v8055_v40 }
 0x734   : > { %5205 = vmatmul.msk.f32.gmra.mxu0 %vm4563_vm15, %v4547_v13  ;;  %v4549_v61 = vsel %vm4542_vm0, %v4532_v54, %v4474_v36  ;;  %v2272_v13 = vor.u32 1.1754944e-38, %v2271_v32  ;;  %v3269_v20 = vmul.f32 %v8007_v19, %v3268_v42  ;;  %v3260_v54 = vand.u32 2147483647, %v7727_v43  ;;  %v8072_v32 = vpop.eup %5657 }
 0x735   : > { %v3262_v36 = vand.u32 2147483648, %v7727_v43  ;;  %v3255_v3 = vadd.f32 %v8003_v35, %v3254_v55  ;;  %v2291_v1 = vmul.f32 %v8072_v32, %v7757_v62  ;;  %vm1260_vm8 = vweird.f32 %v8061_v17 }
 0x736   : > { %v2273_v9 = vsel %vm2270_vm10, %v2272_v13, %v2268_v21  ;;  %v3270_v16 = vadd.f32 %v8007_v19, %v3269_v20  ;;  %vm8087_vm9 = vcmp.eq.f32.partialorder %v3260_v54, 8.507059e+37  ;;  %vm8105_vm10 = vmor %vm3256_vm1, %vm3257_vm4  ;;  %v4224_v13 = vor.u32 1.1754944e-38, %v4223_v44 }
 0x737   : > { %v2274_v8 = vmul.f32 %v2273_v9, %v8997_v63  ;;  %v3259_v46 = vsel %vm8105_vm10, %v8003_v35, %v3255_v3  ;;  %v3263_v59 = vor.u32 1.1754944e-38, %v3262_v36  ;;  %v1256_v9 = vsub.f32 1.0, %v1255_v23  ;;  %v9010_v63 = vld [vmem:[#allocation29_spill] sm:$0xff] }
 0x738   : > { %v3274_v15 = vsel %vm8122_vm13, %v8007_v19, %v3270_v16  ;;  %vm3276_vm4 = vcmp.eq.f32.partialorder %v3275_v45, 8.507059e+37  ;;  %v2292_v14 = vsub.f32 1.0, %v2291_v1  ;;  %v3921_v19 = vpop.f32.mrf.mxu0  ;;  %vm2310_vm2 = vweird.f32 %v7819_v25 }
 0x739   : > { %2123 = vadd.xlane.f32.xlu2 %v2122_v52  ;;  %v8995_v52 = vld [vmem:[#allocation50_spill] sm:$0xff]  ;;  %v3264_v42 = vsel %vm8087_vm9, %v3263_v59, %v3259_v46  ;;  %vm3286_vm9 = vweird.f32 %v7827_v33  ;;  %v8180_v5 = vpop.xlane.xlu0 %2120  ;;  %vm8186_vm12 = vmor %vm2310_vm2, %vm2311_vm6  ;;  %vm1259_vm13 = vweird.f32 %v7908_v47  ;;  %v2314_v1 = vand.u32 2147483647, %v7819_v25 }
 0x73a   : > { %v1140_v34 = vsel %vm724_vm3, %v8995_v52, 0.0  ;;  %v3284_v52 = vmul.f32 %v8046_v4, %v3283_v24  ;;  %v8157_v3 = vmul.f32 %v8072_v32, %v2292_v14  ;;  %vm8175_vm10 = vmor %vm3286_vm9, %vm3287_vm5  ;;  %v1263_v24 = vand.u32 2147483647, %v7908_v47 }
 0x73b   : > { %v3293_v46 = vor.u32 1.1754944e-38, %v3292_v56  ;;  %5669 = vrcp.f32 %v8180_v5  ;;  %vm2315_vm6 = vcmp.eq.f32.partialorder %v2314_v1, 8.507059e+37  ;;  %vm4262_vm9 = vweird.f32 %v7937_v38 }
 0x73c   : > { %5206 = vmatmul.msk.f32.gmra.mxu0 %vm4563_vm15, %v4548_v11  ;;  %v1137_v11 = vsel %vm724_vm3, %v8996_v27, 0.0  ;;  %v3285_v44 = vadd.f32 %v8046_v4, %v3284_v52  ;;  %v9021_v52 = vld [vmem:[#allocation14_spill] sm:$0xff] }
 0x73d   : > { %v8233_v14 = vpop.xlane.xlu1 %3096 }
 0x73e   : > { %v3289_v43 = vsel %vm8175_vm10, %v8046_v4, %v3285_v44  ;;  %5671 = vrcp.f32 %v8233_v14 }
 0x744   : > { %5207 = vmatmul.msk.f32.gmra.mxu0 %vm4563_vm15, %v4549_v61  ;;  %v2279_v61 = vadd.f32 %v7996_v57, %v2278_v37 }
 0x746   : > { %v2283_v6 = vsel %vm8078_vm7, %v7996_v57, %v2279_v61  ;;  %v2307_v57 = vsub.f32 1.0, %v2306_v50  ;;  %v9012_v61 = vld [vmem:[#allocation15_spill] sm:$0xff]  ;;  %vm4232_vm7 = vweird.f32 %v7806_v0  ;;  %v3290_v50 = vand.u32 2147483647, %v7827_v33 }
 0x747   : > { %v2288_v28 = vsel %vm8049_vm14, %v2287_v48, %v2283_v6  ;;  %v8150_v48 = vmul.f32 %v3264_v42, %v9011_v51  ;;  %v2316_v33 = vand.u32 2147483648, %v7819_v25  ;;  %v1265_v6 = vand.u32 2147483648, %v7908_v47 }
 0x748   : > { %v2308_v27 = vmul.f32 %v8055_v40, %v2307_v57 }
 0x74a   : > { %1135 = vadd.xlane.f32.xlu0 %v1134_v22  ;;  %v4221_v22 = vand.u32 2147483647, %v7755_v26  ;;  %v8099_v26 = vpop.eup %5659  ;;  %v2309_v29 = vadd.f32 %v8055_v40, %v2308_v27 }
 0x74b   : > { %v8118_v21 = vpop.eup %5661  ;;  %v4228_v31 = vmul.f32 %v8099_v26, %v7806_v0  ;;  %vm4233_vm14 = vweird.f32 %v8099_v26 }
 0x74c   : > { %vm4222_vm1 = vcmp.eq.f32.partialorder %v4221_v22, 8.507059e+37  ;;  %v4258_v35 = vmul.f32 %v8118_v21, %v7937_v38  ;;  %v8142_v37 = vpop.eup %5663  ;;  %v2313_v59 = vsel %vm8186_vm12, %v8055_v40, %v2309_v29  ;;  %vm4263_vm5 = vweird.f32 %v8118_v21  ;;  %vm8240_vm10 = vmor %vm4232_vm7, %vm4233_vm14  ;;  %v4348_v56 = vpop.permute.xlu0 %4347 }
 0x74d   : > { %v4225_v7 = vsel %vm4222_vm1, %v4224_v13, %v4220_v12  ;;  %v4229_v20 = vsub.f32 1.0, %v4228_v31  ;;  %v2321_v36 = vmul.f32 %v8142_v37, %v7847_v10  ;;  %v8182_v45 = vpop.eup %5665  ;;  %vm8200_vm1 = vmor %vm1259_vm13, %vm1260_vm8  ;;  %vm1264_vm8 = vcmp.eq.f32.partialorder %v1263_v24, 8.507059e+37 }
 0x74e   : > { %v4226_v55 = vmul.f32 %v4225_v7, %v3921_v19  ;;  %v4259_v54 = vsub.f32 1.0, %v4258_v35  ;;  %v8213_v4 = vpop.eup %5667  ;;  %v3297_v47 = vmul.f32 %v8182_v45, %v7959_v30  ;;  %v2317_v7 = vor.u32 1.1754944e-38, %v2316_v33  ;;  %vm8229_vm2 = vmor %vm4262_vm9, %vm4263_vm5 }
 0x74f   : > { %v4230_v53 = vmul.f32 %v8099_v26, %v4229_v20  ;;  %v2322_v23 = vsub.f32 1.0, %v2321_v36  ;;  %v4238_v35 = vand.u32 2147483648, %v7806_v0  ;;  %vm2326_vm12 = vweird.f32 %v8142_v37 }
 0x750   : > { %v4260_v49 = vmul.f32 %v8118_v21, %v4259_v54  ;;  %v3298_v27 = vsub.f32 1.0, %v3297_v47  ;;  %v4236_v20 = vand.u32 2147483647, %v7806_v0  ;;  %v2331_v36 = vand.u32 2147483648, %v7847_v10  ;;  %v9027_v0 = vld [vmem:[#allocation5_spill] sm:$0xff] }
 0x751   : > { %4413 = vrot.lane.b32.xlu2 %v3235_v41, %s5871_s26  ;;  %v3278_v41 = vor.u32 1.1754944e-38, %v3277_v18  ;;  %vm2325_vm7 = vweird.f32 %v7847_v10  ;;  %v4243_v44 = vmul.f32 %v8213_v4, %v7809_v39  ;;  %v2294_v12 = vadd.f32 %v8072_v32, %v8157_v3 }
 0x752   : > { %1141 = vadd.xlane.f32.xlu0 %v1140_v34  ;;  %v4261_v57 = vadd.f32 %v8118_v21, %v4260_v49  ;;  %vm8262_vm13 = vmor %vm2325_vm7, %vm2326_vm12  ;;  %v2301_v49 = vand.u32 2147483648, %v7757_v62  ;;  %v2299_v47 = vand.u32 2147483647, %v7757_v62  ;;  %vm4248_vm7 = vweird.f32 %v8213_v4 }
 0x753   : > { %v3279_v34 = vsel %vm3276_vm4, %v3278_v41, %v3274_v15  ;;  %vm3291_vm4 = vcmp.eq.f32.partialorder %v3290_v50, 8.507059e+37  ;;  %v2323_v15 = vmul.f32 %v8142_v37, %v2322_v23  ;;  %v4231_v41 = vadd.f32 %v8099_v26, %v4230_v53 }
 0x754   : > { %v3280_v2 = vmul.f32 %v3279_v34, %v9012_v61  ;;  %v3294_v40 = vsel %vm3291_vm4, %v3293_v46, %v3289_v43  ;;  %v2329_v61 = vand.u32 2147483647, %v7847_v10  ;;  %v4239_v50 = vor.u32 1.1754944e-38, %v4238_v35 }
 0x755   : > { %v3295_v34 = vmul.f32 %v3294_v40, %v9021_v52  ;;  %v4235_v51 = vsel %vm8240_vm10, %v8099_v26, %v4231_v41  ;;  %v3299_v53 = vmul.f32 %v8182_v45, %v3298_v27  ;;  %vm4237_vm4 = vcmp.eq.f32.partialorder %v4236_v20, 8.507059e+37  ;;  %v4476_v13 = vpop.permute.xlu1 %4475 }
 0x756   : > { %v2332_v23 = vor.u32 1.1754944e-38, %v2331_v36  ;;  %v4240_v33 = vsel %vm4237_vm4, %v4239_v50, %v4235_v51  ;;  %vm2330_vm5 = vcmp.eq.f32.partialorder %v2329_v61, 8.507059e+37  ;;  %v3307_v40 = vand.u32 2147483648, %v7959_v30 }
 0x757   : > { %vm2300_vm12 = vcmp.eq.f32.partialorder %v2299_v47, 8.507059e+37  ;;  %v2346_v20 = vand.u32 2147483648, %v8180_v5 }
 0x758   : > { %1138 = vadd.xlane.f32.xlu1 %v1137_v11  ;;  %v1257_v11 = vmul.f32 %v8061_v17, %v1256_v9  ;;  %v1266_v9 = vor.u32 1.1754944e-38, %v1265_v6  ;;  %v3988_v6 = vpop.f32.mrf.mxu2 }
 0x759   : > { %4351 = vrot.lane.b32.xlu2 %v2274_v8, %s5870_s20  ;;  %v2289_v8 = vmul.f32 %v2288_v28, %v9010_v63  ;;  %v4268_v28 = vand.u32 2147483648, %v7937_v38  ;;  %v4265_v63 = vsel %vm8229_vm2, %v8118_v21, %v4261_v57  ;;  %vm3301_vm2 = vweird.f32 %v7959_v30 }
 0x75a   : > { %v1258_v22 = vadd.f32 %v8061_v17, %v1257_v11  ;;  %v2324_v11 = vadd.f32 %v8142_v37, %v2323_v15  ;;  %v3953_v15 = vpop.f32.mrf.mxu1  ;;  %v2347_v50 = vor.u32 1.1754944e-38, %v2346_v20 }
 0x75b   : > { %v4269_v54 = vor.u32 1.1754944e-38, %v4268_v28  ;;  %v9030_v28 = vld [vmem:[#allocation33_spill] sm:$0xff] }
 0x75c   : > { %v1262_v25 = vsel %vm8200_vm1, %v8061_v17, %v1258_v22  ;;  %v4266_v17 = vand.u32 2147483647, %v7937_v38  ;;  %v2328_v18 = vsel %vm8262_vm13, %v8142_v37, %v2324_v11  ;;  %vm2296_vm1 = vweird.f32 %v8072_v32 }
 0x75d   : > { %v1267_v19 = vsel %vm1264_vm8, %v1266_v9, %v1262_v25  ;;  %v2333_v46 = vsel %vm2330_vm5, %v2332_v23, %v2328_v18  ;;  %vm2295_vm8 = vweird.f32 %v7757_v62  ;;  %v3305_v9 = vand.u32 2147483647, %v7959_v30 }
 0x75e   : > { %vm4267_vm14 = vcmp.eq.f32.partialorder %v4266_v17, 8.507059e+37  ;;  %v1268_v26 = vmul.f32 %v1267_v19, %v9027_v0  ;;  %vm8295_vm9 = vmor %vm2295_vm8, %vm2296_vm1  ;;  %v2334_v62 = vmul.f32 %v2333_v46, %v9030_v28  ;;  %v2302_v19 = vor.u32 1.1754944e-38, %v2301_v49  ;;  %v8367_v46 = vld [vmem:[%s8766_s5] sm:$0x7] }
 0x75f   : > { %v4270_v22 = vsel %vm4267_vm14, %v4269_v54, %v4265_v63  ;;  %v2298_v42 = vsel %vm8295_vm9, %v8072_v32, %v2294_v12  ;;  %vm3306_vm14 = vcmp.eq.f32.partialorder %v3305_v9, 8.507059e+37  ;;  %vm4247_vm1 = vweird.f32 %v7809_v39  ;;  %v9033_v54 = vld [vmem:[#allocation30_spill] sm:$0xff] }
 0x760   : > { %v4517_v43 = vsel %vm4509_vm11, %v1268_v26, %v4348_v56  ;;  %v4271_v37 = vmul.f32 %v4270_v22, %v3988_v6  ;;  %v2303_v38 = vsel %vm2300_vm12, %v2302_v19, %v2298_v42  ;;  %vm8331_vm4 = vmor %vm4247_vm1, %vm4248_vm7  ;;  %vm2340_vm5 = vweird.f32 %v8180_v5  ;;  %v4023_v19 = vpop.f32.mrf.mxu3 }
 0x761   : > { %4479 = vrot.lane.b32.xlu2 %v4226_v55, %s5872_s28  ;;  %v2318_v55 = vsel %vm2315_vm6, %v2317_v7, %v2313_v59  ;;  %v3300_v59 = vadd.f32 %v8182_v45, %v3299_v53  ;;  %vm3302_vm6 = vweird.f32 %v8182_v45  ;;  %v4241_v7 = vmul.f32 %v4240_v33, %v3953_v15 }
 0x762   : > { %vm8305_vm10 = vmor %vm3301_vm2, %vm3302_vm6  ;;  %v2304_v36 = vmul.f32 %v2303_v38, %v9033_v54  ;;  %v3956_v23 = vpop.f32.mrf.mxu1  ;;  %v3322_v12 = vand.u32 2147483648, %v8233_v14  ;;  %v8373_v47 = vperm.slane %v8367_v46, 0 }
 0x763   : > { %v8166_v16 = vpop.xlane.xlu2 %1129 }
 0x766   : > { %4419 = vrot.lane.b32.xlu0 %v3280_v2, %s5871_s26  ;;  %v9024_v2 = vld [vmem:[#allocation28_spill] sm:$0xff] }
 0x767   : > { %v2319_v21 = vmul.f32 %v2318_v55, %v9024_v2  ;;  %v3308_v55 = vor.u32 1.1754944e-38, %v3307_v40  ;;  %v4251_v2 = vand.u32 2147483647, %v7809_v39  ;;  %v9038_v40 = vld [vmem:[#allocation55_spill] sm:$0xff] }
 0x769   : > { %4353 = vrot.lane.b32.xlu2 %v2289_v8, %s5870_s20  ;;  %v8249_v8 = vpop.eup %5669  ;;  %vm4252_vm8 = vcmp.eq.f32.partialorder %v4251_v2, 8.507059e+37 }
 0x76a   : > { %v2336_v10 = vmul.f32 %v8249_v8, %v8180_v5  ;;  %v8286_v3 = vpop.eup %5671  ;;  %vm2341_vm13 = vweird.f32 %v8249_v8 }
 0x76b   : > { %v8224_v31 = vpop.xlane.xlu2 %4072  ;;  %v3312_v30 = vmul.f32 %v8286_v3, %v8233_v14  ;;  %vm2342_vm6 = vmor %vm2340_vm5, %vm2341_vm13  ;;  %vm3317_vm2 = vweird.f32 %v8286_v3 }
 0x76c   : > { %v2337_v25 = vsub.f32 1.0, %v2336_v10  ;;  %5673 = vrcp.f32 %v8224_v31  ;;  %vm4292_vm13 = vweird.f32 %v8224_v31 }
 0x76d   : > { %v3313_v63 = vsub.f32 1.0, %v3312_v30 }
 0x76e   : > { %4421 = vrot.lane.b32.xlu0 %v3295_v34, %s5871_s26  ;;  %v2338_v52 = vmul.f32 %v8249_v8, %v2337_v25  ;;  %v3304_v34 = vsel %vm8305_vm10, %v8182_v45, %v3300_v59  ;;  %v4253_v45 = vand.u32 2147483648, %v7809_v39  ;;  %vm3316_vm10 = vweird.f32 %v8233_v14 }
 0x76f   : > { %v3309_v27 = vsel %vm3306_vm14, %v3308_v55, %v3304_v34  ;;  %v3314_v56 = vmul.f32 %v8286_v3, %v3313_v63  ;;  %vm3318_vm12 = vmor %vm3316_vm10, %vm3317_vm2  ;;  %vm1274_vm2 = vweird.f32 %v7843_v58 }
 0x770   : > { %v2339_v11 = vadd.f32 %v8249_v8, %v2338_v52 }
 0x771   : > { %4357 = vrot.lane.b32.xlu1 %v2319_v21, %s5870_s20  ;;  %4417 = vrot.lane.b32.xlu2 %v8150_v48, %s5871_s26  ;;  %v4244_v48 = vsub.f32 1.0, %v4243_v44  ;;  %v2344_v21 = vand.u32 2147483647, %v8180_v5  ;;  %v9036_v44 = vld [vmem:[#allocation62_spill] sm:$0xff]  ;;  %v4254_v5 = vor.u32 1.1754944e-38, %v4253_v45  ;;  %v3315_v10 = vadd.f32 %v8286_v3, %v3314_v56  ;;  %v9040_v56 = vld [vmem:[#allocation57_spill] sm:$0xff] }
 0x772   : > { %v8325_v51 = vpop.eup %5673  ;;  %v3310_v29 = vmul.f32 %v3309_v27, %v9036_v44  ;;  %v2343_v39 = vsel %vm2342_vm6, %v8249_v8, %v2339_v11  ;;  %v3320_v8 = vand.u32 2147483647, %v8233_v14  ;;  %v9039_v44 = vld [vmem:[#allocation16_spill] sm:$0xff] }
 0x773   : > { %v4412_v1 = vpop.permute.xlu2 %4411  ;;  %v4245_v17 = vmul.f32 %v8213_v4, %v4244_v48  ;;  %v4288_v22 = vmul.f32 %v8325_v51, %v8224_v31  ;;  %vm2345_vm9 = vcmp.eq.f32.partialorder %v2344_v21, 8.507059e+37  ;;  %vm4293_vm7 = vweird.f32 %v8325_v51 }
 0x774   : > { %v4533_v24 = vsel %vm724_vm3, %v4517_v43, %v4412_v1  ;;  %v2348_v53 = vsel %vm2345_vm9, %v2347_v50, %v2343_v39  ;;  %v9037_v43 = vld [vmem:[#allocation39_spill] sm:$0xff]  ;;  %vm3321_vm14 = vcmp.eq.f32.partialorder %v3320_v8, 8.507059e+37  ;;  %vm4294_vm1 = vmor %vm4292_vm13, %vm4293_vm7  ;;  %v1280_v8 = vand.u32 2147483648, %v7843_v58 }
 0x775   : > { %v4550_v57 = vsel %vm4542_vm0, %v4533_v24, %v4476_v13  ;;  %v4246_v32 = vadd.f32 %v8213_v4, %v4245_v17  ;;  %v4289_v18 = vsub.f32 1.0, %v4288_v22  ;;  %v2349_v1 = vmul.f32 %v2348_v53, %v9037_v43 }
 0x776   : > { %5208 = vmatmul.msk.f32.gmra.mxu0 %vm4563_vm15, %v4550_v57  ;;  %4485 = vrot.lane.b32.xlu0 %v4271_v37, %s5872_s28  ;;  %v3319_v24 = vsel %vm3318_vm12, %v8286_v3, %v3315_v10  ;;  %v3323_v37 = vor.u32 1.1754944e-38, %v3322_v12  ;;  %v4298_v57 = vand.u32 2147483648, %v8224_v31  ;;  %v4296_v3 = vand.u32 2147483647, %v8224_v31 }
 0x777   : > { %v4250_v0 = vsel %vm8331_vm4, %v8213_v4, %v4246_v32  ;;  %v8353_v49 = vpop.xlane.xlu0 %1132  ;;  %v4290_v48 = vmul.f32 %v8325_v51, %v4289_v18  ;;  %v1278_v18 = vand.u32 2147483647, %v7843_v58 }
 0x778   : > { %v4255_v4 = vsel %vm4252_vm8, %v4254_v5, %v4250_v0  ;;  %v3324_v14 = vsel %vm3321_vm14, %v3323_v37, %v3319_v24  ;;  %vm4297_vm4 = vcmp.eq.f32.partialorder %v4296_v3, 8.507059e+37 }
 0x779   : > { %4359 = vrot.lane.b32.xlu1 %v2334_v62, %s5870_s20  ;;  %4481 = vrot.lane.b32.xlu2 %v4241_v7, %s5872_s28  ;;  %v4256_v6 = vmul.f32 %v4255_v4, %v3956_v23  ;;  %v4291_v59 = vadd.f32 %v8325_v51, %v4290_v48  ;;  %v3325_v41 = vmul.f32 %v3324_v14, %v9038_v40  ;;  %v4299_v62 = vor.u32 1.1754944e-38, %v4298_v57 }
 0x77a   : > { %v1281_v40 = vor.u32 1.1754944e-38, %v1280_v8  ;;  %v1293_v8 = vand.u32 2147483647, %v8166_v16 }
 0x77b   : > { %v4295_v28 = vsel %vm4294_vm1, %v8325_v51, %v4291_v59 }
 0x77c   : > { %v4300_v35 = vsel %vm4297_vm4, %v4299_v62, %v4295_v28  ;;  %vm1279_vm4 = vcmp.eq.f32.partialorder %v1278_v18, 8.507059e+37 }
 0x77d   : > { %v4301_v38 = vmul.f32 %v4300_v35, %v4023_v19 }
 0x77f   : > { %v8377_v15 = vpop.xlane.xlu0 %4075 }
 0x780   : > { %v8342_v26 = vpop.xlane.xlu1 %3099  ;;  %vm4307_vm7 = vweird.f32 %v8377_v15  ;;  %v4311_v14 = vand.u32 2147483647, %v8377_v15 }
 0x781   : > { %5675 = vrcp.f32 %v8342_v26  ;;  %4423 = vrot.lane.b32.xlu1 %v3310_v29, %s5871_s26  ;;  %4355 = vrot.lane.b32.xlu2 %v2304_v36, %s5870_s20  ;;  %v3337_v52 = vand.u32 2147483648, %v8342_v26  ;;  %vm3331_vm6 = vweird.f32 %v8342_v26  ;;  %v3335_v55 = vand.u32 2147483647, %v8342_v26 }
 0x782   : > { %5677 = vrcp.f32 %v7843_v58  ;;  %v1146_v29 = vsel %vm724_vm3, %v9039_v44, 0.0  ;;  %v8474_v44 = vperm.slane %v8367_v46, 2 }
 0x783   : > { %5679 = vrcp.f32 %v8377_v15  ;;  %v3338_v51 = vor.u32 1.1754944e-38, %v3337_v52  ;;  %vm3336_vm9 = vcmp.eq.f32.partialorder %v3335_v55, 8.507059e+37  ;;  %v9045_v55 = vld [vmem:[#allocation17_spill] sm:$0xff] }
 0x787   : > { %v5676_v33 = vpop.eup %5675 }
 0x788   : > { %v3327_v13 = vmul.f32 %v5676_v33, %v8342_v26  ;;  %vm3332_vm5 = vweird.f32 %v5676_v33  ;;  %v8389_v34 = vpop.eup %5677 }
 0x789   : > { %4361 = vrot.lane.b32.xlu1 %v2349_v1, %s5870_s20  ;;  %4483 = vrot.lane.b32.xlu2 %v4256_v6, %s5872_s28  ;;  %v8393_v32 = vpop.eup %5679  ;;  %vm3333_vm8 = vmor %vm3331_vm6, %vm3332_vm5  ;;  %v1270_v63 = vmul.f32 %v8389_v34, %v7843_v58  ;;  %vm1275_vm10 = vweird.f32 %v8389_v34  ;;  %vm4312_vm5 = vcmp.eq.f32.partialorder %v4311_v14, 8.507059e+37 }
 0x78a   : > { %v3328_v25 = vsub.f32 1.0, %v3327_v13  ;;  %v4303_v20 = vmul.f32 %v8393_v32, %v8377_v15  ;;  %vm4308_vm12 = vweird.f32 %v8393_v32  ;;  %v4313_v13 = vand.u32 2147483648, %v8377_v15  ;;  %vm8430_vm14 = vmor %vm1274_vm2, %vm1275_vm10 }
 0x78b   : > { %v1271_v2 = vsub.f32 1.0, %v1270_v63  ;;  %vm8437_vm1 = vmor %vm4307_vm7, %vm4308_vm12  ;;  %vm1294_vm12 = vcmp.eq.f32.partialorder %v1293_v8, 8.507059e+37  ;;  %vm4277_vm7 = vweird.f32 %v7867_v60 }
 0x78c   : > { %v3329_v7 = vmul.f32 %v5676_v33, %v3328_v25  ;;  %v4304_v0 = vsub.f32 1.0, %v4303_v20 }
 0x78d   : > { %v1272_v5 = vmul.f32 %v8389_v34, %v1271_v2 }
 0x78e   : > { %v3330_v42 = vadd.f32 %v5676_v33, %v3329_v7  ;;  %v4305_v4 = vmul.f32 %v8393_v32, %v4304_v0  ;;  %v4314_v7 = vor.u32 1.1754944e-38, %v4313_v13  ;;  %v4281_v13 = vand.u32 2147483647, %v7867_v60 }
 0x78f   : > { %v1273_v12 = vadd.f32 %v8389_v34, %v1272_v5 }
 0x790   : > { %v3334_v11 = vsel %vm3333_vm8, %v5676_v33, %v3330_v42  ;;  %v4306_v43 = vadd.f32 %v8393_v32, %v4305_v4 }
 0x791   : > { %4425 = vrot.lane.b32.xlu1 %v3325_v41, %s5871_s26  ;;  %v4629_v9 = vpop.f32.mrf.mxu0  ;;  %v3339_v36 = vsel %vm3336_vm9, %v3338_v51, %v3334_v11  ;;  %v1277_v58 = vsel %vm8430_vm14, %v8389_v34, %v1273_v12  ;;  %v9046_v11 = vld [vmem:[#allocation10_spill] sm:$0xff]  ;;  %vm1289_vm9 = vweird.f32 %v8166_v16 }
 0x792   : > { %v8385_v17 = vadd.f32 %v8373_v47, %v4629_v9  ;;  %v3340_v22 = vmul.f32 %v3339_v36, %v9040_v56  ;;  %v4310_v15 = vsel %vm8437_vm1, %v8393_v32, %v4306_v43  ;;  %v4026_v32 = vpop.f32.mrf.mxu3  ;;  %v4350_v36 = vpop.permute.xlu0 %4349  ;;  %v1295_v56 = vand.u32 2147483648, %v8166_v16 }
 0x793   : > { %v4315_v19 = vsel %vm4312_vm5, %v4314_v7, %v4310_v15  ;;  %v4283_v15 = vand.u32 2147483648, %v7867_v60  ;;  %vm8533_vm1 = vcmp.eq.f32.partialorder %v4281_v13, 8.507059e+37 }
 0x794   : > { %v4711_v31 = vmin.f32 %v8385_v17, 20.0  ;;  %vm4695_vm13 = vcmp.gt.f32.partialorder %v8385_v17, 20.0  ;;  %v4316_v2 = vmul.f32 %v4315_v19, %v4026_v32  ;;  %v1296_v14 = vor.u32 1.1754944e-38, %v1295_v56 }
 0x796   : > { %v4727_v30 = vmul.f32 1.442695, %v4711_v31  ;;  %v1282_v31 = vsel %vm1279_vm4, %v1281_v40, %v1277_v58 }
 0x797   : > { %v1283_v63 = vmul.f32 %v1282_v31, %v9046_v11 }
 0x798   : > { %5681 = vpow2.f32 %v4727_v30  ;;  %v4478_v4 = vpop.permute.xlu1 %4477 }
 0x799   : > { %4489 = vrot.lane.b32.xlu1 %v4301_v38, %s5872_s28  ;;  %v4632_v27 = vpop.f32.mrf.mxu0  ;;  %5683 = vrcp.f32 %v8166_v16  ;;  %v1143_v38 = vsel %vm724_vm3, %v9045_v55, 0.0 }
 0x79a   : > { %v8399_v45 = vadd.f32 %v8373_v47, %v4632_v27  ;;  %v8463_v27 = vperm.slane %v8367_v46, 1 }
 0x79c   : > { %v4712_v54 = vmin.f32 %v8399_v45, 20.0  ;;  %vm4696_vm6 = vcmp.gt.f32.partialorder %v8399_v45, 20.0 }
 0x79e   : > { %v5682_v61 = vpop.eup %5681  ;;  %v4729_v21 = vmul.f32 1.442695, %v4712_v54 }
 0x79f   : > { %v4759_v26 = vadd.f32 1.0, %v5682_v61  ;;  %v8415_v10 = vpop.eup %5683 }
 0x7a0   : > { %5685 = vpow2.f32 %v4729_v21  ;;  %1147 = vadd.xlane.f32.xlu0 %v1146_v29  ;;  %v1285_v48 = vmul.f32 %v8415_v10, %v8166_v16  ;;  %vm1290_vm8 = vweird.f32 %v8415_v10 }
 0x7a1   : > { %5687 = vlog2.f32 %v4759_v26  ;;  %4427 = vrot.lane.b32.xlu1 %v3340_v22, %s5871_s26  ;;  %v4635_v39 = vpop.f32.mrf.mxu0  ;;  %vm8500_vm2 = vmor %vm1289_vm9, %vm1290_vm8  ;;  %s8505_s26 = scalar_lea.vmem [#allocation2], %s8470_s19 }
 0x7a2   : > { %v8411_v50 = vadd.f32 %v8373_v47, %v4635_v39  ;;  %5689 = vrcp.f32 %v7867_v60  ;;  %v1286_v62 = vsub.f32 1.0, %v1285_v48  ;;  %v4518_v39 = vsel %vm4509_vm11, %v1283_v63, %v4350_v36  ;;  %s4919_s11 = sshll.u32 %s8505_s26, 4  ;;  %s4920_s11 = int_to_ptr.vmem [resolvable:$true] %s4919_s11 }
 0x7a3   : > { %v4284_v63 = vor.u32 1.1754944e-38, %v4283_v15 }
 0x7a4   : > { %v4713_v53 = vmin.f32 %v8411_v50, 20.0  ;;  %v1287_v54 = vmul.f32 %v8415_v10, %v1286_v62  ;;  %vm4697_vm10 = vcmp.gt.f32.partialorder %v8411_v50, 20.0 }
 0x7a6   : > { %v5686_v23 = vpop.eup %5685  ;;  %v4731_v33 = vmul.f32 1.442695, %v4713_v53  ;;  %v1288_v46 = vadd.f32 %v8415_v10, %v1287_v54 }
 0x7a7   : > { %v5688_v6 = vpop.eup %5687  ;;  %v4760_v1 = vadd.f32 1.0, %v5686_v23 }
 0x7a8   : > { %v4776_v24 = vmul.f32 0.6931472, %v5688_v6  ;;  %5691 = vpow2.f32 %v4731_v33  ;;  %v8451_v41 = vpop.eup %5689  ;;  %v1292_v25 = vsel %vm8500_vm2, %v8415_v10, %v1288_v46 }
 0x7a9   : > { %5693 = vlog2.f32 %v4760_v1  ;;  %v4638_v59 = vpop.f32.mrf.mxu0  ;;  %v4273_v30 = vmul.f32 %v8451_v41, %v7867_v60  ;;  %vm4278_vm14 = vweird.f32 %v8451_v41 }
 0x7aa   : > { %v4807_v57 = vsel %vm4695_vm13, %v8385_v17, %v4776_v24  ;;  %v8446_v3 = vadd.f32 %v8373_v47, %v4638_v59  ;;  %vm8529_vm13 = vmor %vm4277_vm7, %vm4278_vm14 }
 0x7ab   : > { %5695 = vtanh.f32 %v4807_v57  ;;  %v4274_v26 = vsub.f32 1.0, %v4273_v30  ;;  %v9056_v30 = vld [vmem:[#allocation27_spill] sm:$0xff] }
 0x7ac   : > { %v4714_v9 = vmin.f32 %v8446_v3, 20.0  ;;  %v8454_v28 = vpop.xlane.xlu2 %2123  ;;  %vm4698_vm4 = vcmp.gt.f32.partialorder %v8446_v3, 20.0 }
 0x7ad   : > { %5697 = vrcp.f32 %v8454_v28  ;;  %v4275_v48 = vmul.f32 %v8451_v41, %v4274_v26 }
 0x7ae   : > { %v5692_v35 = vpop.eup %5691  ;;  %v4733_v42 = vmul.f32 1.442695, %v4714_v9 }
 0x7af   : > { %v5694_v52 = vpop.eup %5693  ;;  %v4761_v34 = vadd.f32 1.0, %v5692_v35  ;;  %v4276_v9 = vadd.f32 %v8451_v41, %v4275_v48  ;;  %v2359_v48 = vand.u32 2147483647, %v8454_v28 }
 0x7b0   : > { %v4778_v51 = vmul.f32 0.6931472, %v5694_v52  ;;  %5699 = vpow2.f32 %v4733_v42 }
 0x7b1   : > { %v5696_v20 = vpop.eup %5695  ;;  %5701 = vlog2.f32 %v4761_v34  ;;  %v4641_v61 = vpop.f32.mrf.mxu0  ;;  %vm2360_vm9 = vcmp.eq.f32.partialorder %v2359_v48, 8.507059e+37 }
 0x7b2   : > { %v4839_v21 = vmul.f32 %v5696_v20, %v8385_v17  ;;  %v4808_v29 = vsel %vm4696_vm6, %v8399_v45, %v4778_v51  ;;  %v8478_v0 = vadd.f32 %v8373_v47, %v4641_v61  ;;  %1144 = vadd.xlane.f32.xlu2 %v1143_v38  ;;  %v9053_v38 = vld [vmem:[#allocation22_spill] sm:$0xff]  ;;  %v4280_v20 = vsel %vm8529_vm13, %v8451_v41, %v4276_v9 }
 0x7b3   : > { %5703 = vtanh.f32 %v4808_v29  ;;  %v8484_v17 = vpop.eup %5697  ;;  %v4285_v41 = vsel %vm8533_vm1, %v4284_v63, %v4280_v20  ;;  %vm2355_vm6 = vweird.f32 %v8454_v28 }
 0x7b4   : > { %v4856_v22 = vmul.f32 %v8463_v27, %v4839_v21  ;;  %v4414_v5 = vpop.permute.xlu2 %4413  ;;  %4491 = vrot.lane.b32.xlu0 %v4316_v2, %s5872_s28  ;;  %v4715_v53 = vmin.f32 %v8478_v0, 20.0  ;;  %5705 = vrcp.f32 %v8353_v49  ;;  %v2351_v40 = vmul.f32 %v8484_v17, %v8454_v28 }
 0x7b5   : > { %v4534_v18 = vsel %vm724_vm3, %v4518_v39, %v4414_v5  ;;  %vm2356_vm5 = vweird.f32 %v8484_v17  ;;  %vm4699_vm2 = vcmp.gt.f32.partialorder %v8478_v0, 20.0 }
 0x7b6   : > { %v5700_v23 = vpop.eup %5699  ;;  %v4873_v12 = vadd.f32 %v8474_v44, %v4856_v22  ;;  %v4551_v33 = vsel %vm4542_vm0, %v4534_v18, %v4478_v4  ;;  %v4735_v1 = vmul.f32 1.442695, %v4715_v53  ;;  %v2352_v19 = vsub.f32 1.0, %v2351_v40  ;;  %v4416_v22 = vpop.permute.xlu1 %4415  ;;  %vm8571_vm8 = vmor %vm2355_vm6, %vm2356_vm5 }
 0x7b7   : > { %v5702_v6 = vpop.eup %5701  ;;  %v4762_v43 = vadd.f32 1.0, %v5700_v23  ;;  %5209 = vmatmul.msk.f32.gmra.mxu0 %vm4563_vm15, %v4551_v33  ;;  %v3991_v23 = vpop.f32.mrf.mxu2 }
 0x7b8   : > { %4889 = vst.msk [vmem:[%s8505_s26] sm:$0xff] %vm4563_vm15, %v4873_v12  ;;  %v4780_v16 = vmul.f32 0.6931472, %v5702_v6  ;;  %v2353_v26 = vmul.f32 %v8484_v17, %v2352_v19 }
 0x7b9   : > { %v5704_v37 = vpop.eup %5703  ;;  %5707 = vlog2.f32 %v4762_v43  ;;  %v4644_v59 = vpop.f32.mrf.mxu0  ;;  %v2361_v43 = vand.u32 2147483648, %v8454_v28 }
 0x7ba   : > { %v4840_v57 = vmul.f32 %v5704_v37, %v8399_v45  ;;  %v4809_v58 = vsel %vm4697_vm10, %v8411_v50, %v4780_v16  ;;  %5709 = vpow2.f32 %v4735_v1  ;;  %v8519_v7 = vadd.f32 %v8373_v47, %v4644_v59  ;;  %v8524_v31 = vpop.eup %5705 }
 0x7bb   : > { %5711 = vtanh.f32 %v4809_v58  ;;  %v1297_v45 = vsel %vm1294_vm12, %v1296_v14, %v1292_v25  ;;  %v1300_v60 = vmul.f32 %v8524_v31, %v8353_v49  ;;  %v2354_v33 = vadd.f32 %v8484_v17, %v2353_v26  ;;  %v9059_v26 = vld [vmem:[#allocation34_spill] sm:$0xff] }
 0x7bc   : > { %v4857_v10 = vmul.f32 %v8463_v27, %v4840_v57  ;;  %v4352_v62 = vpop.permute.xlu2 %4351  ;;  %v4716_v35 = vmin.f32 %v8519_v7, 20.0  ;;  %v1298_v32 = vmul.f32 %v1297_v45, %v9053_v38  ;;  %v4286_v1 = vmul.f32 %v4285_v41, %v3991_v23 }
 0x7bd   : > { %v8556_v5 = vpop.xlane.xlu0 %1135  ;;  %v1301_v53 = vsub.f32 1.0, %v1300_v60  ;;  %v2358_v25 = vsel %vm8571_vm8, %v8484_v17, %v2354_v33  ;;  %v2362_v28 = vor.u32 1.1754944e-38, %v2361_v43  ;;  %vm1305_vm10 = vweird.f32 %v8524_v31 }
 0x7be   : > { %v4874_v42 = vadd.f32 %v8474_v44, %v4857_v10  ;;  %v4737_v55 = vmul.f32 1.442695, %v4716_v35  ;;  %v4519_v61 = vsel %vm4509_vm11, %v1298_v32, %v4352_v62  ;;  %v1310_v35 = vand.u32 2147483648, %v8353_v49 }
 0x7bf   : > { %v5708_v52 = vpop.eup %5707  ;;  %v4535_v4 = vsel %vm724_vm3, %v4519_v61, %v4416_v22  ;;  %v1302_v14 = vmul.f32 %v8524_v31, %v1301_v53  ;;  %v2363_v10 = vsel %vm2360_vm9, %v2362_v28, %v2358_v25  ;;  %vm1304_vm12 = vweird.f32 %v8353_v49 }
 0x7c0   : > { %v5710_v11 = vpop.eup %5709  ;;  %4890 = vst.msk [vmem:[%s8505_s26 + $0x8] sm:$0xff] %vm4563_vm15, %v4874_v42  ;;  %v4782_v51 = vmul.f32 0.6931472, %v5708_v52  ;;  %5713 = vpow2.f32 %v4737_v55  ;;  %v1308_v52 = vand.u32 2147483647, %v8353_v49  ;;  %v2364_v34 = vmul.f32 %v2363_v10, %v9056_v30  ;;  %vm8598_vm14 = vmor %vm1304_vm12, %vm1305_vm10 }
 0x7c1   : > { %v5712_v54 = vpop.eup %5711  ;;  %v4763_v36 = vadd.f32 1.0, %v5710_v11  ;;  %v4647_v2 = vpop.f32.mrf.mxu0  ;;  %v1303_v62 = vadd.f32 %v8524_v31, %v1302_v14  ;;  %vm4700_vm7 = vcmp.gt.f32.partialorder %v8519_v7, 20.0  ;;  %v1311_v11 = vor.u32 1.1754944e-38, %v1310_v35 }
 0x7c2   : > { %v4841_v21 = vmul.f32 %v5712_v54, %v8411_v50  ;;  %v4810_v29 = vsel %vm4698_vm4, %v8446_v3, %v4782_v51  ;;  %v8551_v56 = vadd.f32 %v8373_v47, %v4647_v2  ;;  %vm1309_vm13 = vcmp.eq.f32.partialorder %v1308_v52, 8.507059e+37 }
 0x7c3   : > { %5715 = vtanh.f32 %v4810_v29  ;;  %v1307_v49 = vsel %vm8598_vm14, %v8524_v31, %v1303_v62  ;;  %v1325_v43 = vand.u32 2147483648, %v8556_v5  ;;  %vm1319_vm5 = vweird.f32 %v8556_v5 }
 0x7c4   : > { %v4858_v39 = vmul.f32 %v8463_v27, %v4841_v21  ;;  %5717 = vlog2.f32 %v4763_v36  ;;  %v4717_v50 = vmin.f32 %v8551_v56, 20.0  ;;  %v4480_v46 = vpop.permute.xlu2 %4479  ;;  %v1312_v36 = vsel %vm1309_vm13, %v1311_v11, %v1307_v49 }
 0x7c5   : > { %v4552_v18 = vsel %vm4542_vm0, %v4535_v4, %v4480_v46  ;;  %5719 = vrcp.f32 %v8556_v5  ;;  %v8611_v2 = vpop.xlane.xlu0 %1141  ;;  %v1313_v22 = vmul.f32 %v1312_v36, %v9059_v26  ;;  %vm4701_vm1 = vcmp.gt.f32.partialorder %v8551_v56, 20.0 }
 0x7c6   : > { %v4875_v12 = vadd.f32 %v8474_v44, %v4858_v39  ;;  %v4739_v6 = vmul.f32 1.442695, %v4717_v50  ;;  %5210 = vmatmul.msk.f32.gmra.mxu0 %vm4563_vm15, %v4552_v18  ;;  %v5714_v8 = vpop.eup %5713  ;;  %v1323_v48 = vand.u32 2147483647, %v8556_v5  ;;  %vm1349_vm13 = vweird.f32 %v8611_v2 }
 0x7c7   : > { %v4764_v13 = vadd.f32 1.0, %v5714_v8 }
 0x7c8   : > { %4891 = vst.msk [vmem:[%s8505_s26 + $0x10] sm:$0xff] %vm4563_vm15, %v4875_v12  ;;  %5721 = vpow2.f32 %v4739_v6  ;;  %vm1324_vm8 = vcmp.eq.f32.partialorder %v1323_v48, 8.507059e+37 }
 0x7c9   : > { %v5716_v24 = vpop.eup %5715  ;;  %5723 = vlog2.f32 %v4764_v13 }
 0x7ca   : > { %v5718_v37 = vpop.eup %5717  ;;  %v4842_v59 = vmul.f32 %v5716_v24, %v8446_v3  ;;  %4487 = vrot.lane.b32.xlu2 %v4286_v1, %s5872_s28  ;;  %s5225_s28 = sshll.u32 %s5930_s25, 7  ;;  %s4906_s25 = scalar_lea.sflag [#allocation3], %s245_s18 }
 0x7cb   : > { %v4784_v57 = vmul.f32 0.6931472, %v5718_v37  ;;  %v8583_v15 = vpop.eup %5719  ;;  %v8586_v9 = vpop.xlane.xlu1 %1138  ;;  %v1326_v37 = vor.u32 1.1754944e-38, %v1325_v43  ;;  %s4918_s10 = scalar_lea.hbm %s8767_s6, %s5225_s28 }
 0x7cc   : > { %v4859_v58 = vmul.f32 %v8463_v27, %v4842_v59  ;;  %v4354_v40 = vpop.permute.xlu2 %4353  ;;  %v1315_v32 = vmul.f32 %v8583_v15, %v8556_v5  ;;  %vm1320_vm4 = vweird.f32 %v8583_v15  ;;  %s4921_s12 = sshll.u32 %s4918_s10, 4  ;;  %s4922_s12 = int_to_ptr.hbm [resolvable:$true] %s4921_s12 }
 0x7cd   : > { %v4811_v3 = vsel %vm4699_vm2, %v8478_v0, %v4784_v57  ;;  %v4520_v53 = vsel %vm4509_vm11, %v1313_v22, %v4354_v40  ;;  %vm1321_vm6 = vmor %vm1319_vm5, %vm1320_vm4  ;;  %vm1334_vm2 = vweird.f32 %v8586_v9  ;;  %v1338_v40 = vand.u32 2147483647, %v8586_v9  ;;  %s5809_s13 = sshra.s32 %s4922_s12, 4  ;;  %s5810_s13 = int_to_ptr.hbm [resolvable:$true] %s5809_s13 }
 0x7ce   : > { %v5722_v45 = vpop.eup %5721  ;;  %v4876_v17 = vadd.f32 %v8474_v44, %v4859_v58  ;;  %5725 = vtanh.f32 %v4811_v3  ;;  %v1316_v54 = vsub.f32 1.0, %v1315_v32  ;;  %v1340_v58 = vand.u32 2147483648, %v8586_v9  ;;  %v9060_v3 = vld [vmem:[#allocation26_spill] sm:$0xff]  ;;  %s5811_s14 = scalar_lea.hbm %s5810_s13, 128  ;;  %p5816_p0 = scmp.lt.s32.totalorder %s5810_s13, %s8767_s6 }
 0x7cf   : > { %v4765_v42 = vadd.f32 1.0, %v5722_v45  ;;  %v5724_v19 = vpop.eup %5723  ;;  %5727 = vrcp.f32 %v8586_v9  ;;  %vm1339_vm12 = vcmp.eq.f32.partialorder %v1338_v40, 8.507059e+37  ;;  %p5812_p11 = scmp.ne.s32.totalorder %s5810_s13, %s5811_s14  ;;  %p5817_p1 = scmp.lt.s32.totalorder %s5815_s17, %s5811_s14 }
 0x7d0   : > { %4892 = vst.msk [vmem:[%s8505_s26 + $0x18] sm:$0xff] %vm4563_vm15, %v4876_v17  ;;  %v4786_v38 = vmul.f32 0.6931472, %v5724_v19  ;;  %v1317_v39 = vmul.f32 %v8583_v15, %v1316_v54  ;;  %v1341_v62 = vor.u32 1.1754944e-38, %v1340_v58 }
 0x7d1   : > { %5729 = vlog2.f32 %v4765_v42  ;;  %p5813_p12 = pnand %p5812_p11, %p5947_p5  ;;  %p5818_p2 = por %p5817_p1, %p5816_p0 }
 0x7d2   : > { %4363 = vrot.lane.b32.xlu2 %v2364_v34, %s5870_s20  ;;  %v4812_v63 = vsel %vm4700_vm7, %v8519_v7, %v4786_v38  ;;  %v1318_v33 = vadd.f32 %v8583_v15, %v1317_v39 }
 0x7d3   : > { %5731 = vtanh.f32 %v4812_v63  ;;  %p5814_p13 = pneg %p5813_p12 }
 0x7d4   : > { %v5726_v60 = vpop.eup %5725  ;;  %v4418_v51 = vpop.permute.xlu2 %4417  ;;  %v1322_v16 = vsel %vm1321_vm6, %v8583_v15, %v1318_v33  ;;  %v1353_v33 = vand.u32 2147483647, %v8611_v2 }
 0x7d5   : > { %v4843_v20 = vmul.f32 %v5726_v60, %v8478_v0  ;;  %v5728_v61 = vpop.eup %5727  ;;  %v4536_v18 = vsel %vm724_vm3, %v4520_v53, %v4418_v51  ;;  %v1327_v28 = vsel %vm1324_vm8, %v1326_v37, %v1322_v16  ;;  %p5819_p3 = pnand %p5818_p2, %p5814_p13 }
 0x7d6   : > { %v1330_v50 = vmul.f32 %v5728_v61, %v8586_v9  ;;  %vm1335_vm9 = vweird.f32 %v5728_v61  ;;  %v1328_v15 = vmul.f32 %v1327_v28, %v9060_v3  ;;  %v9061_v9 = vld [vmem:[#allocation12_spill] sm:$0xff]  ;;  %vm1354_vm4 = vcmp.eq.f32.partialorder %v1353_v33, 8.507059e+37 }
 0x7d7   : > { %v5730_v21 = vpop.eup %5729  ;;  %v4860_v31 = vmul.f32 %v8463_v27, %v4843_v20  ;;  %vm1336_vm10 = vmor %vm1334_vm2, %vm1335_vm9 }
 0x7d8   : > { %v4788_v29 = vmul.f32 0.6931472, %v5730_v21  ;;  %v1331_v6 = vsub.f32 1.0, %v1330_v50  ;;  %v4420_v1 = vpop.permute.xlu0 %4419 }
 0x7d9   : > { %v4877_v41 = vadd.f32 %v8474_v44, %v4860_v31  ;;  %v5732_v0 = vpop.eup %5731 }
 0x7da   : > { %v4813_v46 = vsel %vm4701_vm1, %v8551_v56, %v4788_v29  ;;  %v4844_v4 = vmul.f32 %v5732_v0, %v8519_v7  ;;  %v1332_v24 = vmul.f32 %v5728_v61, %v1331_v6 }
 0x7db   : > { %4893 = vst.msk [vmem:[%s8505_s26 + $0x20] sm:$0xff] %vm4563_vm15, %v4877_v41  ;;  %5733 = vtanh.f32 %v4813_v46 }
 0x7dc   : > { %v4482_v23 = vpop.permute.xlu2 %4481  ;;  %v4861_v12 = vmul.f32 %v8463_v27, %v4844_v4  ;;  %v1333_v57 = vadd.f32 %v5728_v61, %v1332_v24 }
 0x7dd   : > { %v4553_v8 = vsel %vm4542_vm0, %v4536_v18, %v4482_v23  ;;  %v1355_v18 = vand.u32 2147483648, %v8611_v2 }
 0x7de   : > { %5211 = vmatmul.msk.f32.gmra.mxu0 %vm4563_vm15, %v4553_v8  ;;  %v4878_v7 = vadd.f32 %v8474_v44, %v4861_v12  ;;  %v1337_v10 = vsel %vm1336_vm10, %v5728_v61, %v1333_v57 }
 0x7df   : > { %v1342_v17 = vsel %vm1339_vm12, %v1341_v62, %v1337_v10  ;;  %v1356_v8 = vor.u32 1.1754944e-38, %v1355_v18 }
 0x7e0   : > { %4894 = vst.msk [vmem:[%s8505_s26 + $0x28] sm:$0xff] %vm4563_vm15, %v4878_v7  ;;  %v1343_v30 = vmul.f32 %v1342_v17, %v9061_v9 }
 0x7e1   : > { %v5734_v13 = vpop.eup %5733 }
 0x7e2   : > { %v4845_v14 = vmul.f32 %v5734_v13, %v8551_v56  ;;  %v4422_v56 = vpop.permute.xlu0 %4421  ;;  %v9062_v13 = vld [vmem:[#allocation32_spill] sm:$0xff] }
 0x7e3   : > { %v4358_v52 = vpop.permute.xlu1 %4357 }
 0x7e4   : > { %v4862_v59 = vmul.f32 %v8463_v27, %v4845_v14  ;;  %v4356_v25 = vpop.permute.xlu2 %4355  ;;  %v4522_v34 = vsel %vm4509_vm11, %v1343_v30, %v4358_v52 }
 0x7e5   : > { %v4521_v45 = vsel %vm4509_vm11, %v1328_v15, %v4356_v25  ;;  %v4538_v32 = vsel %vm724_vm3, %v4522_v34, %v4422_v56 }
 0x7e6   : > { %v4879_v5 = vadd.f32 %v8474_v44, %v4862_v59  ;;  %v4537_v42 = vsel %vm724_vm3, %v4521_v45, %v4420_v1 }
 0x7e8   : > { %4895 = vst.msk [vmem:[%s8505_s26 + $0x30] sm:$0xff] %vm4563_vm15, %v4879_v5 }
 0x7ea   : > { %v4486_v55 = vpop.permute.xlu0 %4485 }
 0x7eb   : > { %v4555_v11 = vsel %vm4542_vm0, %v4538_v32, %v4486_v55  ;;  %v4360_v21 = vpop.permute.xlu1 %4359  ;;  %v9065_v55 = vld [vmem:[#allocation35_spill] sm:$0xff] }
 0x7ec   : > { %v4484_v35 = vpop.permute.xlu2 %4483 }
 0x7ed   : > { %v4554_v19 = vsel %vm4542_vm0, %v4537_v42, %v4484_v35 }
 0x7ee   : > { %5212 = vmatmul.msk.f32.gmra.mxu0 %vm4563_vm15, %v4554_v19 }
 0x7f3   : > { %v4650_v38 = vpop.f32.mrf.mxu0  ;;  %v4424_v39 = vpop.permute.xlu1 %4423 }
 0x7f4   : > { %v4686_v49 = vadd.f32 %v8373_v47, %v4650_v38 }
 0x7f6   : > { %v4718_v63 = vmin.f32 %v4686_v49, 20.0  ;;  %5213 = vmatmul.msk.f32.gmra.mxu0 %vm4563_vm15, %v4555_v11  ;;  %vm4702_vm14 = vcmp.gt.f32.partialorder %v4686_v49, 20.0 }
 0x7f8   : > { %v4741_v60 = vmul.f32 1.442695, %v4718_v63 }
 0x7fa   : > { %5735 = vpow2.f32 %v4741_v60 }
 0x7fb   : > { %v4362_v23 = vpop.permute.xlu1 %4361 }
 0x800   : > { %v5736_v51 = vpop.eup %5735 }
 0x801   : > { %v4766_v20 = vadd.f32 1.0, %v5736_v51 }
 0x803   : > { %5737 = vlog2.f32 %v4766_v20  ;;  %v4426_v16 = vpop.permute.xlu1 %4425  ;;  %v9066_v20 = vld [vmem:[#allocation18_spill] sm:$0xff] }
 0x804   : > { %5739 = vrcp.f32 %v8611_v2 }
 0x809   : > { %v5738_v54 = vpop.eup %5737 }
 0x80a   : > { %v4790_v36 = vmul.f32 0.6931472, %v5738_v54  ;;  %v5740_v31 = vpop.eup %5739 }
 0x80b   : > { %v1345_v26 = vmul.f32 %v5740_v31, %v8611_v2  ;;  %vm1350_vm7 = vweird.f32 %v5740_v31  ;;  %v4490_v42 = vpop.permute.xlu1 %4489 }
 0x80c   : > { %v4814_v61 = vsel %vm4702_vm14, %v4686_v49, %v4790_v36  ;;  %vm1351_vm1 = vmor %vm1349_vm13, %vm1350_vm7 }
 0x80d   : > { %5741 = vtanh.f32 %v4814_v61  ;;  %v1346_v50 = vsub.f32 1.0, %v1345_v26 }
 0x80f   : > { %v1347_v4 = vmul.f32 %v5740_v31, %v1346_v50 }
 0x811   : > { %v1348_v53 = vadd.f32 %v5740_v31, %v1347_v4 }
 0x813   : > { %v5742_v29 = vpop.eup %5741  ;;  %v1148_v46 = vpop.xlane.xlu0 %1147  ;;  %v1352_v6 = vsel %vm1351_vm1, %v5740_v31, %v1348_v53 }
 0x814   : > { %v4846_v22 = vmul.f32 %v5742_v29, %v4686_v49  ;;  %5743 = vrcp.f32 %v1148_v46  ;;  %v1357_v7 = vsel %vm1354_vm4, %v1356_v8, %v1352_v6  ;;  %vm1379_vm8 = vweird.f32 %v1148_v46 }
 0x815   : > { %v1358_v24 = vmul.f32 %v1357_v7, %v9062_v13  ;;  %v1385_v56 = vand.u32 2147483648, %v1148_v46  ;;  %v1383_v45 = vand.u32 2147483647, %v1148_v46 }
 0x816   : > { %v4863_v41 = vmul.f32 %v8463_v27, %v4846_v22 }
 0x817   : > { %v4523_v14 = vsel %vm4509_vm11, %v1358_v24, %v4360_v21  ;;  %v1386_v30 = vor.u32 1.1754944e-38, %v1385_v56  ;;  %vm1384_vm14 = vcmp.eq.f32.partialorder %v1383_v45, 8.507059e+37  ;;  %v4428_v21 = vpop.permute.xlu1 %4427 }
 0x818   : > { %v4880_v0 = vadd.f32 %v8474_v44, %v4863_v41  ;;  %v4539_v59 = vsel %vm724_vm3, %v4523_v14, %v4424_v39 }
 0x81a   : > { %4896 = vst.msk [vmem:[%s8505_s26 + $0x38] sm:$0xff] %vm4563_vm15, %v4880_v0  ;;  %v5744_v12 = vpop.eup %5743 }
 0x81b   : > { %v1375_v43 = vmul.f32 %v5744_v12, %v1148_v46  ;;  %vm1380_vm5 = vweird.f32 %v5744_v12 }
 0x81c   : > { %vm8670_vm9 = vmor %vm1379_vm8, %vm1380_vm5 }
 0x81d   : > { %v1376_v48 = vsub.f32 1.0, %v1375_v43 }
 0x81f   : > { %v1377_v25 = vmul.f32 %v5744_v12, %v1376_v48 }
 0x821   : > { %v1378_v40 = vadd.f32 %v5744_v12, %v1377_v25 }
 0x823   : > { %v1382_v9 = vsel %vm8670_vm9, %v5744_v12, %v1378_v40 }
 0x824   : > { %v1387_v49 = vsel %vm1384_vm14, %v1386_v30, %v1382_v9 }
 0x825   : > { %v1145_v1 = vpop.xlane.xlu2 %1144  ;;  %v1388_v54 = vmul.f32 %v1387_v49, %v9066_v20 }
 0x826   : > { %5745 = vrcp.f32 %v1145_v1  ;;  %v1370_v58 = vand.u32 2147483648, %v1145_v1  ;;  %v1368_v15 = vand.u32 2147483647, %v1145_v1  ;;  %vm1364_vm2 = vweird.f32 %v1145_v1  ;;  %v4492_v26 = vpop.permute.xlu0 %4491 }
 0x828   : > { %v1371_v17 = vor.u32 1.1754944e-38, %v1370_v58  ;;  %vm1369_vm12 = vcmp.eq.f32.partialorder %v1368_v15, 8.507059e+37 }
 0x82c   : > { %v5746_v37 = vpop.eup %5745 }
 0x82d   : > { %v1360_v28 = vmul.f32 %v5746_v37, %v1145_v1  ;;  %v4488_v2 = vpop.permute.xlu2 %4487  ;;  %vm1365_vm6 = vweird.f32 %v5746_v37 }
 0x82e   : > { %v4556_v57 = vsel %vm4542_vm0, %v4539_v59, %v4488_v2  ;;  %vm1366_vm10 = vmor %vm1364_vm2, %vm1365_vm6 }
 0x82f   : > { %v1361_v5 = vsub.f32 1.0, %v1360_v28  ;;  %5214 = vmatmul.msk.f32.gmra.mxu0 %vm4563_vm15, %v4556_v57 }
 0x831   : > { %v1362_v3 = vmul.f32 %v5746_v37, %v1361_v5 }
 0x833   : > { %v1363_v62 = vadd.f32 %v5746_v37, %v1362_v3 }
 0x834   : > { %v4653_v35 = vpop.f32.mrf.mxu0 }
 0x835   : > { %v1367_v19 = vsel %vm1366_vm10, %v5746_v37, %v1363_v62  ;;  %v4687_v52 = vadd.f32 %v8373_v47, %v4653_v35  ;;  %v4364_v60 = vpop.permute.xlu2 %4363 }
 0x836   : > { %v1372_v34 = vsel %vm1369_vm12, %v1371_v17, %v1367_v19  ;;  %v4525_v61 = vsel %vm4509_vm11, %v1388_v54, %v4364_v60 }
 0x837   : > { %v1373_v38 = vmul.f32 %v1372_v34, %v9065_v55  ;;  %v4719_v32 = vmin.f32 %v4687_v52, 20.0  ;;  %v4541_v31 = vsel %vm724_vm3, %v4525_v61, %v4428_v21 }
 0x838   : > { %v4558_v39 = vsel %vm4542_vm0, %v4541_v31, %v4492_v26 }
 0x839   : > { %v4743_v11 = vmul.f32 1.442695, %v4719_v32  ;;  %v4524_v63 = vsel %vm4509_vm11, %v1373_v38, %v4362_v23  ;;  %vm4703_vm11 = vcmp.gt.f32.partialorder %v4687_v52, 20.0 }
 0x83a   : > { %v4540_v51 = vsel %vm724_vm3, %v4524_v63, %v4426_v16 }
 0x83b   : > { %5747 = vpow2.f32 %v4743_v11  ;;  %v4557_v36 = vsel %vm4542_vm0, %v4540_v51, %v4490_v42 }
 0x83c   : > { %5215 = vmatmul.msk.f32.gmra.mxu0 %vm4563_vm15, %v4557_v36 }
 0x841   : > { %v5748_v29 = vpop.eup %5747 }
 0x842   : > { %v4767_v22 = vadd.f32 1.0, %v5748_v29 }
 0x843   : > { %v4656_v41 = vpop.f32.mrf.mxu0 }
 0x844   : > { %5749 = vlog2.f32 %v4767_v22  ;;  %v4688_v50 = vadd.f32 %v8373_v47, %v4656_v41  ;;  %5216 = vmatmul.msk.f32.gmra.mxu0 %vm4563_vm15, %v4558_v39 }
 0x846   : > { %v4720_v0 = vmin.f32 %v4688_v50, 20.0  ;;  %vm4704_vm3 = vcmp.gt.f32.partialorder %v4688_v50, 20.0 }
 0x848   : > { %v4745_v46 = vmul.f32 1.442695, %v4720_v0 }
 0x84a   : > { %v5750_v4 = vpop.eup %5749  ;;  %5751 = vpow2.f32 %v4745_v46 }
 0x84b   : > { %v4792_v53 = vmul.f32 0.6931472, %v5750_v4 }
 0x84d   : > { %v4815_v18 = vsel %vm4703_vm11, %v4687_v52, %v4792_v53 }
 0x84e   : > { %5753 = vtanh.f32 %v4815_v18 }
 0x850   : > { %v5752_v23 = vpop.eup %5751 }
 0x851   : > { %v4768_v12 = vadd.f32 1.0, %v5752_v23 }
 0x853   : > { %5755 = vlog2.f32 %v4768_v12 }
 0x854   : > { %v5754_v33 = vpop.eup %5753 }
 0x855   : > { %v4847_v6 = vmul.f32 %v5754_v33, %v4687_v52 }
 0x857   : > { %v4864_v8 = vmul.f32 %v8463_v27, %v4847_v6 }
 0x859   : > { %v5756_v43 = vpop.eup %5755  ;;  %v4881_v1 = vadd.f32 %v8474_v44, %v4864_v8 }
 0x85a   : > { %v4794_v7 = vmul.f32 0.6931472, %v5756_v43 }
 0x85b   : > { %4897 = vst.msk [vmem:[%s8505_s26 + $0x40] sm:$0xff] %vm4563_vm15, %v4881_v1  ;;  %v4659_v48 = vpop.f32.mrf.mxu0 }
 0x85c   : > { %v4816_v13 = vsel %vm4704_vm3, %v4688_v50, %v4794_v7  ;;  %v4689_v24 = vadd.f32 %v8373_v47, %v4659_v48 }
 0x85d   : > { %5757 = vtanh.f32 %v4816_v13 }
 0x85e   : > { %v4721_v16 = vmin.f32 %v4689_v24, 20.0  ;;  %vm4705_vm0 = vcmp.gt.f32.partialorder %v4689_v24, 20.0 }
 0x860   : > { %v4747_v37 = vmul.f32 1.442695, %v4721_v16 }
 0x862   : > { %5759 = vpow2.f32 %v4747_v37 }
 0x863   : > { %v5758_v14 = vpop.eup %5757 }
 0x864   : > { %v4848_v59 = vmul.f32 %v5758_v14, %v4688_v50 }
 0x866   : > { %v4865_v25 = vmul.f32 %v8463_v27, %v4848_v59 }
 0x868   : > { %v5760_v28 = vpop.eup %5759  ;;  %v4882_v2 = vadd.f32 %v8474_v44, %v4865_v25 }
 0x869   : > { %v4769_v57 = vadd.f32 1.0, %v5760_v28 }
 0x86a   : > { %4898 = vst.msk [vmem:[%s8505_s26 + $0x48] sm:$0xff] %vm4563_vm15, %v4882_v2 }
 0x86b   : > { %5761 = vlog2.f32 %v4769_v57  ;;  %v4662_v5 = vpop.f32.mrf.mxu0 }
 0x86c   : > { %v4690_v58 = vadd.f32 %v8373_v47, %v4662_v5 }
 0x86e   : > { %v4722_v40 = vmin.f32 %v4690_v58, 20.0  ;;  %vm4706_vm7 = vcmp.gt.f32.partialorder %v4690_v58, 20.0 }
 0x870   : > { %v4749_v3 = vmul.f32 1.442695, %v4722_v40 }
 0x871   : > { %v5762_v15 = vpop.eup %5761 }
 0x872   : > { %v4796_v56 = vmul.f32 0.6931472, %v5762_v15  ;;  %5763 = vpow2.f32 %v4749_v3 }
 0x873   : > { %v4665_v10 = vpop.f32.mrf.mxu0 }
 0x874   : > { %v4817_v45 = vsel %vm4705_vm0, %v4689_v24, %v4796_v56  ;;  %v4691_v62 = vadd.f32 %v8373_v47, %v4665_v10 }
 0x875   : > { %5765 = vtanh.f32 %v4817_v45 }
 0x876   : > { %v4723_v17 = vmin.f32 %v4691_v62, 20.0  ;;  %vm4707_vm13 = vcmp.gt.f32.partialorder %v4691_v62, 20.0 }
 0x878   : > { %v5764_v35 = vpop.eup %5763  ;;  %v4751_v42 = vmul.f32 1.442695, %v4723_v17 }
 0x879   : > { %v4770_v19 = vadd.f32 1.0, %v5764_v35 }
 0x87a   : > { %5767 = vpow2.f32 %v4751_v42 }
 0x87b   : > { %v5766_v52 = vpop.eup %5765  ;;  %5769 = vlog2.f32 %v4770_v19 }
 0x87c   : > { %v4849_v9 = vmul.f32 %v5766_v52, %v4689_v24 }
 0x87e   : > { %v4866_v30 = vmul.f32 %v8463_v27, %v4849_v9 }
 0x880   : > { %v5768_v34 = vpop.eup %5767  ;;  %v4883_v55 = vadd.f32 %v8474_v44, %v4866_v30 }
 0x881   : > { %v5770_v38 = vpop.eup %5769  ;;  %v4771_v32 = vadd.f32 1.0, %v5768_v34 }
 0x882   : > { %4899 = vst.msk [vmem:[%s8505_s26 + $0x50] sm:$0xff] %vm4563_vm15, %v4883_v55  ;;  %v4798_v49 = vmul.f32 0.6931472, %v5770_v38 }
 0x883   : > { %5771 = vlog2.f32 %v4771_v32 }
 0x884   : > { %v4818_v11 = vsel %vm4706_vm7, %v4690_v58, %v4798_v49 }
 0x885   : > { %5773 = vtanh.f32 %v4818_v11 }
 0x889   : > { %v5772_v63 = vpop.eup %5771 }
 0x88a   : > { %v4800_v60 = vmul.f32 0.6931472, %v5772_v63 }
 0x88b   : > { %v5774_v51 = vpop.eup %5773 }
 0x88c   : > { %v4850_v20 = vmul.f32 %v5774_v51, %v4690_v58  ;;  %v4819_v54 = vsel %vm4707_vm13, %v4691_v62, %v4800_v60 }
 0x88d   : > { %5775 = vtanh.f32 %v4819_v54 }
 0x88e   : > { %v4867_v36 = vmul.f32 %v8463_v27, %v4850_v20 }
 0x890   : > { %v4884_v61 = vadd.f32 %v8474_v44, %v4867_v36 }
 0x892   : > { %4900 = vst.msk [vmem:[%s8505_s26 + $0x58] sm:$0xff] %vm4563_vm15, %v4884_v61 }
 0x893   : > { %v5776_v21 = vpop.eup %5775 }
 0x894   : > { %v4851_v31 = vmul.f32 %v5776_v21, %v4691_v62 }
 0x896   : > { %v4868_v29 = vmul.f32 %v8463_v27, %v4851_v31 }
 0x898   : > { %v4885_v26 = vadd.f32 %v8474_v44, %v4868_v29 }
 0x89a   : > { %4901 = vst.msk [vmem:[%s8505_s26 + $0x60] sm:$0xff] %vm4563_vm15, %v4885_v26 }
 0x8ac   : > { %v4668_v22 = vpop.f32.mrf.mxu0 }
 0x8ad   : > { %v4692_v41 = vadd.f32 %v8373_v47, %v4668_v22 }
 0x8af   : > { %v4724_v39 = vmin.f32 %v4692_v41, 20.0  ;;  %vm4708_vm1 = vcmp.gt.f32.partialorder %v4692_v41, 20.0 }
 0x8b1   : > { %v4753_v50 = vmul.f32 1.442695, %v4724_v39 }
 0x8b3   : > { %5777 = vpow2.f32 %v4753_v50 }
 0x8b9   : > { %v5778_v0 = vpop.eup %5777  ;;  %v4671_v46 = vpop.f32.mrf.mxu0 }
 0x8ba   : > { %v4772_v4 = vadd.f32 1.0, %v5778_v0  ;;  %v4693_v53 = vadd.f32 %v8373_v47, %v4671_v46 }
 0x8bc   : > { %5779 = vlog2.f32 %v4772_v4  ;;  %v4725_v18 = vmin.f32 %v4693_v53, 20.0  ;;  %vm4709_vm4 = vcmp.gt.f32.partialorder %v4693_v53, 20.0 }
 0x8be   : > { %v4755_v23 = vmul.f32 1.442695, %v4725_v18 }
 0x8c0   : > { %5781 = vpow2.f32 %v4755_v23 }
 0x8c1   : > { %v4674_v12 = vpop.f32.mrf.mxu0 }
 0x8c2   : > { %v5780_v33 = vpop.eup %5779  ;;  %v4694_v6 = vadd.f32 %v8373_v47, %v4674_v12 }
 0x8c3   : > { %v4802_v8 = vmul.f32 0.6931472, %v5780_v33 }
 0x8c4   : > { %v4726_v43 = vmin.f32 %v4694_v6, 20.0  ;;  %vm4710_vm5 = vcmp.gt.f32.partialorder %v4694_v6, 20.0 }
 0x8c5   : > { %v4820_v1 = vsel %vm4708_vm1, %v4692_v41, %v4802_v8 }
 0x8c6   : > { %v5782_v7 = vpop.eup %5781  ;;  %5783 = vtanh.f32 %v4820_v1  ;;  %v4757_v48 = vmul.f32 1.442695, %v4726_v43 }
 0x8c7   : > { %v4773_v13 = vadd.f32 1.0, %v5782_v7 }
 0x8c8   : > { %5785 = vpow2.f32 %v4757_v48 }
 0x8c9   : > { %5787 = vlog2.f32 %v4773_v13 }
 0x8cc   : > { %v5784_v24 = vpop.eup %5783 }
 0x8cd   : > { %v4852_v16 = vmul.f32 %v5784_v24, %v4692_v41 }
 0x8ce   : > { %v5786_v37 = vpop.eup %5785 }
 0x8cf   : > { %v5788_v14 = vpop.eup %5787  ;;  %v4869_v59 = vmul.f32 %v8463_v27, %v4852_v16  ;;  %v4774_v25 = vadd.f32 1.0, %v5786_v37 }
 0x8d0   : > { %v4804_v47 = vmul.f32 0.6931472, %v5788_v14 }
 0x8d1   : > { %v4886_v28 = vadd.f32 %v8474_v44, %v4869_v59  ;;  %5789 = vlog2.f32 %v4774_v25 }
 0x8d2   : > { %v4821_v2 = vsel %vm4709_vm4, %v4693_v53, %v4804_v47 }
 0x8d3   : > { %4902 = vst.msk [vmem:[%s8505_s26 + $0x68] sm:$0xff] %vm4563_vm15, %v4886_v28  ;;  %5791 = vtanh.f32 %v4821_v2 }
 0x8d7   : > { %v5790_v57 = vpop.eup %5789 }
 0x8d8   : > { %v4806_v5 = vmul.f32 0.6931472, %v5790_v57 }
 0x8d9   : > { %v5792_v58 = vpop.eup %5791 }
 0x8da   : > { %v4853_v40 = vmul.f32 %v5792_v58, %v4693_v53  ;;  %v4822_v3 = vsel %vm4710_vm5, %v4694_v6, %v4806_v5 }
 0x8db   : > { %5793 = vtanh.f32 %v4822_v3 }
 0x8dc   : > { %v4870_v15 = vmul.f32 %v8463_v27, %v4853_v40 }
 0x8de   : > { %v4887_v56 = vadd.f32 %v8474_v44, %v4870_v15 }
 0x8e0   : > { %4903 = vst.msk [vmem:[%s8505_s26 + $0x70] sm:$0xff] %vm4563_vm15, %v4887_v56 }
 0x8e1   : > { %v5794_v10 = vpop.eup %5793 }
 0x8e2   : > { %v4854_v45 = vmul.f32 %v5794_v10, %v4694_v6 }
 0x8e4   : > { %v4871_v62 = vmul.f32 %v8463_v27, %v4854_v45 }
 0x8e6   : > { %v4888_v17 = vadd.f32 %v8474_v44, %v4871_v62 }
 0x8e8   : > { %4904 = vst.msk [vmem:[%s8505_s26 + $0x78] sm:$0xff] %vm4563_vm15, %v4888_v17 }
 0x8e9   : > { %5822 = shalt.err (!%p5819_p3)
}
 0x8ea   : > { %s5873_s18 = smov 128  }
 0x8eb   : > { %5229 = dma.vmem_to_hbm [thread:$0]  (%p5947_p5), %s4920_s11, 2048, %s4922_s12, %s4906_s25, %s5873_s18, %s5873_s18, %s5870_s20  }
 0x8ec PF: > { %p5235_p4 = scmp.ge.s32.totalorder %s5857_s24, 2  ;;  %s4936_s26 = sand.u32 1, %s5845_s21  }
 0x8ed   : > { %s4937_s29 = scalar_lea.sflag [#allocation3], %s4936_s26 }
 0x8ee   : > { %p5232_p7 = pnand %p5235_p4, %p5951_p6 }
 0x8f0   : > { %p5233_p8 = pneg %p5232_p7 }
 0x8f2   : > { %5840 = dma.done.wait (%p5233_p8), %s4937_s29, 2048  }
 0x8f3   : > { %5842 = vsyncadd (%p5233_p8), %s4937_s29, 4294965248  ;;  %p16_p9 = scmp.ge.s32.totalorder %s5934_s27, 4   ;;  %s9067_s21 = smov %s5849_s22 }
 0x8f4   : > { %s9068_s22 = smov %s5853_s23  ;;  %s9069_s23 = smov %s5945_s30 }
 0x8f5   : > { %s9070_s24 = smov %s5934_s27  ;;  %18 = sbr.rel (!%p16_p9) target bundleno = 3 (0x3), region = 79 }
 0x8fa   :  { %4943 = vsyncpa [#allocation3], 1 }
 0x8fb   :  { %4945 = vsyncpa [#allocation3 + $0x1], 1 }

</bundles_post_ra>
